<compile_context>
chip_gen: v7x
topology: tpu7x:2x2x1
jax: 0.10.0
libtpu: 0.0.40
codegen_flags: <defaults>
</compile_context>

<pallas_src>
import math

import jax
import jax.numpy as jnp
from jax.experimental import pallas as pl
from jax.experimental.pallas import tpu as pltpu

# ---------------- config (small, consistent with the module) ----------------
B = 2          # batch
T = 8          # sequence length (MAX_SMILES_LEN + 1)
D = 32         # n_embd
H = 4          # n_head
L = 2          # n_layer (unimodal and multimodal)
V = 64         # vocab size == len(tokenizer)
PAD_ID = 0     # '<pad>' id
HD = D // H    # head dim
NL = 2 * L     # total blocks (unimodal + multimodal)
BT = B * T     # flattened (batch, position) rows
HBT = H * BT   # head-stacked rows for attention
EPS = 1e-5     # GPT2 layer_norm_epsilon / F.layer_norm default

assert (T & (T - 1)) == 0, "T must be a power of two for the shift-based bias"
_T_SHIFT = int(math.log2(T))

# vec slab row offsets (per layer: base = layer * 8)
_R_LN1G, _R_LN1B, _R_LN2G, _R_LN2B, _R_PROJB, _R_MLPB, _R_QKVB, _R_FCB = range(8)
_GB = NL * 8   # global rows: uni_lnf_g/b, mm_lnf_g/b, head_ln_g/b


# ============================ fused Pallas kernel =============================

def _fused_forward_kernel(tok_ref, emb_ref, qkv_w_ref, proj_w_ref,
                          fc_w_ref, mlp_w_ref, vec_ref,
                          out_ref, stk_ref, ctxw_ref):
    f32 = jnp.float32

    def vrow(r, w=D):
        return vec_ref[r:r + 1, 0:w]                    # (1, w)

    def ln(x, r_g, r_b):
        g, b = vrow(r_g), vrow(r_b)
        mu = jnp.mean(x, axis=-1, keepdims=True)
        var = jnp.mean((x - mu) ** 2, axis=-1, keepdims=True)
        return (x - mu) * jax.lax.rsqrt(var + EPS) * g + b

    # ---- packed token data ----
    ids_col = tok_ref[0:BT, 0:1]                        # (BT, 1) int32
    lbl = tok_ref[BT:2 * BT, 0:1]                       # (BT, 1) int32 (shifted labels / -100)
    ids_row = tok_ref[2 * BT:2 * BT + 1, :]             # (1, HBT) int32, ids tiled H times

    # ---- embedding: one_hot(ids) @ wte + wpe (wpe pre-tiled over batch) ----
    lane_v = jax.lax.broadcasted_iota(jnp.int32, (BT, V), 1)
    one_hot = (lane_v == ids_col).astype(f32)           # (BT, V)
    x = jnp.dot(one_hot, emb_ref[0:V, :], preferred_element_type=f32)   # (BT, D)
    x = x + emb_ref[2 * V:2 * V + BT, :]

    # ---- additive attention bias over the head-stacked (HBT, HBT) scores.
    # Row r = head*BT + batch*T + pos, so r >> log2(T) uniquely encodes
    # (head, batch); off-group / non-causal entries get -1e9 (softmax -> 0).
    r = jax.lax.broadcasted_iota(jnp.int32, (HBT, HBT), 0)
    c = jax.lax.broadcasted_iota(jnp.int32, (HBT, HBT), 1)
    same_grp = jnp.right_shift(r, _T_SHIFT) == jnp.right_shift(c, _T_SHIFT)
    causal_ok = jnp.bitwise_and(r, T - 1) >= jnp.bitwise_and(c, T - 1)
    base_bias = jnp.where(same_grp & causal_ok, 0.0, -1e9).astype(f32)
    pad_uni = jnp.where(ids_row != PAD_ID, 0.0, -1e9).astype(f32)        # GPT2Model
    pad_mm = jnp.where(ids_row != PAD_ID, 0.0, -10000.0).astype(f32)     # MultiModalDecoder
    bias_uni = base_bias + pad_uni                                        # (HBT, HBT), hoisted
    bias_mm = base_bias + pad_mm

    scale = 1.0 / math.sqrt(HD)
    c_gelu = math.sqrt(2.0 / math.pi)
    qkT = (((1,), (1,)), ((), ()))                       # contract minor dims: A @ B^T

    def block(x, l, bias):
        base = l * 8
        a = ln(x, base + _R_LN1G, base + _R_LN1B)                         # (BT, D)
        # one fused QKV matmul per layer; output columns grouped per head
        qkv = (jnp.dot(a, qkv_w_ref[l], preferred_element_type=f32)
               + vrow(base + _R_QKVB, 3 * D))                             # (BT, 3D)
        # stack heads along sublanes: (BT, 3D) -> (HBT, 3*HD) via scratch stores
        for h in range(H):
            stk_ref[h * BT:(h + 1) * BT, :] = qkv[:, h * 3 * HD:(h + 1) * 3 * HD]
        q_s = stk_ref[:, 0:HD]                                            # (HBT, HD)
        k_s = stk_ref[:, HD:2 * HD]
        v_s = stk_ref[:, 2 * HD:3 * HD]
        s = jax.lax.dot_general(q_s, k_s, qkT, preferred_element_type=f32)  # (HBT, HBT)
        s = s * scale + bias
        m = jnp.max(s, axis=-1, keepdims=True)
        p = jnp.exp(s - m)
        # approx reciprocal -> EUP slot; ~1e-3 relative change in attn probs.
        p = p * pl.reciprocal(jnp.sum(p, axis=-1, keepdims=True), approx=True)
        ctx = jnp.dot(p, v_s, preferred_element_type=f32)                 # (HBT, HD)
        # unstack heads back onto lanes: (HBT, HD) -> (BT, D) via scratch stores
        for h in range(H):
            ctxw_ref[:, h * HD:(h + 1) * HD] = ctx[h * BT:(h + 1) * BT, :]
        attn = (jnp.dot(ctxw_ref[...], proj_w_ref[l], preferred_element_type=f32)
                + vrow(base + _R_PROJB))                                  # single output proj
        h1 = x + attn                                                     # residual 1
        mi = ln(h1, base + _R_LN2G, base + _R_LN2B)
        fc = (jnp.dot(mi, fc_w_ref[l], preferred_element_type=f32)
              + vrow(base + _R_FCB, 4 * D))
        # GPT2 NewGELU (tanh approximation)
        fc = 0.5 * fc * (1.0 + jnp.tanh(c_gelu * (fc + 0.044715 * fc * fc * fc)))
        mlp = (jnp.dot(fc, mlp_w_ref[l], preferred_element_type=f32)
               + vrow(base + _R_MLPB))
        return h1 + mlp                                                   # residual 2

    # ---- unimodal GPT2Model (dropout = identity in eval) ----
    for l in range(L):
        x = block(x, l, bias_uni)
    x = ln(x, _GB + 0, _GB + 1)

    # ---- MultiModalDecoder (no positional embed, mask * -10000) ----
    for l in range(L):
        x = block(x, L + l, bias_mm)
    x = ln(x, _GB + 2, _GB + 3)

    # ---- to_logits head (LayerNorm -> Linear no-bias) on all positions;
    # positions excluded by the [:, :-1] + shift are masked via label = -100.
    hin = ln(x, _GB + 4, _GB + 5)
    logits = jax.lax.dot_general(hin, emb_ref[V:2 * V, :], qkT,
                                 preferred_element_type=f32)              # (BT, V)

    # ---- caption cross-entropy loss + hit@1 (ignore_index = -100) ----
    m = jnp.max(logits, axis=-1, keepdims=True)
    lse = m + jnp.log(jnp.sum(jnp.exp(logits - m), axis=-1, keepdims=True))
    lbl_logit = jnp.sum(jnp.where(lane_v == lbl, logits, 0.0), axis=-1, keepdims=True)
    nll = lse - lbl_logit                                                 # (BT, 1)
    # argmax with ties broken toward the lowest index
    argmax = jnp.min(jnp.where(logits == m, lane_v, V), axis=-1, keepdims=True)
    hit = (argmax == lbl).astype(f32)                                     # (BT, 1)
    valid = (lbl != -100).astype(f32)                                     # (BT, 1)
    denom = jnp.maximum(jnp.sum(valid, axis=0, keepdims=True), 1.0)       # (1, 1)
    loss = jnp.sum(nll * valid, axis=0, keepdims=True) / denom            # (1, 1)
    acc = jnp.sum(hit * valid, axis=0, keepdims=True) / denom             # (1, 1)

    # single lane-dense output row: lane 0 = loss, lane 1 = hit@1
    lane_o = jax.lax.broadcasted_iota(jnp.int32, (1, 128), 1)
    out_ref[...] = jnp.where(lane_o == 0, loss, jnp.where(lane_o == 1, acc, 0.0))


# ============================ wrapper / packing ===============================

def pack_params(params):
    """One-time conversion of GPT2-style params to the fused-kernel layout.

    Produces 6 lane-dense packed weight tensors (the 7th kernel input is the
    per-call packed token array built in `forward`).
    """
    blocks = list(params["uni_blocks"]) + list(params["mm_blocks"])

    def pad_row(v):
        v = jnp.asarray(v, jnp.float32).reshape(-1)
        return jnp.pad(v, (0, 128 - v.shape[0]))

    qkv_w, proj_w, fc_w, mlp_w, vec_rows = [], [], [], [], []
    for blk in blocks:
        aw, ab = blk["attn_w"], blk["attn_b"]            # (D, 3D), (3D,)
        wq, wk, wv = aw[:, :D], aw[:, D:2 * D], aw[:, 2 * D:]
        bq, bk, bv = ab[:D], ab[D:2 * D], ab[2 * D:]
        cols, bcols = [], []
        for h in range(H):
            sl = slice(h * HD, (h + 1) * HD)
            cols += [wq[:, sl], wk[:, sl], wv[:, sl]]    # per-head [q|k|v] groups
            bcols += [bq[sl], bk[sl], bv[sl]]
        qkv_w.append(jnp.concatenate(cols, axis=1))      # (D, 3D), head-grouped cols
        qkv_b = jnp.concatenate(bcols, axis=0)           # (3D,)
        proj_w.append(blk["proj_w"])
        fc_w.append(blk["fc_w"])
        mlp_w.append(blk["mlp_w"])
        vec_rows += [pad_row(blk["ln1_g"]), pad_row(blk["ln1_b"]),
                     pad_row(blk["ln2_g"]), pad_row(blk["ln2_b"]),
                     pad_row(blk["proj_b"]), pad_row(blk["mlp_b"]),
                     pad_row(qkv_b), pad_row(blk["fc_b"])]
    vec_rows += [pad_row(params["uni_lnf_g"]), pad_row(params["uni_lnf_b"]),
                 pad_row(params["mm_lnf_g"]), pad_row(params["mm_lnf_b"]),
                 pad_row(params["head_ln_g"]), pad_row(params["head_ln_b"])]
    while len(vec_rows) % 8:
        vec_rows.append(jnp.zeros((128,), jnp.float32))

    emb = jnp.concatenate(
        [params["wte"],                                  # rows [0, V)
         params["head_w"].T,                             # rows [V, 2V)
         jnp.tile(params["wpe"], (B, 1))], axis=0)       # rows [2V, 2V+BT)

    return dict(
        emb=emb,
        qkv_w=jnp.stack(qkv_w, 0),                       # (NL, D, 3D)
        proj_w=jnp.stack(proj_w, 0),                     # (NL, D, D)
        fc_w=jnp.stack(fc_w, 0),                         # (NL, D, 4D)
        mlp_w=jnp.stack(mlp_w, 0),                       # (NL, 4D, D)
        vec=jnp.stack(vec_rows, 0),                      # (40, 128)
    )


def forward(packed, input_ids, labels):
    b, t = input_ids.shape
    bt = b * t
    ids_flat = input_ids.reshape(bt).astype(jnp.int32)
    # Per-row label after the double shift in calc_caption_loss / accuracy2
    # (logits[:, :-1] from the head input slice, then shift by one);
    # rows outside the valid range carry -100 (CrossEntropyLoss ignore_index).
    pad_w = t - (labels.shape[1] - 1)
    lab_flat = jnp.concatenate(
        [labels[:, 1:].astype(jnp.int32),
         jnp.full((b, pad_w), -100, jnp.int32)], axis=1).reshape(bt)

    # single packed int32 input: ids column, label column, tiled id row
    tok = jnp.zeros((2 * bt + 8, H * bt), jnp.int32)
    tok = tok.at[0:bt, 0].set(ids_flat)
    tok = tok.at[bt:2 * bt, 0].set(lab_flat)
    tok = tok.at[2 * bt, :].set(jnp.tile(ids_flat, H))

    out = pl.pallas_call(
        _fused_forward_kernel,
        out_shape=jax.ShapeDtypeStruct((1, 128), jnp.float32),
        scratch_shapes=[pltpu.VMEM((H * bt, 3 * HD), jnp.float32),   # head-stacked qkv
                        pltpu.VMEM((bt, D), jnp.float32)],           # ctx heads on lanes
    )(tok, packed["emb"], packed["qkv_w"], packed["proj_w"],
      packed["fc_w"], packed["mlp_w"], packed["vec"])

    # TODO(synk): accuracy2 is not defined in the reference; using masked top-1 accuracy.
    return {"loss": out[0, 0], "hit@1": out[0, 1]}


# ============================ parameter init =================================

def _block_params(key):
    ks = jax.random.split(key, 4)
    std = 0.02
    return dict(
        ln1_g=jnp.ones((D,), jnp.float32), ln1_b=jnp.zeros((D,), jnp.float32),
        attn_w=std * jax.random.normal(ks[0], (D, 3 * D), jnp.float32),
        attn_b=jnp.zeros((3 * D,), jnp.float32),
        proj_w=std * jax.random.normal(ks[1], (D, D), jnp.float32),
        proj_b=jnp.zeros((D,), jnp.float32),
        ln2_g=jnp.ones((D,), jnp.float32), ln2_b=jnp.zeros((D,), jnp.float32),
        fc_w=std * jax.random.normal(ks[2], (D, 4 * D), jnp.float32),
        fc_b=jnp.zeros((4 * D,), jnp.float32),
        mlp_w=std * jax.random.normal(ks[3], (4 * D, D), jnp.float32),
        mlp_b=jnp.zeros((D,), jnp.float32),
    )


def init_params(key):
    ks = jax.random.split(key, 3 + 2 * L)
    std = 0.02
    return dict(
        wte=std * jax.random.normal(ks[0], (V, D), jnp.float32),
        wpe=std * jax.random.normal(ks[1], (T, D), jnp.float32),
        uni_blocks=[_block_params(ks[3 + i]) for i in range(L)],
        uni_lnf_g=jnp.ones((D,), jnp.float32),
        uni_lnf_b=jnp.zeros((D,), jnp.float32),
        mm_blocks=[_block_params(ks[3 + L + i]) for i in range(L)],
        mm_lnf_g=jnp.ones((D,), jnp.float32),
        mm_lnf_b=jnp.zeros((D,), jnp.float32),
        head_ln_g=jnp.ones((D,), jnp.float32),
        head_ln_b=jnp.zeros((D,), jnp.float32),      # registered buffer (zeros)
        head_w=std * jax.random.normal(ks[2], (D, V), jnp.float32),  # Linear.weight.T
    )


# ================================ main =======================================

if __name__ == "__main__":
    key = jax.random.PRNGKey(0)
    k_param, k_ids, k_lbl = jax.random.split(key, 3)
    params = init_params(k_param)
    packed = pack_params(params)   # one-time weight re-layout (fused / lane-dense slabs)

    # input_ids avoid PAD_ID so attention_mask is all ones (padding path still wired).
    input_ids = jax.random.randint(k_ids, (B, T), 1, V, dtype=jnp.int32)
    # labels: length T-1 so the double-shift in calc_caption_loss / accuracy2 is consistent.
    labels = jax.random.randint(k_lbl, (B, T - 1), 1, V, dtype=jnp.int32)

    out = jax.jit(forward)(packed, input_ids, labels)
    out = jax.block_until_ready(out)
    assert jnp.isfinite(out["loss"]) and jnp.isfinite(out["hit@1"])
    print("KERNEL_OK")
</pallas_src>

<mosaic_0001>
module attributes {stable_mosaic.version = 11 : i64} {
  func.func @_fused_forward_kernel(%arg0: memref<40x64xi32, #tpu.memory_space<vmem>>, %arg1: memref<144x32xf32, #tpu.memory_space<vmem>>, %arg2: memref<4x32x96xf32, #tpu.memory_space<vmem>>, %arg3: memref<4x32x32xf32, #tpu.memory_space<vmem>>, %arg4: memref<4x32x128xf32, #tpu.memory_space<vmem>>, %arg5: memref<4x128x32xf32, #tpu.memory_space<vmem>>, %arg6: memref<40x128xf32, #tpu.memory_space<vmem>>, %arg7: memref<1x128xf32, #tpu.memory_space<vmem>>, %arg8: memref<64x24xf32, #tpu.memory_space<vmem>>, %arg9: memref<16x32xf32, #tpu.memory_space<vmem>>) attributes {dimension_semantics = [], scalar_prefetch = 0 : i64, scratch_operands = 2 : i64, tpu.core_type = #tpu.core_type<tc>} {
    %c0 = arith.constant 0 : index
    %c0_0 = arith.constant 0 : index
    %0 = vector.load %arg0[%c0, %c0_0] : memref<40x64xi32, #tpu.memory_space<vmem>>, vector<16x1xi32>
    %c16 = arith.constant 16 : index
    %c0_1 = arith.constant 0 : index
    %1 = vector.load %arg0[%c16, %c0_1] : memref<40x64xi32, #tpu.memory_space<vmem>>, vector<16x1xi32>
    %c32 = arith.constant 32 : index
    %c0_2 = arith.constant 0 : index
    %2 = vector.load %arg0[%c32, %c0_2] : memref<40x64xi32, #tpu.memory_space<vmem>>, vector<1x64xi32>
    %3 = tpu.iota {dimensions = array<i32: 1>} : vector<16x64xi32>
    %4 = vector.broadcast %0 : vector<16x1xi32> to vector<16x64xi32>
    %5 = arith.cmpi eq, %3, %4 : vector<16x64xi32>
    %6 = arith.extui %5 : vector<16x64xi1> to vector<16x64xi32>
    %7 = arith.sitofp %6 : vector<16x64xi32> to vector<16x64xf32>
    %c0_3 = arith.constant 0 : index
    %c0_4 = arith.constant 0 : index
    %8 = vector.load %arg1[%c0_3, %c0_4] : memref<144x32xf32, #tpu.memory_space<vmem>>, vector<64x32xf32>
    %cst = arith.constant dense<0.000000e+00> : vector<16x32xf32>
    %9 = tpu.matmul %7, %8, %cst {dimension_numbers = #tpu.dot_dimension_numbers<[1], [0], [0], [1], [0, 0, 1, 1], [], []>} : vector<16x64xf32>, vector<64x32xf32>, vector<16x32xf32> -> vector<16x32xf32>
    %c128 = arith.constant 128 : index
    %c0_5 = arith.constant 0 : index
    %10 = vector.load %arg1[%c128, %c0_5] : memref<144x32xf32, #tpu.memory_space<vmem>>, vector<16x32xf32>
    %11 = arith.addf %9, %10 : vector<16x32xf32>
    %12 = tpu.iota {dimensions = array<i32: 0>} : vector<64x64xi32>
    %13 = tpu.iota {dimensions = array<i32: 1>} : vector<64x64xi32>
    %c3_i32 = arith.constant 3 : i32
    %14 = vector.broadcast %c3_i32 : i32 to vector<64x64xi32>
    %15 = arith.shrsi %12, %14 : vector<64x64xi32>
    %c3_i32_6 = arith.constant 3 : i32
    %16 = vector.broadcast %c3_i32_6 : i32 to vector<64x64xi32>
    %17 = arith.shrsi %13, %16 : vector<64x64xi32>
    %18 = arith.cmpi eq, %15, %17 : vector<64x64xi32>
    %c7_i32 = arith.constant 7 : i32
    %19 = vector.broadcast %c7_i32 : i32 to vector<64x64xi32>
    %20 = arith.andi %12, %19 : vector<64x64xi32>
    %c7_i32_7 = arith.constant 7 : i32
    %21 = vector.broadcast %c7_i32_7 : i32 to vector<64x64xi32>
    %22 = arith.andi %13, %21 : vector<64x64xi32>
    %23 = arith.cmpi sge, %20, %22 : vector<64x64xi32>
    %24 = arith.andi %18, %23 : vector<64x64xi1>
    %cst_8 = arith.constant 0.000000e+00 : f32
    %cst_9 = arith.constant -1.000000e+09 : f32
    %25 = vector.broadcast %cst_8 : f32 to vector<64x64xf32>
    %26 = vector.broadcast %cst_9 : f32 to vector<64x64xf32>
    %27 = arith.select %24, %25, %26 : vector<64x64xi1>, vector<64x64xf32>
    %c0_i32 = arith.constant 0 : i32
    %28 = vector.broadcast %c0_i32 : i32 to vector<1x64xi32>
    %29 = arith.cmpi ne, %2, %28 : vector<1x64xi32>
    %cst_10 = arith.constant 0.000000e+00 : f32
    %cst_11 = arith.constant -1.000000e+09 : f32
    %30 = vector.broadcast %cst_10 : f32 to vector<1x64xf32>
    %31 = vector.broadcast %cst_11 : f32 to vector<1x64xf32>
    %32 = arith.select %29, %30, %31 : vector<1x64xi1>, vector<1x64xf32>
    %c0_i32_12 = arith.constant 0 : i32
    %33 = vector.broadcast %c0_i32_12 : i32 to vector<1x64xi32>
    %34 = arith.cmpi ne, %2, %33 : vector<1x64xi32>
    %cst_13 = arith.constant 0.000000e+00 : f32
    %cst_14 = arith.constant -1.000000e+04 : f32
    %35 = vector.broadcast %cst_13 : f32 to vector<1x64xf32>
    %36 = vector.broadcast %cst_14 : f32 to vector<1x64xf32>
    %37 = arith.select %34, %35, %36 : vector<1x64xi1>, vector<1x64xf32>
    %38 = vector.broadcast %32 : vector<1x64xf32> to vector<64x64xf32>
    %39 = arith.addf %27, %38 : vector<64x64xf32>
    %40 = vector.broadcast %37 : vector<1x64xf32> to vector<64x64xf32>
    %41 = arith.addf %27, %40 : vector<64x64xf32>
    %c0_15 = arith.constant 0 : index
    %c0_16 = arith.constant 0 : index
    %42 = vector.load %arg6[%c0_15, %c0_16] : memref<40x128xf32, #tpu.memory_space<vmem>>, vector<1x32xf32>
    %c1 = arith.constant 1 : index
    %c0_17 = arith.constant 0 : index
    %43 = vector.load %arg6[%c1, %c0_17] : memref<40x128xf32, #tpu.memory_space<vmem>>, vector<1x32xf32>
    %cst_18 = arith.constant dense<0.000000e+00> : vector<16xf32>
    %44 = vector.multi_reduction <add>, %11, %cst_18 [1] : vector<16x32xf32> to vector<16xf32>
    %45 = vector.shape_cast %44 : vector<16xf32> to vector<16x1xf32>
    %cst_19 = arith.constant 3.200000e+01 : f32
    %46 = vector.broadcast %cst_19 : f32 to vector<16x1xf32>
    %47 = arith.divf %45, %46 : vector<16x1xf32>
    %48 = vector.broadcast %47 : vector<16x1xf32> to vector<16x32xf32>
    %49 = arith.subf %11, %48 : vector<16x32xf32>
    %50 = arith.mulf %49, %49 : vector<16x32xf32>
    %cst_20 = arith.constant dense<0.000000e+00> : vector<16xf32>
    %51 = vector.multi_reduction <add>, %50, %cst_20 [1] : vector<16x32xf32> to vector<16xf32>
    %52 = vector.shape_cast %51 : vector<16xf32> to vector<16x1xf32>
    %cst_21 = arith.constant 3.200000e+01 : f32
    %53 = vector.broadcast %cst_21 : f32 to vector<16x1xf32>
    %54 = arith.divf %52, %53 : vector<16x1xf32>
    %55 = vector.broadcast %47 : vector<16x1xf32> to vector<16x32xf32>
    %56 = arith.subf %11, %55 : vector<16x32xf32>
    %cst_22 = arith.constant 9.99999974E-6 : f32
    %57 = vector.broadcast %cst_22 : f32 to vector<16x1xf32>
    %58 = arith.addf %54, %57 : vector<16x1xf32>
    %59 = math.rsqrt %58 : vector<16x1xf32>
    %60 = vector.broadcast %59 : vector<16x1xf32> to vector<16x32xf32>
    %61 = arith.mulf %56, %60 : vector<16x32xf32>
    %62 = vector.broadcast %42 : vector<1x32xf32> to vector<16x32xf32>
    %63 = arith.mulf %61, %62 : vector<16x32xf32>
    %64 = vector.broadcast %43 : vector<1x32xf32> to vector<16x32xf32>
    %65 = arith.addf %63, %64 : vector<16x32xf32>
    %c0_23 = arith.constant 0 : index
    %c0_24 = arith.constant 0 : index
    %c0_25 = arith.constant 0 : index
    %66 = vector.load %arg2[%c0_23, %c0_24, %c0_25] : memref<4x32x96xf32, #tpu.memory_space<vmem>>, vector<1x32x96xf32>
    %67 = vector.shape_cast %66 : vector<1x32x96xf32> to vector<32x96xf32>
    %cst_26 = arith.constant dense<0.000000e+00> : vector<16x96xf32>
    %68 = tpu.matmul %65, %67, %cst_26 {dimension_numbers = #tpu.dot_dimension_numbers<[1], [0], [0], [1], [0, 0, 1, 1], [], []>} : vector<16x32xf32>, vector<32x96xf32>, vector<16x96xf32> -> vector<16x96xf32>
    %c6 = arith.constant 6 : index
    %c0_27 = arith.constant 0 : index
    %69 = vector.load %arg6[%c6, %c0_27] : memref<40x128xf32, #tpu.memory_space<vmem>>, vector<1x96xf32>
    %70 = vector.broadcast %69 : vector<1x96xf32> to vector<16x96xf32>
    %71 = arith.addf %68, %70 : vector<16x96xf32>
    %72 = vector.extract_strided_slice %71 {offsets = [0, 0], sizes = [16, 24], strides = [1, 1]} : vector<16x96xf32> to vector<16x24xf32>
    %c0_28 = arith.constant 0 : index
    %c0_29 = arith.constant 0 : index
    %73 = vector.load %arg8[%c0_28, %c0_29] : memref<64x24xf32, #tpu.memory_space<vmem>>, vector<16x24xf32>
    tpu.vector_store %arg8[%c0_28, %c0_29], %72 {strides = array<i32>} : memref<64x24xf32, #tpu.memory_space<vmem>>, vector<16x24xf32>,
    %74 = vector.extract_strided_slice %71 {offsets = [0, 24], sizes = [16, 24], strides = [1, 1]} : vector<16x96xf32> to vector<16x24xf32>
    %c16_30 = arith.constant 16 : index
    %c0_31 = arith.constant 0 : index
    %75 = vector.load %arg8[%c16_30, %c0_31] : memref<64x24xf32, #tpu.memory_space<vmem>>, vector<16x24xf32>
    tpu.vector_store %arg8[%c16_30, %c0_31], %74 {strides = array<i32>} : memref<64x24xf32, #tpu.memory_space<vmem>>, vector<16x24xf32>,
    %76 = vector.extract_strided_slice %71 {offsets = [0, 48], sizes = [16, 24], strides = [1, 1]} : vector<16x96xf32> to vector<16x24xf32>
    %c32_32 = arith.constant 32 : index
    %c0_33 = arith.constant 0 : index
    %77 = vector.load %arg8[%c32_32, %c0_33] : memref<64x24xf32, #tpu.memory_space<vmem>>, vector<16x24xf32>
    tpu.vector_store %arg8[%c32_32, %c0_33], %76 {strides = array<i32>} : memref<64x24xf32, #tpu.memory_space<vmem>>, vector<16x24xf32>,
    %78 = vector.extract_strided_slice %71 {offsets = [0, 72], sizes = [16, 24], strides = [1, 1]} : vector<16x96xf32> to vector<16x24xf32>
    %c48 = arith.constant 48 : index
    %c0_34 = arith.constant 0 : index
    %79 = vector.load %arg8[%c48, %c0_34] : memref<64x24xf32, #tpu.memory_space<vmem>>, vector<16x24xf32>
    tpu.vector_store %arg8[%c48, %c0_34], %78 {strides = array<i32>} : memref<64x24xf32, #tpu.memory_space<vmem>>, vector<16x24xf32>,
    %c0_35 = arith.constant 0 : index
    %c0_36 = arith.constant 0 : index
    %80 = vector.load %arg8[%c0_35, %c0_36] : memref<64x24xf32, #tpu.memory_space<vmem>>, vector<64x8xf32>
    %c0_37 = arith.constant 0 : index
    %c8 = arith.constant 8 : index
    %81 = vector.load %arg8[%c0_37, %c8] : memref<64x24xf32, #tpu.memory_space<vmem>>, vector<64x8xf32>
    %c0_38 = arith.constant 0 : index
    %c16_39 = arith.constant 16 : index
    %82 = vector.load %arg8[%c0_38, %c16_39] : memref<64x24xf32, #tpu.memory_space<vmem>>, vector<64x8xf32>
    %cst_40 = arith.constant dense<0.000000e+00> : vector<64x64xf32>
    %83 = tpu.matmul %80, %81, %cst_40 {dimension_numbers = #tpu.dot_dimension_numbers<[1], [1], [0], [0], [0, 0, 1, 0], [], []>} : vector<64x8xf32>, vector<64x8xf32>, vector<64x64xf32> -> vector<64x64xf32>
    %cst_41 = arith.constant 0.353553385 : f32
    %84 = vector.broadcast %cst_41 : f32 to vector<64x64xf32>
    %85 = arith.mulf %83, %84 : vector<64x64xf32>
    %86 = arith.addf %85, %39 : vector<64x64xf32>
    %cst_42 = arith.constant dense<0xFF800000> : vector<64xf32>
    %87 = vector.multi_reduction <maximumf>, %86, %cst_42 [1] : vector<64x64xf32> to vector<64xf32>
    %88 = vector.shape_cast %87 : vector<64xf32> to vector<64x1xf32>
    %89 = vector.broadcast %88 : vector<64x1xf32> to vector<64x64xf32>
    %90 = arith.subf %86, %89 : vector<64x64xf32>
    %91 = math.exp %90 : vector<64x64xf32>
    %cst_43 = arith.constant dense<0.000000e+00> : vector<64xf32>
    %92 = vector.multi_reduction <add>, %91, %cst_43 [1] : vector<64x64xf32> to vector<64xf32>
    %93 = vector.shape_cast %92 : vector<64xf32> to vector<64x1xf32>
    %94 = tpu.reciprocal %93 {approx = true} : vector<64x1xf32> -> vector<64x1xf32>
    %95 = vector.broadcast %94 : vector<64x1xf32> to vector<64x64xf32>
    %96 = arith.mulf %91, %95 : vector<64x64xf32>
    %cst_44 = arith.constant dense<0.000000e+00> : vector<64x8xf32>
    %97 = tpu.matmul %96, %82, %cst_44 {dimension_numbers = #tpu.dot_dimension_numbers<[1], [0], [0], [1], [0, 0, 1, 1], [], []>} : vector<64x64xf32>, vector<64x8xf32>, vector<64x8xf32> -> vector<64x8xf32>
    %98 = vector.extract_strided_slice %97 {offsets = [0, 0], sizes = [16, 8], strides = [1, 1]} : vector<64x8xf32> to vector<16x8xf32>
    %c0_45 = arith.constant 0 : index
    %c0_46 = arith.constant 0 : index
    %99 = vector.load %arg9[%c0_45, %c0_46] : memref<16x32xf32, #tpu.memory_space<vmem>>, vector<16x8xf32>
    tpu.vector_store %arg9[%c0_45, %c0_46], %98 {strides = array<i32>} : memref<16x32xf32, #tpu.memory_space<vmem>>, vector<16x8xf32>,
    %100 = vector.extract_strided_slice %97 {offsets = [16, 0], sizes = [16, 8], strides = [1, 1]} : vector<64x8xf32> to vector<16x8xf32>
    %c0_47 = arith.constant 0 : index
    %c8_48 = arith.constant 8 : index
    %101 = vector.load %arg9[%c0_47, %c8_48] : memref<16x32xf32, #tpu.memory_space<vmem>>, vector<16x8xf32>
    tpu.vector_store %arg9[%c0_47, %c8_48], %100 {strides = array<i32>} : memref<16x32xf32, #tpu.memory_space<vmem>>, vector<16x8xf32>,
    %102 = vector.extract_strided_slice %97 {offsets = [32, 0], sizes = [16, 8], strides = [1, 1]} : vector<64x8xf32> to vector<16x8xf32>
    %c0_49 = arith.constant 0 : index
    %c16_50 = arith.constant 16 : index
    %103 = vector.load %arg9[%c0_49, %c16_50] : memref<16x32xf32, #tpu.memory_space<vmem>>, vector<16x8xf32>
    tpu.vector_store %arg9[%c0_49, %c16_50], %102 {strides = array<i32>} : memref<16x32xf32, #tpu.memory_space<vmem>>, vector<16x8xf32>,
    %104 = vector.extract_strided_slice %97 {offsets = [48, 0], sizes = [16, 8], strides = [1, 1]} : vector<64x8xf32> to vector<16x8xf32>
    %c0_51 = arith.constant 0 : index
    %c24 = arith.constant 24 : index
    %105 = vector.load %arg9[%c0_51, %c24] : memref<16x32xf32, #tpu.memory_space<vmem>>, vector<16x8xf32>
    tpu.vector_store %arg9[%c0_51, %c24], %104 {strides = array<i32>} : memref<16x32xf32, #tpu.memory_space<vmem>>, vector<16x8xf32>,
    %c0_52 = arith.constant 0 : index
    %c0_53 = arith.constant 0 : index
    %106 = vector.load %arg9[%c0_52, %c0_53] : memref<16x32xf32, #tpu.memory_space<vmem>>, vector<16x32xf32>
    %c0_54 = arith.constant 0 : index
    %c0_55 = arith.constant 0 : index
    %c0_56 = arith.constant 0 : index
    %107 = vector.load %arg3[%c0_54, %c0_55, %c0_56] : memref<4x32x32xf32, #tpu.memory_space<vmem>>, vector<1x32x32xf32>
    %108 = vector.shape_cast %107 : vector<1x32x32xf32> to vector<32x32xf32>
    %cst_57 = arith.constant dense<0.000000e+00> : vector<16x32xf32>
    %109 = tpu.matmul %106, %108, %cst_57 {dimension_numbers = #tpu.dot_dimension_numbers<[1], [0], [0], [1], [0, 0, 1, 1], [], []>} : vector<16x32xf32>, vector<32x32xf32>, vector<16x32xf32> -> vector<16x32xf32>
    %c4 = arith.constant 4 : index
    %c0_58 = arith.constant 0 : index
    %110 = vector.load %arg6[%c4, %c0_58] : memref<40x128xf32, #tpu.memory_space<vmem>>, vector<1x32xf32>
    %111 = vector.broadcast %110 : vector<1x32xf32> to vector<16x32xf32>
    %112 = arith.addf %109, %111 : vector<16x32xf32>
    %113 = arith.addf %11, %112 : vector<16x32xf32>
    %c2 = arith.constant 2 : index
    %c0_59 = arith.constant 0 : index
    %114 = vector.load %arg6[%c2, %c0_59] : memref<40x128xf32, #tpu.memory_space<vmem>>, vector<1x32xf32>
    %c3 = arith.constant 3 : index
    %c0_60 = arith.constant 0 : index
    %115 = vector.load %arg6[%c3, %c0_60] : memref<40x128xf32, #tpu.memory_space<vmem>>, vector<1x32xf32>
    %cst_61 = arith.constant dense<0.000000e+00> : vector<16xf32>
    %116 = vector.multi_reduction <add>, %113, %cst_61 [1] : vector<16x32xf32> to vector<16xf32>
    %117 = vector.shape_cast %116 : vector<16xf32> to vector<16x1xf32>
    %cst_62 = arith.constant 3.200000e+01 : f32
    %118 = vector.broadcast %cst_62 : f32 to vector<16x1xf32>
    %119 = arith.divf %117, %118 : vector<16x1xf32>
    %120 = vector.broadcast %119 : vector<16x1xf32> to vector<16x32xf32>
    %121 = arith.subf %113, %120 : vector<16x32xf32>
    %122 = arith.mulf %121, %121 : vector<16x32xf32>
    %cst_63 = arith.constant dense<0.000000e+00> : vector<16xf32>
    %123 = vector.multi_reduction <add>, %122, %cst_63 [1] : vector<16x32xf32> to vector<16xf32>
    %124 = vector.shape_cast %123 : vector<16xf32> to vector<16x1xf32>
    %cst_64 = arith.constant 3.200000e+01 : f32
    %125 = vector.broadcast %cst_64 : f32 to vector<16x1xf32>
    %126 = arith.divf %124, %125 : vector<16x1xf32>
    %127 = vector.broadcast %119 : vector<16x1xf32> to vector<16x32xf32>
    %128 = arith.subf %113, %127 : vector<16x32xf32>
    %cst_65 = arith.constant 9.99999974E-6 : f32
    %129 = vector.broadcast %cst_65 : f32 to vector<16x1xf32>
    %130 = arith.addf %126, %129 : vector<16x1xf32>
    %131 = math.rsqrt %130 : vector<16x1xf32>
    %132 = vector.broadcast %131 : vector<16x1xf32> to vector<16x32xf32>
    %133 = arith.mulf %128, %132 : vector<16x32xf32>
    %134 = vector.broadcast %114 : vector<1x32xf32> to vector<16x32xf32>
    %135 = arith.mulf %133, %134 : vector<16x32xf32>
    %136 = vector.broadcast %115 : vector<1x32xf32> to vector<16x32xf32>
    %137 = arith.addf %135, %136 : vector<16x32xf32>
    %c0_66 = arith.constant 0 : index
    %c0_67 = arith.constant 0 : index
    %c0_68 = arith.constant 0 : index
    %138 = vector.load %arg4[%c0_66, %c0_67, %c0_68] : memref<4x32x128xf32, #tpu.memory_space<vmem>>, vector<1x32x128xf32>
    %139 = vector.shape_cast %138 : vector<1x32x128xf32> to vector<32x128xf32>
    %cst_69 = arith.constant dense<0.000000e+00> : vector<16x128xf32>
    %140 = tpu.matmul %137, %139, %cst_69 {dimension_numbers = #tpu.dot_dimension_numbers<[1], [0], [0], [1], [0, 0, 1, 1], [], []>} : vector<16x32xf32>, vector<32x128xf32>, vector<16x128xf32> -> vector<16x128xf32>
    %c7 = arith.constant 7 : index
    %c0_70 = arith.constant 0 : index
    %141 = vector.load %arg6[%c7, %c0_70] : memref<40x128xf32, #tpu.memory_space<vmem>>, vector<1x128xf32>
    %142 = vector.broadcast %141 : vector<1x128xf32> to vector<16x128xf32>
    %143 = arith.addf %140, %142 : vector<16x128xf32>
    %cst_71 = arith.constant 5.000000e-01 : f32
    %144 = vector.broadcast %cst_71 : f32 to vector<16x128xf32>
    %145 = arith.mulf %144, %143 : vector<16x128xf32>
    %cst_72 = arith.constant 4.471500e-02 : f32
    %146 = vector.broadcast %cst_72 : f32 to vector<16x128xf32>
    %147 = arith.mulf %146, %143 : vector<16x128xf32>
    %148 = arith.mulf %147, %143 : vector<16x128xf32>
    %149 = arith.mulf %148, %143 : vector<16x128xf32>
    %150 = arith.addf %143, %149 : vector<16x128xf32>
    %cst_73 = arith.constant 0.797884583 : f32
    %151 = vector.broadcast %cst_73 : f32 to vector<16x128xf32>
    %152 = arith.mulf %151, %150 : vector<16x128xf32>
    %153 = math.tanh %152 : vector<16x128xf32>
    %cst_74 = arith.constant 1.000000e+00 : f32
    %154 = vector.broadcast %cst_74 : f32 to vector<16x128xf32>
    %155 = arith.addf %154, %153 : vector<16x128xf32>
    %156 = arith.mulf %145, %155 : vector<16x128xf32>
    %c0_75 = arith.constant 0 : index
    %c0_76 = arith.constant 0 : index
    %c0_77 = arith.constant 0 : index
    %157 = vector.load %arg5[%c0_75, %c0_76, %c0_77] : memref<4x128x32xf32, #tpu.memory_space<vmem>>, vector<1x128x32xf32>
    %158 = vector.shape_cast %157 : vector<1x128x32xf32> to vector<128x32xf32>
    %cst_78 = arith.constant dense<0.000000e+00> : vector<16x32xf32>
    %159 = tpu.matmul %156, %158, %cst_78 {dimension_numbers = #tpu.dot_dimension_numbers<[1], [0], [0], [1], [0, 0, 1, 1], [], []>} : vector<16x128xf32>, vector<128x32xf32>, vector<16x32xf32> -> vector<16x32xf32>
    %c5 = arith.constant 5 : index
    %c0_79 = arith.constant 0 : index
    %160 = vector.load %arg6[%c5, %c0_79] : memref<40x128xf32, #tpu.memory_space<vmem>>, vector<1x32xf32>
    %161 = vector.broadcast %160 : vector<1x32xf32> to vector<16x32xf32>
    %162 = arith.addf %159, %161 : vector<16x32xf32>
    %163 = arith.addf %113, %162 : vector<16x32xf32>
    %c8_80 = arith.constant 8 : index
    %c0_81 = arith.constant 0 : index
    %164 = vector.load %arg6[%c8_80, %c0_81] : memref<40x128xf32, #tpu.memory_space<vmem>>, vector<1x32xf32>
    %c9 = arith.constant 9 : index
    %c0_82 = arith.constant 0 : index
    %165 = vector.load %arg6[%c9, %c0_82] : memref<40x128xf32, #tpu.memory_space<vmem>>, vector<1x32xf32>
    %cst_83 = arith.constant dense<0.000000e+00> : vector<16xf32>
    %166 = vector.multi_reduction <add>, %163, %cst_83 [1] : vector<16x32xf32> to vector<16xf32>
    %167 = vector.shape_cast %166 : vector<16xf32> to vector<16x1xf32>
    %cst_84 = arith.constant 3.200000e+01 : f32
    %168 = vector.broadcast %cst_84 : f32 to vector<16x1xf32>
    %169 = arith.divf %167, %168 : vector<16x1xf32>
    %170 = vector.broadcast %169 : vector<16x1xf32> to vector<16x32xf32>
    %171 = arith.subf %163, %170 : vector<16x32xf32>
    %172 = arith.mulf %171, %171 : vector<16x32xf32>
    %cst_85 = arith.constant dense<0.000000e+00> : vector<16xf32>
    %173 = vector.multi_reduction <add>, %172, %cst_85 [1] : vector<16x32xf32> to vector<16xf32>
    %174 = vector.shape_cast %173 : vector<16xf32> to vector<16x1xf32>
    %cst_86 = arith.constant 3.200000e+01 : f32
    %175 = vector.broadcast %cst_86 : f32 to vector<16x1xf32>
    %176 = arith.divf %174, %175 : vector<16x1xf32>
    %177 = vector.broadcast %169 : vector<16x1xf32> to vector<16x32xf32>
    %178 = arith.subf %163, %177 : vector<16x32xf32>
    %cst_87 = arith.constant 9.99999974E-6 : f32
    %179 = vector.broadcast %cst_87 : f32 to vector<16x1xf32>
    %180 = arith.addf %176, %179 : vector<16x1xf32>
    %181 = math.rsqrt %180 : vector<16x1xf32>
    %182 = vector.broadcast %181 : vector<16x1xf32> to vector<16x32xf32>
    %183 = arith.mulf %178, %182 : vector<16x32xf32>
    %184 = vector.broadcast %164 : vector<1x32xf32> to vector<16x32xf32>
    %185 = arith.mulf %183, %184 : vector<16x32xf32>
    %186 = vector.broadcast %165 : vector<1x32xf32> to vector<16x32xf32>
    %187 = arith.addf %185, %186 : vector<16x32xf32>
    %c1_88 = arith.constant 1 : index
    %c0_89 = arith.constant 0 : index
    %c0_90 = arith.constant 0 : index
    %188 = vector.load %arg2[%c1_88, %c0_89, %c0_90] : memref<4x32x96xf32, #tpu.memory_space<vmem>>, vector<1x32x96xf32>
    %189 = vector.shape_cast %188 : vector<1x32x96xf32> to vector<32x96xf32>
    %cst_91 = arith.constant dense<0.000000e+00> : vector<16x96xf32>
    %190 = tpu.matmul %187, %189, %cst_91 {dimension_numbers = #tpu.dot_dimension_numbers<[1], [0], [0], [1], [0, 0, 1, 1], [], []>} : vector<16x32xf32>, vector<32x96xf32>, vector<16x96xf32> -> vector<16x96xf32>
    %c14 = arith.constant 14 : index
    %c0_92 = arith.constant 0 : index
    %191 = vector.load %arg6[%c14, %c0_92] : memref<40x128xf32, #tpu.memory_space<vmem>>, vector<1x96xf32>
    %192 = vector.broadcast %191 : vector<1x96xf32> to vector<16x96xf32>
    %193 = arith.addf %190, %192 : vector<16x96xf32>
    %194 = vector.extract_strided_slice %193 {offsets = [0, 0], sizes = [16, 24], strides = [1, 1]} : vector<16x96xf32> to vector<16x24xf32>
    %c0_93 = arith.constant 0 : index
    %c0_94 = arith.constant 0 : index
    %195 = vector.load %arg8[%c0_93, %c0_94] : memref<64x24xf32, #tpu.memory_space<vmem>>, vector<16x24xf32>
    tpu.vector_store %arg8[%c0_93, %c0_94], %194 {strides = array<i32>} : memref<64x24xf32, #tpu.memory_space<vmem>>, vector<16x24xf32>,
    %196 = vector.extract_strided_slice %193 {offsets = [0, 24], sizes = [16, 24], strides = [1, 1]} : vector<16x96xf32> to vector<16x24xf32>
    %c16_95 = arith.constant 16 : index
    %c0_96 = arith.constant 0 : index
    %197 = vector.load %arg8[%c16_95, %c0_96] : memref<64x24xf32, #tpu.memory_space<vmem>>, vector<16x24xf32>
    tpu.vector_store %arg8[%c16_95, %c0_96], %196 {strides = array<i32>} : memref<64x24xf32, #tpu.memory_space<vmem>>, vector<16x24xf32>,
    %198 = vector.extract_strided_slice %193 {offsets = [0, 48], sizes = [16, 24], strides = [1, 1]} : vector<16x96xf32> to vector<16x24xf32>
    %c32_97 = arith.constant 32 : index
    %c0_98 = arith.constant 0 : index
    %199 = vector.load %arg8[%c32_97, %c0_98] : memref<64x24xf32, #tpu.memory_space<vmem>>, vector<16x24xf32>
    tpu.vector_store %arg8[%c32_97, %c0_98], %198 {strides = array<i32>} : memref<64x24xf32, #tpu.memory_space<vmem>>, vector<16x24xf32>,
    %200 = vector.extract_strided_slice %193 {offsets = [0, 72], sizes = [16, 24], strides = [1, 1]} : vector<16x96xf32> to vector<16x24xf32>
    %c48_99 = arith.constant 48 : index
    %c0_100 = arith.constant 0 : index
    %201 = vector.load %arg8[%c48_99, %c0_100] : memref<64x24xf32, #tpu.memory_space<vmem>>, vector<16x24xf32>
    tpu.vector_store %arg8[%c48_99, %c0_100], %200 {strides = array<i32>} : memref<64x24xf32, #tpu.memory_space<vmem>>, vector<16x24xf32>,
    %c0_101 = arith.constant 0 : index
    %c0_102 = arith.constant 0 : index
    %202 = vector.load %arg8[%c0_101, %c0_102] : memref<64x24xf32, #tpu.memory_space<vmem>>, vector<64x8xf32>
    %c0_103 = arith.constant 0 : index
    %c8_104 = arith.constant 8 : index
    %203 = vector.load %arg8[%c0_103, %c8_104] : memref<64x24xf32, #tpu.memory_space<vmem>>, vector<64x8xf32>
    %c0_105 = arith.constant 0 : index
    %c16_106 = arith.constant 16 : index
    %204 = vector.load %arg8[%c0_105, %c16_106] : memref<64x24xf32, #tpu.memory_space<vmem>>, vector<64x8xf32>
    %cst_107 = arith.constant dense<0.000000e+00> : vector<64x64xf32>
    %205 = tpu.matmul %202, %203, %cst_107 {dimension_numbers = #tpu.dot_dimension_numbers<[1], [1], [0], [0], [0, 0, 1, 0], [], []>} : vector<64x8xf32>, vector<64x8xf32>, vector<64x64xf32> -> vector<64x64xf32>
    %cst_108 = arith.constant 0.353553385 : f32
    %206 = vector.broadcast %cst_108 : f32 to vector<64x64xf32>
    %207 = arith.mulf %205, %206 : vector<64x64xf32>
    %208 = arith.addf %207, %39 : vector<64x64xf32>
    %cst_109 = arith.constant dense<0xFF800000> : vector<64xf32>
    %209 = vector.multi_reduction <maximumf>, %208, %cst_109 [1] : vector<64x64xf32> to vector<64xf32>
    %210 = vector.shape_cast %209 : vector<64xf32> to vector<64x1xf32>
    %211 = vector.broadcast %210 : vector<64x1xf32> to vector<64x64xf32>
    %212 = arith.subf %208, %211 : vector<64x64xf32>
    %213 = math.exp %212 : vector<64x64xf32>
    %cst_110 = arith.constant dense<0.000000e+00> : vector<64xf32>
    %214 = vector.multi_reduction <add>, %213, %cst_110 [1] : vector<64x64xf32> to vector<64xf32>
    %215 = vector.shape_cast %214 : vector<64xf32> to vector<64x1xf32>
    %216 = tpu.reciprocal %215 {approx = true} : vector<64x1xf32> -> vector<64x1xf32>
    %217 = vector.broadcast %216 : vector<64x1xf32> to vector<64x64xf32>
    %218 = arith.mulf %213, %217 : vector<64x64xf32>
    %cst_111 = arith.constant dense<0.000000e+00> : vector<64x8xf32>
    %219 = tpu.matmul %218, %204, %cst_111 {dimension_numbers = #tpu.dot_dimension_numbers<[1], [0], [0], [1], [0, 0, 1, 1], [], []>} : vector<64x64xf32>, vector<64x8xf32>, vector<64x8xf32> -> vector<64x8xf32>
    %220 = vector.extract_strided_slice %219 {offsets = [0, 0], sizes = [16, 8], strides = [1, 1]} : vector<64x8xf32> to vector<16x8xf32>
    %c0_112 = arith.constant 0 : index
    %c0_113 = arith.constant 0 : index
    %221 = vector.load %arg9[%c0_112, %c0_113] : memref<16x32xf32, #tpu.memory_space<vmem>>, vector<16x8xf32>
    tpu.vector_store %arg9[%c0_112, %c0_113], %220 {strides = array<i32>} : memref<16x32xf32, #tpu.memory_space<vmem>>, vector<16x8xf32>,
    %222 = vector.extract_strided_slice %219 {offsets = [16, 0], sizes = [16, 8], strides = [1, 1]} : vector<64x8xf32> to vector<16x8xf32>
    %c0_114 = arith.constant 0 : index
    %c8_115 = arith.constant 8 : index
    %223 = vector.load %arg9[%c0_114, %c8_115] : memref<16x32xf32, #tpu.memory_space<vmem>>, vector<16x8xf32>
    tpu.vector_store %arg9[%c0_114, %c8_115], %222 {strides = array<i32>} : memref<16x32xf32, #tpu.memory_space<vmem>>, vector<16x8xf32>,
    %224 = vector.extract_strided_slice %219 {offsets = [32, 0], sizes = [16, 8], strides = [1, 1]} : vector<64x8xf32> to vector<16x8xf32>
    %c0_116 = arith.constant 0 : index
    %c16_117 = arith.constant 16 : index
    %225 = vector.load %arg9[%c0_116, %c16_117] : memref<16x32xf32, #tpu.memory_space<vmem>>, vector<16x8xf32>
    tpu.vector_store %arg9[%c0_116, %c16_117], %224 {strides = array<i32>} : memref<16x32xf32, #tpu.memory_space<vmem>>, vector<16x8xf32>,
    %226 = vector.extract_strided_slice %219 {offsets = [48, 0], sizes = [16, 8], strides = [1, 1]} : vector<64x8xf32> to vector<16x8xf32>
    %c0_118 = arith.constant 0 : index
    %c24_119 = arith.constant 24 : index
    %227 = vector.load %arg9[%c0_118, %c24_119] : memref<16x32xf32, #tpu.memory_space<vmem>>, vector<16x8xf32>
    tpu.vector_store %arg9[%c0_118, %c24_119], %226 {strides = array<i32>} : memref<16x32xf32, #tpu.memory_space<vmem>>, vector<16x8xf32>,
    %c0_120 = arith.constant 0 : index
    %c0_121 = arith.constant 0 : index
    %228 = vector.load %arg9[%c0_120, %c0_121] : memref<16x32xf32, #tpu.memory_space<vmem>>, vector<16x32xf32>
    %c1_122 = arith.constant 1 : index
    %c0_123 = arith.constant 0 : index
    %c0_124 = arith.constant 0 : index
    %229 = vector.load %arg3[%c1_122, %c0_123, %c0_124] : memref<4x32x32xf32, #tpu.memory_space<vmem>>, vector<1x32x32xf32>
    %230 = vector.shape_cast %229 : vector<1x32x32xf32> to vector<32x32xf32>
    %cst_125 = arith.constant dense<0.000000e+00> : vector<16x32xf32>
    %231 = tpu.matmul %228, %230, %cst_125 {dimension_numbers = #tpu.dot_dimension_numbers<[1], [0], [0], [1], [0, 0, 1, 1], [], []>} : vector<16x32xf32>, vector<32x32xf32>, vector<16x32xf32> -> vector<16x32xf32>
    %c12 = arith.constant 12 : index
    %c0_126 = arith.constant 0 : index
    %232 = vector.load %arg6[%c12, %c0_126] : memref<40x128xf32, #tpu.memory_space<vmem>>, vector<1x32xf32>
    %233 = vector.broadcast %232 : vector<1x32xf32> to vector<16x32xf32>
    %234 = arith.addf %231, %233 : vector<16x32xf32>
    %235 = arith.addf %163, %234 : vector<16x32xf32>
    %c10 = arith.constant 10 : index
    %c0_127 = arith.constant 0 : index
    %236 = vector.load %arg6[%c10, %c0_127] : memref<40x128xf32, #tpu.memory_space<vmem>>, vector<1x32xf32>
    %c11 = arith.constant 11 : index
    %c0_128 = arith.constant 0 : index
    %237 = vector.load %arg6[%c11, %c0_128] : memref<40x128xf32, #tpu.memory_space<vmem>>, vector<1x32xf32>
    %cst_129 = arith.constant dense<0.000000e+00> : vector<16xf32>
    %238 = vector.multi_reduction <add>, %235, %cst_129 [1] : vector<16x32xf32> to vector<16xf32>
    %239 = vector.shape_cast %238 : vector<16xf32> to vector<16x1xf32>
    %cst_130 = arith.constant 3.200000e+01 : f32
    %240 = vector.broadcast %cst_130 : f32 to vector<16x1xf32>
    %241 = arith.divf %239, %240 : vector<16x1xf32>
    %242 = vector.broadcast %241 : vector<16x1xf32> to vector<16x32xf32>
    %243 = arith.subf %235, %242 : vector<16x32xf32>
    %244 = arith.mulf %243, %243 : vector<16x32xf32>
    %cst_131 = arith.constant dense<0.000000e+00> : vector<16xf32>
    %245 = vector.multi_reduction <add>, %244, %cst_131 [1] : vector<16x32xf32> to vector<16xf32>
    %246 = vector.shape_cast %245 : vector<16xf32> to vector<16x1xf32>
    %cst_132 = arith.constant 3.200000e+01 : f32
    %247 = vector.broadcast %cst_132 : f32 to vector<16x1xf32>
    %248 = arith.divf %246, %247 : vector<16x1xf32>
    %249 = vector.broadcast %241 : vector<16x1xf32> to vector<16x32xf32>
    %250 = arith.subf %235, %249 : vector<16x32xf32>
    %cst_133 = arith.constant 9.99999974E-6 : f32
    %251 = vector.broadcast %cst_133 : f32 to vector<16x1xf32>
    %252 = arith.addf %248, %251 : vector<16x1xf32>
    %253 = math.rsqrt %252 : vector<16x1xf32>
    %254 = vector.broadcast %253 : vector<16x1xf32> to vector<16x32xf32>
    %255 = arith.mulf %250, %254 : vector<16x32xf32>
    %256 = vector.broadcast %236 : vector<1x32xf32> to vector<16x32xf32>
    %257 = arith.mulf %255, %256 : vector<16x32xf32>
    %258 = vector.broadcast %237 : vector<1x32xf32> to vector<16x32xf32>
    %259 = arith.addf %257, %258 : vector<16x32xf32>
    %c1_134 = arith.constant 1 : index
    %c0_135 = arith.constant 0 : index
    %c0_136 = arith.constant 0 : index
    %260 = vector.load %arg4[%c1_134, %c0_135, %c0_136] : memref<4x32x128xf32, #tpu.memory_space<vmem>>, vector<1x32x128xf32>
    %261 = vector.shape_cast %260 : vector<1x32x128xf32> to vector<32x128xf32>
    %cst_137 = arith.constant dense<0.000000e+00> : vector<16x128xf32>
    %262 = tpu.matmul %259, %261, %cst_137 {dimension_numbers = #tpu.dot_dimension_numbers<[1], [0], [0], [1], [0, 0, 1, 1], [], []>} : vector<16x32xf32>, vector<32x128xf32>, vector<16x128xf32> -> vector<16x128xf32>
    %c15 = arith.constant 15 : index
    %c0_138 = arith.constant 0 : index
    %263 = vector.load %arg6[%c15, %c0_138] : memref<40x128xf32, #tpu.memory_space<vmem>>, vector<1x128xf32>
    %264 = vector.broadcast %263 : vector<1x128xf32> to vector<16x128xf32>
    %265 = arith.addf %262, %264 : vector<16x128xf32>
    %cst_139 = arith.constant 5.000000e-01 : f32
    %266 = vector.broadcast %cst_139 : f32 to vector<16x128xf32>
    %267 = arith.mulf %266, %265 : vector<16x128xf32>
    %cst_140 = arith.constant 4.471500e-02 : f32
    %268 = vector.broadcast %cst_140 : f32 to vector<16x128xf32>
    %269 = arith.mulf %268, %265 : vector<16x128xf32>
    %270 = arith.mulf %269, %265 : vector<16x128xf32>
    %271 = arith.mulf %270, %265 : vector<16x128xf32>
    %272 = arith.addf %265, %271 : vector<16x128xf32>
    %cst_141 = arith.constant 0.797884583 : f32
    %273 = vector.broadcast %cst_141 : f32 to vector<16x128xf32>
    %274 = arith.mulf %273, %272 : vector<16x128xf32>
    %275 = math.tanh %274 : vector<16x128xf32>
    %cst_142 = arith.constant 1.000000e+00 : f32
    %276 = vector.broadcast %cst_142 : f32 to vector<16x128xf32>
    %277 = arith.addf %276, %275 : vector<16x128xf32>
    %278 = arith.mulf %267, %277 : vector<16x128xf32>
    %c1_143 = arith.constant 1 : index
    %c0_144 = arith.constant 0 : index
    %c0_145 = arith.constant 0 : index
    %279 = vector.load %arg5[%c1_143, %c0_144, %c0_145] : memref<4x128x32xf32, #tpu.memory_space<vmem>>, vector<1x128x32xf32>
    %280 = vector.shape_cast %279 : vector<1x128x32xf32> to vector<128x32xf32>
    %cst_146 = arith.constant dense<0.000000e+00> : vector<16x32xf32>
    %281 = tpu.matmul %278, %280, %cst_146 {dimension_numbers = #tpu.dot_dimension_numbers<[1], [0], [0], [1], [0, 0, 1, 1], [], []>} : vector<16x128xf32>, vector<128x32xf32>, vector<16x32xf32> -> vector<16x32xf32>
    %c13 = arith.constant 13 : index
    %c0_147 = arith.constant 0 : index
    %282 = vector.load %arg6[%c13, %c0_147] : memref<40x128xf32, #tpu.memory_space<vmem>>, vector<1x32xf32>
    %283 = vector.broadcast %282 : vector<1x32xf32> to vector<16x32xf32>
    %284 = arith.addf %281, %283 : vector<16x32xf32>
    %285 = arith.addf %235, %284 : vector<16x32xf32>
    %c32_148 = arith.constant 32 : index
    %c0_149 = arith.constant 0 : index
    %286 = vector.load %arg6[%c32_148, %c0_149] : memref<40x128xf32, #tpu.memory_space<vmem>>, vector<1x32xf32>
    %c33 = arith.constant 33 : index
    %c0_150 = arith.constant 0 : index
    %287 = vector.load %arg6[%c33, %c0_150] : memref<40x128xf32, #tpu.memory_space<vmem>>, vector<1x32xf32>
    %cst_151 = arith.constant dense<0.000000e+00> : vector<16xf32>
    %288 = vector.multi_reduction <add>, %285, %cst_151 [1] : vector<16x32xf32> to vector<16xf32>
    %289 = vector.shape_cast %288 : vector<16xf32> to vector<16x1xf32>
    %cst_152 = arith.constant 3.200000e+01 : f32
    %290 = vector.broadcast %cst_152 : f32 to vector<16x1xf32>
    %291 = arith.divf %289, %290 : vector<16x1xf32>
    %292 = vector.broadcast %291 : vector<16x1xf32> to vector<16x32xf32>
    %293 = arith.subf %285, %292 : vector<16x32xf32>
    %294 = arith.mulf %293, %293 : vector<16x32xf32>
    %cst_153 = arith.constant dense<0.000000e+00> : vector<16xf32>
    %295 = vector.multi_reduction <add>, %294, %cst_153 [1] : vector<16x32xf32> to vector<16xf32>
    %296 = vector.shape_cast %295 : vector<16xf32> to vector<16x1xf32>
    %cst_154 = arith.constant 3.200000e+01 : f32
    %297 = vector.broadcast %cst_154 : f32 to vector<16x1xf32>
    %298 = arith.divf %296, %297 : vector<16x1xf32>
    %299 = vector.broadcast %291 : vector<16x1xf32> to vector<16x32xf32>
    %300 = arith.subf %285, %299 : vector<16x32xf32>
    %cst_155 = arith.constant 9.99999974E-6 : f32
    %301 = vector.broadcast %cst_155 : f32 to vector<16x1xf32>
    %302 = arith.addf %298, %301 : vector<16x1xf32>
    %303 = math.rsqrt %302 : vector<16x1xf32>
    %304 = vector.broadcast %303 : vector<16x1xf32> to vector<16x32xf32>
    %305 = arith.mulf %300, %304 : vector<16x32xf32>
    %306 = vector.broadcast %286 : vector<1x32xf32> to vector<16x32xf32>
    %307 = arith.mulf %305, %306 : vector<16x32xf32>
    %308 = vector.broadcast %287 : vector<1x32xf32> to vector<16x32xf32>
    %309 = arith.addf %307, %308 : vector<16x32xf32>
    %c16_156 = arith.constant 16 : index
    %c0_157 = arith.constant 0 : index
    %310 = vector.load %arg6[%c16_156, %c0_157] : memref<40x128xf32, #tpu.memory_space<vmem>>, vector<1x32xf32>
    %c17 = arith.constant 17 : index
    %c0_158 = arith.constant 0 : index
    %311 = vector.load %arg6[%c17, %c0_158] : memref<40x128xf32, #tpu.memory_space<vmem>>, vector<1x32xf32>
    %cst_159 = arith.constant dense<0.000000e+00> : vector<16xf32>
    %312 = vector.multi_reduction <add>, %309, %cst_159 [1] : vector<16x32xf32> to vector<16xf32>
    %313 = vector.shape_cast %312 : vector<16xf32> to vector<16x1xf32>
    %cst_160 = arith.constant 3.200000e+01 : f32
    %314 = vector.broadcast %cst_160 : f32 to vector<16x1xf32>
    %315 = arith.divf %313, %314 : vector<16x1xf32>
    %316 = vector.broadcast %315 : vector<16x1xf32> to vector<16x32xf32>
    %317 = arith.subf %309, %316 : vector<16x32xf32>
    %318 = arith.mulf %317, %317 : vector<16x32xf32>
    %cst_161 = arith.constant dense<0.000000e+00> : vector<16xf32>
    %319 = vector.multi_reduction <add>, %318, %cst_161 [1] : vector<16x32xf32> to vector<16xf32>
    %320 = vector.shape_cast %319 : vector<16xf32> to vector<16x1xf32>
    %cst_162 = arith.constant 3.200000e+01 : f32
    %321 = vector.broadcast %cst_162 : f32 to vector<16x1xf32>
    %322 = arith.divf %320, %321 : vector<16x1xf32>
    %323 = vector.broadcast %315 : vector<16x1xf32> to vector<16x32xf32>
    %324 = arith.subf %309, %323 : vector<16x32xf32>
    %cst_163 = arith.constant 9.99999974E-6 : f32
    %325 = vector.broadcast %cst_163 : f32 to vector<16x1xf32>
    %326 = arith.addf %322, %325 : vector<16x1xf32>
    %327 = math.rsqrt %326 : vector<16x1xf32>
    %328 = vector.broadcast %327 : vector<16x1xf32> to vector<16x32xf32>
    %329 = arith.mulf %324, %328 : vector<16x32xf32>
    %330 = vector.broadcast %310 : vector<1x32xf32> to vector<16x32xf32>
    %331 = arith.mulf %329, %330 : vector<16x32xf32>
    %332 = vector.broadcast %311 : vector<1x32xf32> to vector<16x32xf32>
    %333 = arith.addf %331, %332 : vector<16x32xf32>
    %c2_164 = arith.constant 2 : index
    %c0_165 = arith.constant 0 : index
    %c0_166 = arith.constant 0 : index
    %334 = vector.load %arg2[%c2_164, %c0_165, %c0_166] : memref<4x32x96xf32, #tpu.memory_space<vmem>>, vector<1x32x96xf32>
    %335 = vector.shape_cast %334 : vector<1x32x96xf32> to vector<32x96xf32>
    %cst_167 = arith.constant dense<0.000000e+00> : vector<16x96xf32>
    %336 = tpu.matmul %333, %335, %cst_167 {dimension_numbers = #tpu.dot_dimension_numbers<[1], [0], [0], [1], [0, 0, 1, 1], [], []>} : vector<16x32xf32>, vector<32x96xf32>, vector<16x96xf32> -> vector<16x96xf32>
    %c22 = arith.constant 22 : index
    %c0_168 = arith.constant 0 : index
    %337 = vector.load %arg6[%c22, %c0_168] : memref<40x128xf32, #tpu.memory_space<vmem>>, vector<1x96xf32>
    %338 = vector.broadcast %337 : vector<1x96xf32> to vector<16x96xf32>
    %339 = arith.addf %336, %338 : vector<16x96xf32>
    %340 = vector.extract_strided_slice %339 {offsets = [0, 0], sizes = [16, 24], strides = [1, 1]} : vector<16x96xf32> to vector<16x24xf32>
    %c0_169 = arith.constant 0 : index
    %c0_170 = arith.constant 0 : index
    %341 = vector.load %arg8[%c0_169, %c0_170] : memref<64x24xf32, #tpu.memory_space<vmem>>, vector<16x24xf32>
    tpu.vector_store %arg8[%c0_169, %c0_170], %340 {strides = array<i32>} : memref<64x24xf32, #tpu.memory_space<vmem>>, vector<16x24xf32>,
    %342 = vector.extract_strided_slice %339 {offsets = [0, 24], sizes = [16, 24], strides = [1, 1]} : vector<16x96xf32> to vector<16x24xf32>
    %c16_171 = arith.constant 16 : index
    %c0_172 = arith.constant 0 : index
    %343 = vector.load %arg8[%c16_171, %c0_172] : memref<64x24xf32, #tpu.memory_space<vmem>>, vector<16x24xf32>
    tpu.vector_store %arg8[%c16_171, %c0_172], %342 {strides = array<i32>} : memref<64x24xf32, #tpu.memory_space<vmem>>, vector<16x24xf32>,
    %344 = vector.extract_strided_slice %339 {offsets = [0, 48], sizes = [16, 24], strides = [1, 1]} : vector<16x96xf32> to vector<16x24xf32>
    %c32_173 = arith.constant 32 : index
    %c0_174 = arith.constant 0 : index
    %345 = vector.load %arg8[%c32_173, %c0_174] : memref<64x24xf32, #tpu.memory_space<vmem>>, vector<16x24xf32>
    tpu.vector_store %arg8[%c32_173, %c0_174], %344 {strides = array<i32>} : memref<64x24xf32, #tpu.memory_space<vmem>>, vector<16x24xf32>,
    %346 = vector.extract_strided_slice %339 {offsets = [0, 72], sizes = [16, 24], strides = [1, 1]} : vector<16x96xf32> to vector<16x24xf32>
    %c48_175 = arith.constant 48 : index
    %c0_176 = arith.constant 0 : index
    %347 = vector.load %arg8[%c48_175, %c0_176] : memref<64x24xf32, #tpu.memory_space<vmem>>, vector<16x24xf32>
    tpu.vector_store %arg8[%c48_175, %c0_176], %346 {strides = array<i32>} : memref<64x24xf32, #tpu.memory_space<vmem>>, vector<16x24xf32>,
    %c0_177 = arith.constant 0 : index
    %c0_178 = arith.constant 0 : index
    %348 = vector.load %arg8[%c0_177, %c0_178] : memref<64x24xf32, #tpu.memory_space<vmem>>, vector<64x8xf32>
    %c0_179 = arith.constant 0 : index
    %c8_180 = arith.constant 8 : index
    %349 = vector.load %arg8[%c0_179, %c8_180] : memref<64x24xf32, #tpu.memory_space<vmem>>, vector<64x8xf32>
    %c0_181 = arith.constant 0 : index
    %c16_182 = arith.constant 16 : index
    %350 = vector.load %arg8[%c0_181, %c16_182] : memref<64x24xf32, #tpu.memory_space<vmem>>, vector<64x8xf32>
    %cst_183 = arith.constant dense<0.000000e+00> : vector<64x64xf32>
    %351 = tpu.matmul %348, %349, %cst_183 {dimension_numbers = #tpu.dot_dimension_numbers<[1], [1], [0], [0], [0, 0, 1, 0], [], []>} : vector<64x8xf32>, vector<64x8xf32>, vector<64x64xf32> -> vector<64x64xf32>
    %cst_184 = arith.constant 0.353553385 : f32
    %352 = vector.broadcast %cst_184 : f32 to vector<64x64xf32>
    %353 = arith.mulf %351, %352 : vector<64x64xf32>
    %354 = arith.addf %353, %41 : vector<64x64xf32>
    %cst_185 = arith.constant dense<0xFF800000> : vector<64xf32>
    %355 = vector.multi_reduction <maximumf>, %354, %cst_185 [1] : vector<64x64xf32> to vector<64xf32>
    %356 = vector.shape_cast %355 : vector<64xf32> to vector<64x1xf32>
    %357 = vector.broadcast %356 : vector<64x1xf32> to vector<64x64xf32>
    %358 = arith.subf %354, %357 : vector<64x64xf32>
    %359 = math.exp %358 : vector<64x64xf32>
    %cst_186 = arith.constant dense<0.000000e+00> : vector<64xf32>
    %360 = vector.multi_reduction <add>, %359, %cst_186 [1] : vector<64x64xf32> to vector<64xf32>
    %361 = vector.shape_cast %360 : vector<64xf32> to vector<64x1xf32>
    %362 = tpu.reciprocal %361 {approx = true} : vector<64x1xf32> -> vector<64x1xf32>
    %363 = vector.broadcast %362 : vector<64x1xf32> to vector<64x64xf32>
    %364 = arith.mulf %359, %363 : vector<64x64xf32>
    %cst_187 = arith.constant dense<0.000000e+00> : vector<64x8xf32>
    %365 = tpu.matmul %364, %350, %cst_187 {dimension_numbers = #tpu.dot_dimension_numbers<[1], [0], [0], [1], [0, 0, 1, 1], [], []>} : vector<64x64xf32>, vector<64x8xf32>, vector<64x8xf32> -> vector<64x8xf32>
    %366 = vector.extract_strided_slice %365 {offsets = [0, 0], sizes = [16, 8], strides = [1, 1]} : vector<64x8xf32> to vector<16x8xf32>
    %c0_188 = arith.constant 0 : index
    %c0_189 = arith.constant 0 : index
    %367 = vector.load %arg9[%c0_188, %c0_189] : memref<16x32xf32, #tpu.memory_space<vmem>>, vector<16x8xf32>
    tpu.vector_store %arg9[%c0_188, %c0_189], %366 {strides = array<i32>} : memref<16x32xf32, #tpu.memory_space<vmem>>, vector<16x8xf32>,
    %368 = vector.extract_strided_slice %365 {offsets = [16, 0], sizes = [16, 8], strides = [1, 1]} : vector<64x8xf32> to vector<16x8xf32>
    %c0_190 = arith.constant 0 : index
    %c8_191 = arith.constant 8 : index
    %369 = vector.load %arg9[%c0_190, %c8_191] : memref<16x32xf32, #tpu.memory_space<vmem>>, vector<16x8xf32>
    tpu.vector_store %arg9[%c0_190, %c8_191], %368 {strides = array<i32>} : memref<16x32xf32, #tpu.memory_space<vmem>>, vector<16x8xf32>,
    %370 = vector.extract_strided_slice %365 {offsets = [32, 0], sizes = [16, 8], strides = [1, 1]} : vector<64x8xf32> to vector<16x8xf32>
    %c0_192 = arith.constant 0 : index
    %c16_193 = arith.constant 16 : index
    %371 = vector.load %arg9[%c0_192, %c16_193] : memref<16x32xf32, #tpu.memory_space<vmem>>, vector<16x8xf32>
    tpu.vector_store %arg9[%c0_192, %c16_193], %370 {strides = array<i32>} : memref<16x32xf32, #tpu.memory_space<vmem>>, vector<16x8xf32>,
    %372 = vector.extract_strided_slice %365 {offsets = [48, 0], sizes = [16, 8], strides = [1, 1]} : vector<64x8xf32> to vector<16x8xf32>
    %c0_194 = arith.constant 0 : index
    %c24_195 = arith.constant 24 : index
    %373 = vector.load %arg9[%c0_194, %c24_195] : memref<16x32xf32, #tpu.memory_space<vmem>>, vector<16x8xf32>
    tpu.vector_store %arg9[%c0_194, %c24_195], %372 {strides = array<i32>} : memref<16x32xf32, #tpu.memory_space<vmem>>, vector<16x8xf32>,
    %c0_196 = arith.constant 0 : index
    %c0_197 = arith.constant 0 : index
    %374 = vector.load %arg9[%c0_196, %c0_197] : memref<16x32xf32, #tpu.memory_space<vmem>>, vector<16x32xf32>
    %c2_198 = arith.constant 2 : index
    %c0_199 = arith.constant 0 : index
    %c0_200 = arith.constant 0 : index
    %375 = vector.load %arg3[%c2_198, %c0_199, %c0_200] : memref<4x32x32xf32, #tpu.memory_space<vmem>>, vector<1x32x32xf32>
    %376 = vector.shape_cast %375 : vector<1x32x32xf32> to vector<32x32xf32>
    %cst_201 = arith.constant dense<0.000000e+00> : vector<16x32xf32>
    %377 = tpu.matmul %374, %376, %cst_201 {dimension_numbers = #tpu.dot_dimension_numbers<[1], [0], [0], [1], [0, 0, 1, 1], [], []>} : vector<16x32xf32>, vector<32x32xf32>, vector<16x32xf32> -> vector<16x32xf32>
    %c20 = arith.constant 20 : index
    %c0_202 = arith.constant 0 : index
    %378 = vector.load %arg6[%c20, %c0_202] : memref<40x128xf32, #tpu.memory_space<vmem>>, vector<1x32xf32>
    %379 = vector.broadcast %378 : vector<1x32xf32> to vector<16x32xf32>
    %380 = arith.addf %377, %379 : vector<16x32xf32>
    %381 = arith.addf %309, %380 : vector<16x32xf32>
    %c18 = arith.constant 18 : index
    %c0_203 = arith.constant 0 : index
    %382 = vector.load %arg6[%c18, %c0_203] : memref<40x128xf32, #tpu.memory_space<vmem>>, vector<1x32xf32>
    %c19 = arith.constant 19 : index
    %c0_204 = arith.constant 0 : index
    %383 = vector.load %arg6[%c19, %c0_204] : memref<40x128xf32, #tpu.memory_space<vmem>>, vector<1x32xf32>
    %cst_205 = arith.constant dense<0.000000e+00> : vector<16xf32>
    %384 = vector.multi_reduction <add>, %381, %cst_205 [1] : vector<16x32xf32> to vector<16xf32>
    %385 = vector.shape_cast %384 : vector<16xf32> to vector<16x1xf32>
    %cst_206 = arith.constant 3.200000e+01 : f32
    %386 = vector.broadcast %cst_206 : f32 to vector<16x1xf32>
    %387 = arith.divf %385, %386 : vector<16x1xf32>
    %388 = vector.broadcast %387 : vector<16x1xf32> to vector<16x32xf32>
    %389 = arith.subf %381, %388 : vector<16x32xf32>
    %390 = arith.mulf %389, %389 : vector<16x32xf32>
    %cst_207 = arith.constant dense<0.000000e+00> : vector<16xf32>
    %391 = vector.multi_reduction <add>, %390, %cst_207 [1] : vector<16x32xf32> to vector<16xf32>
    %392 = vector.shape_cast %391 : vector<16xf32> to vector<16x1xf32>
    %cst_208 = arith.constant 3.200000e+01 : f32
    %393 = vector.broadcast %cst_208 : f32 to vector<16x1xf32>
    %394 = arith.divf %392, %393 : vector<16x1xf32>
    %395 = vector.broadcast %387 : vector<16x1xf32> to vector<16x32xf32>
    %396 = arith.subf %381, %395 : vector<16x32xf32>
    %cst_209 = arith.constant 9.99999974E-6 : f32
    %397 = vector.broadcast %cst_209 : f32 to vector<16x1xf32>
    %398 = arith.addf %394, %397 : vector<16x1xf32>
    %399 = math.rsqrt %398 : vector<16x1xf32>
    %400 = vector.broadcast %399 : vector<16x1xf32> to vector<16x32xf32>
    %401 = arith.mulf %396, %400 : vector<16x32xf32>
    %402 = vector.broadcast %382 : vector<1x32xf32> to vector<16x32xf32>
    %403 = arith.mulf %401, %402 : vector<16x32xf32>
    %404 = vector.broadcast %383 : vector<1x32xf32> to vector<16x32xf32>
    %405 = arith.addf %403, %404 : vector<16x32xf32>
    %c2_210 = arith.constant 2 : index
    %c0_211 = arith.constant 0 : index
    %c0_212 = arith.constant 0 : index
    %406 = vector.load %arg4[%c2_210, %c0_211, %c0_212] : memref<4x32x128xf32, #tpu.memory_space<vmem>>, vector<1x32x128xf32>
    %407 = vector.shape_cast %406 : vector<1x32x128xf32> to vector<32x128xf32>
    %cst_213 = arith.constant dense<0.000000e+00> : vector<16x128xf32>
    %408 = tpu.matmul %405, %407, %cst_213 {dimension_numbers = #tpu.dot_dimension_numbers<[1], [0], [0], [1], [0, 0, 1, 1], [], []>} : vector<16x32xf32>, vector<32x128xf32>, vector<16x128xf32> -> vector<16x128xf32>
    %c23 = arith.constant 23 : index
    %c0_214 = arith.constant 0 : index
    %409 = vector.load %arg6[%c23, %c0_214] : memref<40x128xf32, #tpu.memory_space<vmem>>, vector<1x128xf32>
    %410 = vector.broadcast %409 : vector<1x128xf32> to vector<16x128xf32>
    %411 = arith.addf %408, %410 : vector<16x128xf32>
    %cst_215 = arith.constant 5.000000e-01 : f32
    %412 = vector.broadcast %cst_215 : f32 to vector<16x128xf32>
    %413 = arith.mulf %412, %411 : vector<16x128xf32>
    %cst_216 = arith.constant 4.471500e-02 : f32
    %414 = vector.broadcast %cst_216 : f32 to vector<16x128xf32>
    %415 = arith.mulf %414, %411 : vector<16x128xf32>
    %416 = arith.mulf %415, %411 : vector<16x128xf32>
    %417 = arith.mulf %416, %411 : vector<16x128xf32>
    %418 = arith.addf %411, %417 : vector<16x128xf32>
    %cst_217 = arith.constant 0.797884583 : f32
    %419 = vector.broadcast %cst_217 : f32 to vector<16x128xf32>
    %420 = arith.mulf %419, %418 : vector<16x128xf32>
    %421 = math.tanh %420 : vector<16x128xf32>
    %cst_218 = arith.constant 1.000000e+00 : f32
    %422 = vector.broadcast %cst_218 : f32 to vector<16x128xf32>
    %423 = arith.addf %422, %421 : vector<16x128xf32>
    %424 = arith.mulf %413, %423 : vector<16x128xf32>
    %c2_219 = arith.constant 2 : index
    %c0_220 = arith.constant 0 : index
    %c0_221 = arith.constant 0 : index
    %425 = vector.load %arg5[%c2_219, %c0_220, %c0_221] : memref<4x128x32xf32, #tpu.memory_space<vmem>>, vector<1x128x32xf32>
    %426 = vector.shape_cast %425 : vector<1x128x32xf32> to vector<128x32xf32>
    %cst_222 = arith.constant dense<0.000000e+00> : vector<16x32xf32>
    %427 = tpu.matmul %424, %426, %cst_222 {dimension_numbers = #tpu.dot_dimension_numbers<[1], [0], [0], [1], [0, 0, 1, 1], [], []>} : vector<16x128xf32>, vector<128x32xf32>, vector<16x32xf32> -> vector<16x32xf32>
    %c21 = arith.constant 21 : index
    %c0_223 = arith.constant 0 : index
    %428 = vector.load %arg6[%c21, %c0_223] : memref<40x128xf32, #tpu.memory_space<vmem>>, vector<1x32xf32>
    %429 = vector.broadcast %428 : vector<1x32xf32> to vector<16x32xf32>
    %430 = arith.addf %427, %429 : vector<16x32xf32>
    %431 = arith.addf %381, %430 : vector<16x32xf32>
    %c24_224 = arith.constant 24 : index
    %c0_225 = arith.constant 0 : index
    %432 = vector.load %arg6[%c24_224, %c0_225] : memref<40x128xf32, #tpu.memory_space<vmem>>, vector<1x32xf32>
    %c25 = arith.constant 25 : index
    %c0_226 = arith.constant 0 : index
    %433 = vector.load %arg6[%c25, %c0_226] : memref<40x128xf32, #tpu.memory_space<vmem>>, vector<1x32xf32>
    %cst_227 = arith.constant dense<0.000000e+00> : vector<16xf32>
    %434 = vector.multi_reduction <add>, %431, %cst_227 [1] : vector<16x32xf32> to vector<16xf32>
    %435 = vector.shape_cast %434 : vector<16xf32> to vector<16x1xf32>
    %cst_228 = arith.constant 3.200000e+01 : f32
    %436 = vector.broadcast %cst_228 : f32 to vector<16x1xf32>
    %437 = arith.divf %435, %436 : vector<16x1xf32>
    %438 = vector.broadcast %437 : vector<16x1xf32> to vector<16x32xf32>
    %439 = arith.subf %431, %438 : vector<16x32xf32>
    %440 = arith.mulf %439, %439 : vector<16x32xf32>
    %cst_229 = arith.constant dense<0.000000e+00> : vector<16xf32>
    %441 = vector.multi_reduction <add>, %440, %cst_229 [1] : vector<16x32xf32> to vector<16xf32>
    %442 = vector.shape_cast %441 : vector<16xf32> to vector<16x1xf32>
    %cst_230 = arith.constant 3.200000e+01 : f32
    %443 = vector.broadcast %cst_230 : f32 to vector<16x1xf32>
    %444 = arith.divf %442, %443 : vector<16x1xf32>
    %445 = vector.broadcast %437 : vector<16x1xf32> to vector<16x32xf32>
    %446 = arith.subf %431, %445 : vector<16x32xf32>
    %cst_231 = arith.constant 9.99999974E-6 : f32
    %447 = vector.broadcast %cst_231 : f32 to vector<16x1xf32>
    %448 = arith.addf %444, %447 : vector<16x1xf32>
    %449 = math.rsqrt %448 : vector<16x1xf32>
    %450 = vector.broadcast %449 : vector<16x1xf32> to vector<16x32xf32>
    %451 = arith.mulf %446, %450 : vector<16x32xf32>
    %452 = vector.broadcast %432 : vector<1x32xf32> to vector<16x32xf32>
    %453 = arith.mulf %451, %452 : vector<16x32xf32>
    %454 = vector.broadcast %433 : vector<1x32xf32> to vector<16x32xf32>
    %455 = arith.addf %453, %454 : vector<16x32xf32>
    %c3_232 = arith.constant 3 : index
    %c0_233 = arith.constant 0 : index
    %c0_234 = arith.constant 0 : index
    %456 = vector.load %arg2[%c3_232, %c0_233, %c0_234] : memref<4x32x96xf32, #tpu.memory_space<vmem>>, vector<1x32x96xf32>
    %457 = vector.shape_cast %456 : vector<1x32x96xf32> to vector<32x96xf32>
    %cst_235 = arith.constant dense<0.000000e+00> : vector<16x96xf32>
    %458 = tpu.matmul %455, %457, %cst_235 {dimension_numbers = #tpu.dot_dimension_numbers<[1], [0], [0], [1], [0, 0, 1, 1], [], []>} : vector<16x32xf32>, vector<32x96xf32>, vector<16x96xf32> -> vector<16x96xf32>
    %c30 = arith.constant 30 : index
    %c0_236 = arith.constant 0 : index
    %459 = vector.load %arg6[%c30, %c0_236] : memref<40x128xf32, #tpu.memory_space<vmem>>, vector<1x96xf32>
    %460 = vector.broadcast %459 : vector<1x96xf32> to vector<16x96xf32>
    %461 = arith.addf %458, %460 : vector<16x96xf32>
    %462 = vector.extract_strided_slice %461 {offsets = [0, 0], sizes = [16, 24], strides = [1, 1]} : vector<16x96xf32> to vector<16x24xf32>
    %c0_237 = arith.constant 0 : index
    %c0_238 = arith.constant 0 : index
    %463 = vector.load %arg8[%c0_237, %c0_238] : memref<64x24xf32, #tpu.memory_space<vmem>>, vector<16x24xf32>
    tpu.vector_store %arg8[%c0_237, %c0_238], %462 {strides = array<i32>} : memref<64x24xf32, #tpu.memory_space<vmem>>, vector<16x24xf32>,
    %464 = vector.extract_strided_slice %461 {offsets = [0, 24], sizes = [16, 24], strides = [1, 1]} : vector<16x96xf32> to vector<16x24xf32>
    %c16_239 = arith.constant 16 : index
    %c0_240 = arith.constant 0 : index
    %465 = vector.load %arg8[%c16_239, %c0_240] : memref<64x24xf32, #tpu.memory_space<vmem>>, vector<16x24xf32>
    tpu.vector_store %arg8[%c16_239, %c0_240], %464 {strides = array<i32>} : memref<64x24xf32, #tpu.memory_space<vmem>>, vector<16x24xf32>,
    %466 = vector.extract_strided_slice %461 {offsets = [0, 48], sizes = [16, 24], strides = [1, 1]} : vector<16x96xf32> to vector<16x24xf32>
    %c32_241 = arith.constant 32 : index
    %c0_242 = arith.constant 0 : index
    %467 = vector.load %arg8[%c32_241, %c0_242] : memref<64x24xf32, #tpu.memory_space<vmem>>, vector<16x24xf32>
    tpu.vector_store %arg8[%c32_241, %c0_242], %466 {strides = array<i32>} : memref<64x24xf32, #tpu.memory_space<vmem>>, vector<16x24xf32>,
    %468 = vector.extract_strided_slice %461 {offsets = [0, 72], sizes = [16, 24], strides = [1, 1]} : vector<16x96xf32> to vector<16x24xf32>
    %c48_243 = arith.constant 48 : index
    %c0_244 = arith.constant 0 : index
    %469 = vector.load %arg8[%c48_243, %c0_244] : memref<64x24xf32, #tpu.memory_space<vmem>>, vector<16x24xf32>
    tpu.vector_store %arg8[%c48_243, %c0_244], %468 {strides = array<i32>} : memref<64x24xf32, #tpu.memory_space<vmem>>, vector<16x24xf32>,
    %c0_245 = arith.constant 0 : index
    %c0_246 = arith.constant 0 : index
    %470 = vector.load %arg8[%c0_245, %c0_246] : memref<64x24xf32, #tpu.memory_space<vmem>>, vector<64x8xf32>
    %c0_247 = arith.constant 0 : index
    %c8_248 = arith.constant 8 : index
    %471 = vector.load %arg8[%c0_247, %c8_248] : memref<64x24xf32, #tpu.memory_space<vmem>>, vector<64x8xf32>
    %c0_249 = arith.constant 0 : index
    %c16_250 = arith.constant 16 : index
    %472 = vector.load %arg8[%c0_249, %c16_250] : memref<64x24xf32, #tpu.memory_space<vmem>>, vector<64x8xf32>
    %cst_251 = arith.constant dense<0.000000e+00> : vector<64x64xf32>
    %473 = tpu.matmul %470, %471, %cst_251 {dimension_numbers = #tpu.dot_dimension_numbers<[1], [1], [0], [0], [0, 0, 1, 0], [], []>} : vector<64x8xf32>, vector<64x8xf32>, vector<64x64xf32> -> vector<64x64xf32>
    %cst_252 = arith.constant 0.353553385 : f32
    %474 = vector.broadcast %cst_252 : f32 to vector<64x64xf32>
    %475 = arith.mulf %473, %474 : vector<64x64xf32>
    %476 = arith.addf %475, %41 : vector<64x64xf32>
    %cst_253 = arith.constant dense<0xFF800000> : vector<64xf32>
    %477 = vector.multi_reduction <maximumf>, %476, %cst_253 [1] : vector<64x64xf32> to vector<64xf32>
    %478 = vector.shape_cast %477 : vector<64xf32> to vector<64x1xf32>
    %479 = vector.broadcast %478 : vector<64x1xf32> to vector<64x64xf32>
    %480 = arith.subf %476, %479 : vector<64x64xf32>
    %481 = math.exp %480 : vector<64x64xf32>
    %cst_254 = arith.constant dense<0.000000e+00> : vector<64xf32>
    %482 = vector.multi_reduction <add>, %481, %cst_254 [1] : vector<64x64xf32> to vector<64xf32>
    %483 = vector.shape_cast %482 : vector<64xf32> to vector<64x1xf32>
    %484 = tpu.reciprocal %483 {approx = true} : vector<64x1xf32> -> vector<64x1xf32>
    %485 = vector.broadcast %484 : vector<64x1xf32> to vector<64x64xf32>
    %486 = arith.mulf %481, %485 : vector<64x64xf32>
    %cst_255 = arith.constant dense<0.000000e+00> : vector<64x8xf32>
    %487 = tpu.matmul %486, %472, %cst_255 {dimension_numbers = #tpu.dot_dimension_numbers<[1], [0], [0], [1], [0, 0, 1, 1], [], []>} : vector<64x64xf32>, vector<64x8xf32>, vector<64x8xf32> -> vector<64x8xf32>
    %488 = vector.extract_strided_slice %487 {offsets = [0, 0], sizes = [16, 8], strides = [1, 1]} : vector<64x8xf32> to vector<16x8xf32>
    %c0_256 = arith.constant 0 : index
    %c0_257 = arith.constant 0 : index
    %489 = vector.load %arg9[%c0_256, %c0_257] : memref<16x32xf32, #tpu.memory_space<vmem>>, vector<16x8xf32>
    tpu.vector_store %arg9[%c0_256, %c0_257], %488 {strides = array<i32>} : memref<16x32xf32, #tpu.memory_space<vmem>>, vector<16x8xf32>,
    %490 = vector.extract_strided_slice %487 {offsets = [16, 0], sizes = [16, 8], strides = [1, 1]} : vector<64x8xf32> to vector<16x8xf32>
    %c0_258 = arith.constant 0 : index
    %c8_259 = arith.constant 8 : index
    %491 = vector.load %arg9[%c0_258, %c8_259] : memref<16x32xf32, #tpu.memory_space<vmem>>, vector<16x8xf32>
    tpu.vector_store %arg9[%c0_258, %c8_259], %490 {strides = array<i32>} : memref<16x32xf32, #tpu.memory_space<vmem>>, vector<16x8xf32>,
    %492 = vector.extract_strided_slice %487 {offsets = [32, 0], sizes = [16, 8], strides = [1, 1]} : vector<64x8xf32> to vector<16x8xf32>
    %c0_260 = arith.constant 0 : index
    %c16_261 = arith.constant 16 : index
    %493 = vector.load %arg9[%c0_260, %c16_261] : memref<16x32xf32, #tpu.memory_space<vmem>>, vector<16x8xf32>
    tpu.vector_store %arg9[%c0_260, %c16_261], %492 {strides = array<i32>} : memref<16x32xf32, #tpu.memory_space<vmem>>, vector<16x8xf32>,
    %494 = vector.extract_strided_slice %487 {offsets = [48, 0], sizes = [16, 8], strides = [1, 1]} : vector<64x8xf32> to vector<16x8xf32>
    %c0_262 = arith.constant 0 : index
    %c24_263 = arith.constant 24 : index
    %495 = vector.load %arg9[%c0_262, %c24_263] : memref<16x32xf32, #tpu.memory_space<vmem>>, vector<16x8xf32>
    tpu.vector_store %arg9[%c0_262, %c24_263], %494 {strides = array<i32>} : memref<16x32xf32, #tpu.memory_space<vmem>>, vector<16x8xf32>,
    %c0_264 = arith.constant 0 : index
    %c0_265 = arith.constant 0 : index
    %496 = vector.load %arg9[%c0_264, %c0_265] : memref<16x32xf32, #tpu.memory_space<vmem>>, vector<16x32xf32>
    %c3_266 = arith.constant 3 : index
    %c0_267 = arith.constant 0 : index
    %c0_268 = arith.constant 0 : index
    %497 = vector.load %arg3[%c3_266, %c0_267, %c0_268] : memref<4x32x32xf32, #tpu.memory_space<vmem>>, vector<1x32x32xf32>
    %498 = vector.shape_cast %497 : vector<1x32x32xf32> to vector<32x32xf32>
    %cst_269 = arith.constant dense<0.000000e+00> : vector<16x32xf32>
    %499 = tpu.matmul %496, %498, %cst_269 {dimension_numbers = #tpu.dot_dimension_numbers<[1], [0], [0], [1], [0, 0, 1, 1], [], []>} : vector<16x32xf32>, vector<32x32xf32>, vector<16x32xf32> -> vector<16x32xf32>
    %c28 = arith.constant 28 : index
    %c0_270 = arith.constant 0 : index
    %500 = vector.load %arg6[%c28, %c0_270] : memref<40x128xf32, #tpu.memory_space<vmem>>, vector<1x32xf32>
    %501 = vector.broadcast %500 : vector<1x32xf32> to vector<16x32xf32>
    %502 = arith.addf %499, %501 : vector<16x32xf32>
    %503 = arith.addf %431, %502 : vector<16x32xf32>
    %c26 = arith.constant 26 : index
    %c0_271 = arith.constant 0 : index
    %504 = vector.load %arg6[%c26, %c0_271] : memref<40x128xf32, #tpu.memory_space<vmem>>, vector<1x32xf32>
    %c27 = arith.constant 27 : index
    %c0_272 = arith.constant 0 : index
    %505 = vector.load %arg6[%c27, %c0_272] : memref<40x128xf32, #tpu.memory_space<vmem>>, vector<1x32xf32>
    %cst_273 = arith.constant dense<0.000000e+00> : vector<16xf32>
    %506 = vector.multi_reduction <add>, %503, %cst_273 [1] : vector<16x32xf32> to vector<16xf32>
    %507 = vector.shape_cast %506 : vector<16xf32> to vector<16x1xf32>
    %cst_274 = arith.constant 3.200000e+01 : f32
    %508 = vector.broadcast %cst_274 : f32 to vector<16x1xf32>
    %509 = arith.divf %507, %508 : vector<16x1xf32>
    %510 = vector.broadcast %509 : vector<16x1xf32> to vector<16x32xf32>
    %511 = arith.subf %503, %510 : vector<16x32xf32>
    %512 = arith.mulf %511, %511 : vector<16x32xf32>
    %cst_275 = arith.constant dense<0.000000e+00> : vector<16xf32>
    %513 = vector.multi_reduction <add>, %512, %cst_275 [1] : vector<16x32xf32> to vector<16xf32>
    %514 = vector.shape_cast %513 : vector<16xf32> to vector<16x1xf32>
    %cst_276 = arith.constant 3.200000e+01 : f32
    %515 = vector.broadcast %cst_276 : f32 to vector<16x1xf32>
    %516 = arith.divf %514, %515 : vector<16x1xf32>
    %517 = vector.broadcast %509 : vector<16x1xf32> to vector<16x32xf32>
    %518 = arith.subf %503, %517 : vector<16x32xf32>
    %cst_277 = arith.constant 9.99999974E-6 : f32
    %519 = vector.broadcast %cst_277 : f32 to vector<16x1xf32>
    %520 = arith.addf %516, %519 : vector<16x1xf32>
    %521 = math.rsqrt %520 : vector<16x1xf32>
    %522 = vector.broadcast %521 : vector<16x1xf32> to vector<16x32xf32>
    %523 = arith.mulf %518, %522 : vector<16x32xf32>
    %524 = vector.broadcast %504 : vector<1x32xf32> to vector<16x32xf32>
    %525 = arith.mulf %523, %524 : vector<16x32xf32>
    %526 = vector.broadcast %505 : vector<1x32xf32> to vector<16x32xf32>
    %527 = arith.addf %525, %526 : vector<16x32xf32>
    %c3_278 = arith.constant 3 : index
    %c0_279 = arith.constant 0 : index
    %c0_280 = arith.constant 0 : index
    %528 = vector.load %arg4[%c3_278, %c0_279, %c0_280] : memref<4x32x128xf32, #tpu.memory_space<vmem>>, vector<1x32x128xf32>
    %529 = vector.shape_cast %528 : vector<1x32x128xf32> to vector<32x128xf32>
    %cst_281 = arith.constant dense<0.000000e+00> : vector<16x128xf32>
    %530 = tpu.matmul %527, %529, %cst_281 {dimension_numbers = #tpu.dot_dimension_numbers<[1], [0], [0], [1], [0, 0, 1, 1], [], []>} : vector<16x32xf32>, vector<32x128xf32>, vector<16x128xf32> -> vector<16x128xf32>
    %c31 = arith.constant 31 : index
    %c0_282 = arith.constant 0 : index
    %531 = vector.load %arg6[%c31, %c0_282] : memref<40x128xf32, #tpu.memory_space<vmem>>, vector<1x128xf32>
    %532 = vector.broadcast %531 : vector<1x128xf32> to vector<16x128xf32>
    %533 = arith.addf %530, %532 : vector<16x128xf32>
    %cst_283 = arith.constant 5.000000e-01 : f32
    %534 = vector.broadcast %cst_283 : f32 to vector<16x128xf32>
    %535 = arith.mulf %534, %533 : vector<16x128xf32>
    %cst_284 = arith.constant 4.471500e-02 : f32
    %536 = vector.broadcast %cst_284 : f32 to vector<16x128xf32>
    %537 = arith.mulf %536, %533 : vector<16x128xf32>
    %538 = arith.mulf %537, %533 : vector<16x128xf32>
    %539 = arith.mulf %538, %533 : vector<16x128xf32>
    %540 = arith.addf %533, %539 : vector<16x128xf32>
    %cst_285 = arith.constant 0.797884583 : f32
    %541 = vector.broadcast %cst_285 : f32 to vector<16x128xf32>
    %542 = arith.mulf %541, %540 : vector<16x128xf32>
    %543 = math.tanh %542 : vector<16x128xf32>
    %cst_286 = arith.constant 1.000000e+00 : f32
    %544 = vector.broadcast %cst_286 : f32 to vector<16x128xf32>
    %545 = arith.addf %544, %543 : vector<16x128xf32>
    %546 = arith.mulf %535, %545 : vector<16x128xf32>
    %c3_287 = arith.constant 3 : index
    %c0_288 = arith.constant 0 : index
    %c0_289 = arith.constant 0 : index
    %547 = vector.load %arg5[%c3_287, %c0_288, %c0_289] : memref<4x128x32xf32, #tpu.memory_space<vmem>>, vector<1x128x32xf32>
    %548 = vector.shape_cast %547 : vector<1x128x32xf32> to vector<128x32xf32>
    %cst_290 = arith.constant dense<0.000000e+00> : vector<16x32xf32>
    %549 = tpu.matmul %546, %548, %cst_290 {dimension_numbers = #tpu.dot_dimension_numbers<[1], [0], [0], [1], [0, 0, 1, 1], [], []>} : vector<16x128xf32>, vector<128x32xf32>, vector<16x32xf32> -> vector<16x32xf32>
    %c29 = arith.constant 29 : index
    %c0_291 = arith.constant 0 : index
    %550 = vector.load %arg6[%c29, %c0_291] : memref<40x128xf32, #tpu.memory_space<vmem>>, vector<1x32xf32>
    %551 = vector.broadcast %550 : vector<1x32xf32> to vector<16x32xf32>
    %552 = arith.addf %549, %551 : vector<16x32xf32>
    %553 = arith.addf %503, %552 : vector<16x32xf32>
    %c34 = arith.constant 34 : index
    %c0_292 = arith.constant 0 : index
    %554 = vector.load %arg6[%c34, %c0_292] : memref<40x128xf32, #tpu.memory_space<vmem>>, vector<1x32xf32>
    %c35 = arith.constant 35 : index
    %c0_293 = arith.constant 0 : index
    %555 = vector.load %arg6[%c35, %c0_293] : memref<40x128xf32, #tpu.memory_space<vmem>>, vector<1x32xf32>
    %cst_294 = arith.constant dense<0.000000e+00> : vector<16xf32>
    %556 = vector.multi_reduction <add>, %553, %cst_294 [1] : vector<16x32xf32> to vector<16xf32>
    %557 = vector.shape_cast %556 : vector<16xf32> to vector<16x1xf32>
    %cst_295 = arith.constant 3.200000e+01 : f32
    %558 = vector.broadcast %cst_295 : f32 to vector<16x1xf32>
    %559 = arith.divf %557, %558 : vector<16x1xf32>
    %560 = vector.broadcast %559 : vector<16x1xf32> to vector<16x32xf32>
    %561 = arith.subf %553, %560 : vector<16x32xf32>
    %562 = arith.mulf %561, %561 : vector<16x32xf32>
    %cst_296 = arith.constant dense<0.000000e+00> : vector<16xf32>
    %563 = vector.multi_reduction <add>, %562, %cst_296 [1] : vector<16x32xf32> to vector<16xf32>
    %564 = vector.shape_cast %563 : vector<16xf32> to vector<16x1xf32>
    %cst_297 = arith.constant 3.200000e+01 : f32
    %565 = vector.broadcast %cst_297 : f32 to vector<16x1xf32>
    %566 = arith.divf %564, %565 : vector<16x1xf32>
    %567 = vector.broadcast %559 : vector<16x1xf32> to vector<16x32xf32>
    %568 = arith.subf %553, %567 : vector<16x32xf32>
    %cst_298 = arith.constant 9.99999974E-6 : f32
    %569 = vector.broadcast %cst_298 : f32 to vector<16x1xf32>
    %570 = arith.addf %566, %569 : vector<16x1xf32>
    %571 = math.rsqrt %570 : vector<16x1xf32>
    %572 = vector.broadcast %571 : vector<16x1xf32> to vector<16x32xf32>
    %573 = arith.mulf %568, %572 : vector<16x32xf32>
    %574 = vector.broadcast %554 : vector<1x32xf32> to vector<16x32xf32>
    %575 = arith.mulf %573, %574 : vector<16x32xf32>
    %576 = vector.broadcast %555 : vector<1x32xf32> to vector<16x32xf32>
    %577 = arith.addf %575, %576 : vector<16x32xf32>
    %c36 = arith.constant 36 : index
    %c0_299 = arith.constant 0 : index
    %578 = vector.load %arg6[%c36, %c0_299] : memref<40x128xf32, #tpu.memory_space<vmem>>, vector<1x32xf32>
    %c37 = arith.constant 37 : index
    %c0_300 = arith.constant 0 : index
    %579 = vector.load %arg6[%c37, %c0_300] : memref<40x128xf32, #tpu.memory_space<vmem>>, vector<1x32xf32>
    %cst_301 = arith.constant dense<0.000000e+00> : vector<16xf32>
    %580 = vector.multi_reduction <add>, %577, %cst_301 [1] : vector<16x32xf32> to vector<16xf32>
    %581 = vector.shape_cast %580 : vector<16xf32> to vector<16x1xf32>
    %cst_302 = arith.constant 3.200000e+01 : f32
    %582 = vector.broadcast %cst_302 : f32 to vector<16x1xf32>
    %583 = arith.divf %581, %582 : vector<16x1xf32>
    %584 = vector.broadcast %583 : vector<16x1xf32> to vector<16x32xf32>
    %585 = arith.subf %577, %584 : vector<16x32xf32>
    %586 = arith.mulf %585, %585 : vector<16x32xf32>
    %cst_303 = arith.constant dense<0.000000e+00> : vector<16xf32>
    %587 = vector.multi_reduction <add>, %586, %cst_303 [1] : vector<16x32xf32> to vector<16xf32>
    %588 = vector.shape_cast %587 : vector<16xf32> to vector<16x1xf32>
    %cst_304 = arith.constant 3.200000e+01 : f32
    %589 = vector.broadcast %cst_304 : f32 to vector<16x1xf32>
    %590 = arith.divf %588, %589 : vector<16x1xf32>
    %591 = vector.broadcast %583 : vector<16x1xf32> to vector<16x32xf32>
    %592 = arith.subf %577, %591 : vector<16x32xf32>
    %cst_305 = arith.constant 9.99999974E-6 : f32
    %593 = vector.broadcast %cst_305 : f32 to vector<16x1xf32>
    %594 = arith.addf %590, %593 : vector<16x1xf32>
    %595 = math.rsqrt %594 : vector<16x1xf32>
    %596 = vector.broadcast %595 : vector<16x1xf32> to vector<16x32xf32>
    %597 = arith.mulf %592, %596 : vector<16x32xf32>
    %598 = vector.broadcast %578 : vector<1x32xf32> to vector<16x32xf32>
    %599 = arith.mulf %597, %598 : vector<16x32xf32>
    %600 = vector.broadcast %579 : vector<1x32xf32> to vector<16x32xf32>
    %601 = arith.addf %599, %600 : vector<16x32xf32>
    %c64 = arith.constant 64 : index
    %c0_306 = arith.constant 0 : index
    %602 = vector.load %arg1[%c64, %c0_306] : memref<144x32xf32, #tpu.memory_space<vmem>>, vector<64x32xf32>
    %cst_307 = arith.constant dense<0.000000e+00> : vector<16x64xf32>
    %603 = tpu.matmul %601, %602, %cst_307 {dimension_numbers = #tpu.dot_dimension_numbers<[1], [1], [0], [0], [0, 0, 1, 0], [], []>} : vector<16x32xf32>, vector<64x32xf32>, vector<16x64xf32> -> vector<16x64xf32>
    %cst_308 = arith.constant dense<0xFF800000> : vector<16xf32>
    %604 = vector.multi_reduction <maximumf>, %603, %cst_308 [1] : vector<16x64xf32> to vector<16xf32>
    %605 = vector.shape_cast %604 : vector<16xf32> to vector<16x1xf32>
    %606 = vector.broadcast %605 : vector<16x1xf32> to vector<16x64xf32>
    %607 = arith.subf %603, %606 : vector<16x64xf32>
    %608 = math.exp %607 : vector<16x64xf32>
    %cst_309 = arith.constant dense<0.000000e+00> : vector<16xf32>
    %609 = vector.multi_reduction <add>, %608, %cst_309 [1] : vector<16x64xf32> to vector<16xf32>
    %610 = vector.shape_cast %609 : vector<16xf32> to vector<16x1xf32>
    %611 = math.log %610 : vector<16x1xf32>
    %612 = arith.addf %605, %611 : vector<16x1xf32>
    %613 = vector.broadcast %1 : vector<16x1xi32> to vector<16x64xi32>
    %614 = arith.cmpi eq, %3, %613 : vector<16x64xi32>
    %cst_310 = arith.constant 0.000000e+00 : f32
    %615 = vector.broadcast %cst_310 : f32 to vector<16x64xf32>
    %616 = arith.select %614, %603, %615 : vector<16x64xi1>, vector<16x64xf32>
    %cst_311 = arith.constant dense<0.000000e+00> : vector<16xf32>
    %617 = vector.multi_reduction <add>, %616, %cst_311 [1] : vector<16x64xf32> to vector<16xf32>
    %618 = vector.shape_cast %617 : vector<16xf32> to vector<16x1xf32>
    %619 = arith.subf %612, %618 : vector<16x1xf32>
    %620 = vector.broadcast %605 : vector<16x1xf32> to vector<16x64xf32>
    %621 = arith.cmpf oeq, %603, %620 : vector<16x64xf32>
    %c64_i32 = arith.constant 64 : i32
    %622 = vector.broadcast %c64_i32 : i32 to vector<16x64xi32>
    %623 = arith.select %621, %3, %622 : vector<16x64xi1>, vector<16x64xi32>
    %cst_312 = arith.constant dense<2147483647> : vector<16xi32>
    %624 = vector.multi_reduction <minsi>, %623, %cst_312 [1] : vector<16x64xi32> to vector<16xi32>
    %625 = vector.shape_cast %624 : vector<16xi32> to vector<16x1xi32>
    %626 = arith.cmpi eq, %625, %1 : vector<16x1xi32>
    %627 = arith.extui %626 : vector<16x1xi1> to vector<16x1xi32>
    %628 = arith.sitofp %627 : vector<16x1xi32> to vector<16x1xf32>
    %c-100_i32 = arith.constant -100 : i32
    %629 = vector.broadcast %c-100_i32 : i32 to vector<16x1xi32>
    %630 = arith.cmpi ne, %1, %629 : vector<16x1xi32>
    %631 = arith.extui %630 : vector<16x1xi1> to vector<16x1xi32>
    %632 = arith.sitofp %631 : vector<16x1xi32> to vector<16x1xf32>
    %cst_313 = arith.constant dense<0.000000e+00> : vector<1xf32>
    %633 = vector.multi_reduction <add>, %632, %cst_313 [0] : vector<16x1xf32> to vector<1xf32>
    %634 = vector.shape_cast %633 : vector<1xf32> to vector<1x1xf32>
    %cst_314 = arith.constant 1.000000e+00 : f32
    %635 = vector.broadcast %cst_314 : f32 to vector<1x1xf32>
    %636 = arith.maximumf %634, %635 : vector<1x1xf32>
    %637 = arith.mulf %619, %632 : vector<16x1xf32>
    %cst_315 = arith.constant dense<0.000000e+00> : vector<1xf32>
    %638 = vector.multi_reduction <add>, %637, %cst_315 [0] : vector<16x1xf32> to vector<1xf32>
    %639 = vector.shape_cast %638 : vector<1xf32> to vector<1x1xf32>
    %640 = arith.divf %639, %636 : vector<1x1xf32>
    %641 = arith.mulf %628, %632 : vector<16x1xf32>
    %cst_316 = arith.constant dense<0.000000e+00> : vector<1xf32>
    %642 = vector.multi_reduction <add>, %641, %cst_316 [0] : vector<16x1xf32> to vector<1xf32>
    %643 = vector.shape_cast %642 : vector<1xf32> to vector<1x1xf32>
    %644 = arith.divf %643, %636 : vector<1x1xf32>
    %645 = tpu.iota {dimensions = array<i32: 1>} : vector<1x128xi32>
    %c0_i32_317 = arith.constant 0 : i32
    %646 = vector.broadcast %c0_i32_317 : i32 to vector<1x128xi32>
    %647 = arith.cmpi eq, %645, %646 : vector<1x128xi32>
    %c1_i32 = arith.constant 1 : i32
    %648 = vector.broadcast %c1_i32 : i32 to vector<1x128xi32>
    %649 = arith.cmpi eq, %645, %648 : vector<1x128xi32>
    %cst_318 = arith.constant 0.000000e+00 : f32
    %650 = vector.shape_cast %644 : vector<1x1xf32> to vector<1x1xf32>
    %651 = vector.broadcast %650 : vector<1x1xf32> to vector<1x128xf32>
    %652 = vector.broadcast %cst_318 : f32 to vector<1x128xf32>
    %653 = arith.select %649, %651, %652 : vector<1x128xi1>, vector<1x128xf32>
    %654 = vector.shape_cast %640 : vector<1x1xf32> to vector<1x1xf32>
    %655 = vector.broadcast %654 : vector<1x1xf32> to vector<1x128xf32>
    %656 = arith.select %647, %655, %653 : vector<1x128xi1>, vector<1x128xf32>
    %c0_319 = arith.constant 0 : index
    %c0_320 = arith.constant 0 : index
    %657 = vector.load %arg7[%c0_319, %c0_320] : memref<1x128xf32, #tpu.memory_space<vmem>>, vector<1x128xf32>
    tpu.vector_store %arg7[%c0_319, %c0_320], %656 {strides = array<i32>} : memref<1x128xf32, #tpu.memory_space<vmem>>, vector<1x128xf32>,
    return
  }
}

</mosaic_0001>

<bundles_post_ra>
// kernel: tile.6
= control target key start
LH: loop header
LB: loop body
LE: loop exit
PB: predicated region body
PF: predicated region fallthrough
CT: control target
= control target key end

     0   :  { %s22_s0 = inlined_call_operand.vmem [shape: s32[16], index: 0, kind: input, shape index: {}]   ;;  %s23_s1 = inlined_call_operand.vmem [shape: s32[4,16], index: 1, kind: output, shape index: {}]  }
   0x1   :  { %v4_v0 = vld [vmem:[%s22_s0] ss:$0 sm:$0xff] }
   0x2   :  { %5 = vst [vmem:[%s23_s1] sm:$0xf] %v4_v0 }

// kernel: tile.5
= control target key start
LH: loop header
LB: loop body
LE: loop exit
PB: predicated region body
PF: predicated region fallthrough
CT: control target
= control target key end

     0   :  { %vm7_vm0 = vcmask 64512   ;;  %vm13_vm1 = vcmask 130112   ;;  %s39_s0 = inlined_call_operand.vmem [shape: s32[2,8], index: 0, kind: input, shape index: {}]   ;;  %s40_s1 = inlined_call_operand.vmem [shape: s32[16], index: 1, kind: output, shape index: {}]  }
   0x1   :  { %v4_v0 = vld [vmem:[%s39_s0] sm:$0x3]  ;;  %s22_s0 = smov 8  }
   0x2   :  { %5 = vst [vmem:[#allocation1] sm:$0x3] %v4_v0 }
   0x9   :  { %v10_v1 = vld [vmem:[#allocation1 + $0x1] sm:$0x1]   ;;  %v6_v2 = vld [vmem:[#allocation1] sm:$0x1]  }
   0xa   :  { %11 = vrot.lane.b32.xlu0 %v10_v1, %s22_s0  ;;  %8 = vst.msk [vmem:[#allocation0] sm:$0x1] %vm7_vm0, %v6_v2  }
  0x7c   :  { %v12_v3 = vpop.permute.xlu0 %11  }
  0x7d   :  { %14 = vst.msk [vmem:[#allocation0] sm:$0x1] %vm13_vm1, %v12_v3  }
  0x84   :  { %v18_v4 = vld [vmem:[#allocation0] sm:$0x1] }
  0x85   :  { %20 = vst [vmem:[%s40_s1] sm:$0x1] %v18_v4 }

// kernel: forward.1
= control target key start
LH: loop header
LB: loop body
LE: loop exit
PB: predicated region body
PF: predicated region fallthrough
CT: control target
= control target key end

     0   :  { %v31_v0 = vlaneseq  ;;  %v6324_v1 = vmov 0   ;;  %v6325_v8 = vmov -10000.0   ;;  %vm55_vm1 = vcmask 523264   ;;  %s6327_s18 = smov 104   ;;  %s6328_s19 = smov 56   ;;  %s7857_s0 = inlined_call_operand.vmem [shape: s32[40,64], index: 0, kind: input, shape index: {}]   ;;  %s7858_s1 = inlined_call_operand.vmem [shape: f32[144,32], index: 1, kind: input, shape index: {}]   ;;  %s7859_s2 = inlined_call_operand.vmem [shape: f32[4,32,96], index: 2, kind: input, shape index: {}]   ;;  %s7860_s6 = inlined_call_operand.vmem [shape: f32[40,128], index: 6, kind: input, shape index: {}]   ;;  %s7861_s3 = inlined_call_operand.vmem [shape: f32[4,32,32], index: 3, kind: input, shape index: {}]   ;;  %s7862_s4 = inlined_call_operand.vmem [shape: f32[4,32,128], index: 4, kind: input, shape index: {}]   ;;  %s7863_s5 = inlined_call_operand.vmem [shape: f32[4,128,32], index: 5, kind: input, shape index: {}]   ;;  %s7864_s7 = inlined_call_operand.vmem [shape: f32[1,128], index: 7, kind: output, shape index: {}]  }
   0x1   :  { %5964 = vset.pattern.permute.xlu0 %v6324_v1  ;;  %v26_v2 = vld [vmem:[%s7857_s0] sm:$0xff]  ;;  %6125 = vset.pattern.permute.xlu1 %v6324_v1  ;;  %v46_v6 = vld [vmem:[%s7858_s1 + $0x8] sm:$0xff]  ;;  %v47_v7 = vld [vmem:[%s7858_s1 + $0x10] sm:$0xff]  ;;  %v6326_v24 = vmov 0.0   ;;  %vm225_vm4 = vcmask 261120   ;;  %vm355_vm5 = vcmask 195584  }
   0x2   :  { %v6382_v3 = vld [vmem:[%s7857_s0 + $0x20] sm:$0x1]  ;;  %v6384_v4 = vshrl.u32 %v31_v0, 7  ;;  %34 = vperm.xlu0 %5964, %v26_v2   ;;  %v27_v10 = vld [vmem:[%s7857_s0 + $0x8] sm:$0xff]  ;;  %v48_v12 = vld [vmem:[%s7858_s1 + $0x18] sm:$0xff]  ;;  %v6421_v22 = vand.u32 127, %v31_v0 }
   0x3   :  { %vm196_vm0 = vcmp.ne.s32.totalorder %v6382_v3, 0  ;;  %v45_v5 = vld [vmem:[%s7858_s1] sm:$0xff]  ;;  %v5532_v14 = vpack.c.bf16 %v48_v12, %v47_v7  ;;  %v50_v16 = vld [vmem:[%s7858_s1 + $0x28] sm:$0xff]  ;;  %v51_v19 = vld [vmem:[%s7858_s1 + $0x30] sm:$0xff]  ;;  %vm416_vm6 = vcmask 64512   ;;  %s6329_s20 = smov 80  }
   0x4   :  { %v198_v9 = vsel %vm196_vm0, 0.0, %v6325_v8  ;;  %v5528_v11 = vpack.c.bf16 %v46_v6, %v45_v5  ;;  %v201_v13 = vsub.s32 0, %v6384_v4  ;;  %v49_v15 = vld [vmem:[%s7858_s1 + $0x20] sm:$0xff]  ;;  %v52_v20 = vld [vmem:[%s7858_s1 + $0x38] sm:$0xff]  ;;  %v54_v30 = vld [vmem:[%s7858_s1 + $0x88] sm:$0xff]  ;;  %s6330_s21 = smov 120  }
   0x5   :  { %v5536_v18 = vpack.c.bf16 %v50_v16, %v49_v15  ;;  %v5540_v21 = vpack.c.bf16 %v52_v20, %v51_v19  ;;  %v53_v28 = vld [vmem:[%s7858_s1 + $0x80] sm:$0xff]  ;;  %v266_v47 = vld [vmem:[%s7859_s2 + $0x8] sm:$0xff]  ;;  %v267_v48 = vld [vmem:[%s7859_s2 + $0x10] sm:$0xff]  ;;  %s6332_s22 = smov 112   ;;  %s6333_s8 = smov 8  }
   0x6   :  { %5529 = vmatprep.subr.bf16.mxu0 %v5528_v11  ;;  %v6413_v17 = vrot.slane %v198_v9, %v201_v13  ;;  %37 = vperm.xlu0 %5964, %v27_v10   ;;  %v265_v46 = vld [vmem:[%s7859_s2] sm:$0xff]  ;;  %v268_v50 = vld [vmem:[%s7859_s2 + $0x18] sm:$0xff]  ;;  %vm6497_vm7 = vmpackc.low %vm416_vm6, %vm416_vm6  ;;  %s6334_s9 = smov 16   ;;  %s6335_s10 = smov 24  }
   0x7   :  { %5531 = vmatpush3.bf16.msra.mxu0 %v5528_v11  ;;  %v5544_v49 = vpack.c.bf16 %v266_v47, %v265_v46  ;;  %v5548_v51 = vpack.c.bf16 %v268_v50, %v267_v48  ;;  %v4446_v59 = vld [vmem:[%s7860_s6] ss:$0 sm:$0xff]  ;;  %v4447_v61 = vld [vmem:[%s7860_s6 + $0x1] ss:$0 sm:$0xff]  ;;  %v4448_v6 = vld [vmem:[%s7860_s6 + $0x6] ss:$0 sm:$0xff] }
   0x8   :  { %5533 = vmatprep.subr.bf16.mxu0 %v5532_v14 }
   0x9   :  { %5545 = vmatprep.subr.bf16.mxu1 %v5544_v49 }
   0xa   :  { %5547 = vmatpush3.bf16.msra.mxu1 %v5544_v49 }
   0xb   :  { %5535 = vmatpush3.bf16.msra.mxu0 %v5532_v14  ;;  %5549 = vmatprep.subr.bf16.mxu1 %v5548_v51 }
   0xc   :  { %5537 = vmatprep.subr.bf16.mxu0 %v5536_v18 }
   0xe   :  { %5551 = vmatpush3.bf16.msra.mxu1 %v5548_v51 }
   0xf   :  { %5539 = vmatpush3.bf16.msra.mxu0 %v5536_v18 }
  0x10   :  { %5541 = vmatprep.subr.bf16.mxu0 %v5540_v21 }
  0x13   :  { %5543 = vmatpush3.bf16.msra.mxu0 %v5540_v21 }
  0x81   :  { %v35_v23 = vpop.permute.xlu0 %34 }
  0x82   :  { %vm39_vm2 = vcmp.eq.s32.totalorder %v6421_v22, %v35_v23 }
  0x83   :  { %v4442_v25 = vsel %vm39_vm2, 1.0, %v6326_v24 }
  0x84   :  { %5010 = vmatprep.mubr.msk.f32.mxu0 %vm55_vm1, %v4442_v25 }
  0x85   :  { %v38_v26 = vpop.permute.xlu0 %37 }
  0x86   :  { %vm40_vm3 = vcmp.eq.s32.totalorder %v6421_v22, %v38_v26 }
  0x87   :  { %v4443_v27 = vsel %vm40_vm3, 1.0, %v6326_v24 }
  0x88   :  { %5011 = vmatmul.mubr.msk.f32.vlgmr.msra.gmra.mrb[0].mxu0 %vm55_vm1, %v4443_v27 }
 0x15b   :  { %v5012_v29 = vpop.f32.mrb[0].mxu0 }
 0x15c   :  { %v128_v31 = vpop.f32.mrb[1].mxu0  ;;  %v6437_v33 = vadd.f32 %v5012_v29, %v54_v30 }
 0x15d   :  { %v6435_v32 = vadd.f32 %v128_v31, %v53_v28 }
 0x15e   :  { %v229_v35 = vsel %vm225_vm4, %v6437_v33, 0.0 }
 0x15f   :  { %v226_v34 = vsel %vm225_vm4, %v6435_v32, 0.0 }
 0x160   :  { %227 = vadd.xlane.f32.xlu1 %v226_v34 }
 0x164   :  { %230 = vadd.xlane.f32.xlu1 %v229_v35 }
 0x1ed   :  { %v228_v36 = vpop.xlane.xlu1 %227 }
 0x1ee   :  { %v233_v37 = vmul.f32 0.03125, %v228_v36 }
 0x1f0   :  { %v235_v38 = vsub.f32 %v6435_v32, %v233_v37 }
 0x1f1   :  { %v231_v39 = vpop.xlane.xlu1 %230 }
 0x1f2   :  { %v234_v40 = vmul.f32 0.03125, %v231_v39  ;;  %v237_v41 = vmul.f32 %v235_v38, %v235_v38 }
 0x1f4   :  { %v236_v42 = vsub.f32 %v6437_v33, %v234_v40  ;;  %v239_v43 = vsel %vm225_vm4, %v237_v41, 0.0 }
 0x1f5   :  { %240 = vadd.xlane.f32.xlu0 %v239_v43 }
 0x1f6   :  { %v238_v44 = vmul.f32 %v236_v42, %v236_v42 }
 0x1f8   :  { %v242_v45 = vsel %vm225_vm4, %v238_v44, 0.0 }
 0x1f9   :  { %243 = vadd.xlane.f32.xlu1 %v242_v45 }
 0x282   :  { %v241_v52 = vpop.xlane.xlu0 %240 }
 0x283   :  { %v245_v53 = vmul.f32 0.03125, %v241_v52  ;;  %v139_v52 = vadd.s32 8, %v6384_v4 }
 0x285   :  { %v247_v54 = vadd.f32 1e-05, %v245_v53  ;;  %v147_v53 = vshra.s32 %v139_v52, 3 }
 0x286   :  { %v244_v55 = vpop.xlane.xlu1 %243 }
 0x287   :  { %6126 = vrsqrt.f32 %v247_v54  ;;  %v246_v56 = vmul.f32 0.03125, %v244_v55  ;;  %v154_v54 = vshra.s32 %v6421_v22, 3  ;;  %v164_v55 = vand.u32 7, %v139_v52 }
 0x289   :  { %v248_v57 = vadd.f32 1e-05, %v246_v56  ;;  %v171_v56 = vand.u32 7, %v6421_v22  ;;  %vm6537_vm8 = vcmp.eq.s32.totalorder %v147_v53, %v154_v54 }
 0x28b   :  { %6128 = vrsqrt.f32 %v248_v57  ;;  %v146_v57 = vshra.s32 %v6384_v4, 3  ;;  %vm173_vm9 = vcmp.ge.s32.totalorder %v164_v55, %v171_v56 }
 0x28c   :  { %vm181_vm12 = vmand %vm6537_vm8, %vm173_vm9 }
 0x28d   :  { %vm155_vm10 = vcmp.eq.s32.totalorder %v146_v57, %v154_v54 }
 0x291   :  { %v6127_v58 = vpop.eup %6126 }
 0x292   :  { %v251_v60 = vmul.f32 %v6127_v58, %v235_v38  ;;  %v163_v58 = vand.u32 7, %v6384_v4 }
 0x294   :  { %v257_v62 = vmul.f32 %v4446_v59, %v251_v60  ;;  %v141_v60 = vadd.s32 24, %v6384_v4  ;;  %vm172_vm11 = vcmp.ge.s32.totalorder %v163_v58, %v171_v56 }
 0x295   :  { %v6129_v63 = vpop.eup %6128  ;;  %vm180_vm13 = vmand %vm155_vm10, %vm172_vm11 }
 0x296   :  { %v252_v0 = vmul.f32 %v6129_v63, %v236_v42  ;;  %v263_v1 = vadd.f32 %v4447_v61, %v257_v62  ;;  %v6331_v62 = vmov -1e+09  }
 0x297   :  { %v197_v63 = vsel %vm196_vm0, 0.0, %v6331_v62  ;;  %v6556_v3 = vsel %vm180_vm13, 0.0, %v6331_v62 }
 0x298   :  { %v258_v2 = vmul.f32 %v4446_v59, %v252_v0  ;;  %5021 = vmatprep.mubr.msk.f32.mxu1 %vm225_vm4, %v263_v1  ;;  %v140_v59 = vadd.s32 16, %v6384_v4  ;;  %v149_v1 = vshra.s32 %v141_v60, 3 }
 0x29a   :  { %v264_v5 = vadd.f32 %v4447_v61, %v258_v2  ;;  %v148_v0 = vshra.s32 %v140_v59, 3  ;;  %v165_v2 = vand.u32 7, %v140_v59  ;;  %vm6562_vm15 = vcmp.eq.s32.totalorder %v149_v1, %v154_v54 }
 0x29c   :  { %5022 = vmatmul.mubr.msk.f32.vlgmr.msra.gmra.mrb[0].mxu1 %vm225_vm4, %v264_v5  ;;  %v142_v5 = vadd.s32 32, %v6384_v4  ;;  %vm6558_vm14 = vcmp.eq.s32.totalorder %v148_v0, %v154_v54  ;;  %vm6566_vm0 = vcmp.ge.s32.totalorder %v165_v2, %v171_v56 }
 0x29d   :  { %vm182_vm3 = vmand %vm6558_vm14, %vm6566_vm0 }
 0x36f   :  { %v5023_v7 = vpop.f32.mrb[0].mxu1 }
 0x370   :  { %v352_v8 = vadd.f32 %v5023_v7, %v4448_v6  ;;  %v346_v9 = vpop.f32.mrb[1].mxu1  ;;  %v143_v7 = vadd.s32 40, %v6384_v4 }
 0x371   :  { %v347_v10 = vadd.f32 %v4448_v6, %v346_v9  ;;  %v166_v6 = vand.u32 7, %v141_v60  ;;  %v6553_v9 = vsel %vm181_vm12, 0.0, %v6331_v62 }
 0x372   :  { %357 = vst.msk [vmem:[#allocation2 + $0x8] sm:$0xff] %vm355_vm5, %v352_v8  ;;  %362 = vrot.lane.b32.xlu1 %v352_v8, %s6327_s18 }
 0x373   :  { %356 = vst.msk [vmem:[#allocation2] sm:$0xff] %vm355_vm5, %v347_v10  ;;  %376 = vrot.lane.b32.xlu0 %v347_v10, %s6328_s19  ;;  %vm6571_vm2 = vcmp.ge.s32.totalorder %v166_v6, %v171_v56 }
 0x374   :  { %vm183_vm8 = vmand %vm6562_vm15, %vm6571_vm2 }
 0x376   :  { %360 = vrot.lane.b32.xlu1 %v347_v10, %s6327_s18 }
 0x379   :  { %v385_v12 = vld [vmem:[#allocation2 + $0x8] sm:$0xff] }
 0x37a   :  { %368 = vrot.lane.b32.xlu1 %v347_v10, %s6329_s20  ;;  %v384_v11 = vld [vmem:[#allocation2] sm:$0xff] }
 0x37b   :  { %5040 = vmatprep.mubr.msk.f32.mxu1 %vm416_vm6, %v384_v11  ;;  %v6479_v14 = vpack.i.bf16 %v385_v12, %v384_v11 }
 0x37e   :  { %370 = vrot.lane.b32.xlu1 %v352_v8, %s6329_s20 }
 0x382   :  { %378 = vrot.lane.b32.xlu1 %v352_v8, %s6328_s19  ;;  %v6550_v8 = vrot.slane %v197_v63, %v201_v13  ;;  %v150_v13 = vshra.s32 %v142_v5, 3 }
 0x384   :  { %vm6592_vm9 = vcmp.eq.s32.totalorder %v150_v13, %v154_v54 }
 0x386   :  { %5966 = vrot.lane.b32.xlu1 %v6479_v14, %s6330_s21 }
 0x3e4   :  { %v363_v15 = vpop.permute.xlu1 %362 }
 0x3e5   :  { %367 = vst.msk [vmem:[#allocation2 + $0x18] sm:$0xff] %vm355_vm5, %v363_v15  ;;  %v377_v16 = vpop.permute.xlu0 %376  ;;  %v167_v15 = vand.u32 7, %v142_v5 }
 0x3e6   :  { %382 = vst.msk [vmem:[#allocation2 + $0x30] sm:$0xff] %vm355_vm5, %v377_v16  ;;  %v144_v16 = vadd.s32 48, %v6384_v4 }
 0x3e7   :  { %vm6596_vm10 = vcmp.ge.s32.totalorder %v167_v15, %v171_v56 }
 0x3e8   :  { %v361_v18 = vpop.permute.xlu1 %360  ;;  %vm184_vm13 = vmand %vm6592_vm9, %vm6596_vm10  ;;  %vm821_vm10 = vcmask 130112  }
 0x3e9   :  { %366 = vst.msk [vmem:[#allocation2 + $0x10] sm:$0xff] %vm355_vm5, %v361_v18  ;;  %v6650_v59 = vsel %vm184_vm13, 0.0, %v6331_v62 }
 0x3ea   :  { %v6672_v0 = vadd.f32 %v6550_v8, %v6650_v59 }
 0x3ec   :  { %v369_v19 = vpop.permute.xlu1 %368  ;;  %v387_v23 = vld [vmem:[#allocation2 + $0x18] sm:$0xff] }
 0x3ed   :  { %374 = vst.msk [vmem:[#allocation2 + $0x20] sm:$0xff] %vm355_vm5, %v369_v19  ;;  %v390_v37 = vld [vmem:[#allocation2 + $0x30] sm:$0xff]  ;;  %v151_v19 = vshra.s32 %v143_v7, 3 }
 0x3ef   :  { %vm6600_vm11 = vcmp.eq.s32.totalorder %v151_v19, %v154_v54 }
 0x3f0   :  { %v371_v20 = vpop.permute.xlu1 %370  ;;  %v386_v21 = vld [vmem:[#allocation2 + $0x10] sm:$0xff] }
 0x3f1   :  { %375 = vst.msk [vmem:[#allocation2 + $0x28] sm:$0xff] %vm355_vm5, %v371_v20  ;;  %v6488_v25 = vpack.i.bf16 %v387_v23, %v386_v21  ;;  %v168_v20 = vand.u32 7, %v143_v7 }
 0x3f3   :  { %5971 = vrot.lane.b32.xlu1 %v6488_v25, %s6330_s21  ;;  %vm6604_vm12 = vcmp.ge.s32.totalorder %v168_v20, %v171_v56 }
 0x3f4   :  { %v379_v26 = vpop.permute.xlu1 %378  ;;  %v388_v28 = vld [vmem:[#allocation2 + $0x20] sm:$0xff]  ;;  %vm185_vm14 = vmand %vm6600_vm11, %vm6604_vm12  ;;  %vm832_vm11 = vcmask 195712   ;;  %vm843_vm12 = vcmask 261312  }
 0x3f5   :  { %383 = vst.msk [vmem:[#allocation2 + $0x38] sm:$0xff] %vm355_vm5, %v379_v26  ;;  %v6582_v26 = vadd.f32 %v6550_v8, %v6556_v3 }
 0x3f8   :  { %v5967_v27 = vpop.permute.xlu1 %5966  ;;  %v389_v29 = vld [vmem:[#allocation2 + $0x28] sm:$0xff] }
 0x3f9   :  { %v5969_v30 = vunpack.i.h.bf16 %v5967_v27  ;;  %v5968_v31 = vunpack.i.l.bf16 %v5967_v27  ;;  %v6493_v34 = vpack.i.bf16 %v389_v29, %v388_v28 }
 0x3fb   :  { %v5552_v36 = vpack.c.bf16 %v5969_v30, %v5968_v31  ;;  %5976 = vrot.lane.b32.xlu1 %v6493_v34, %s6330_s21 }
 0x3fc   :  { %v391_v38 = vld [vmem:[#allocation2 + $0x38] sm:$0xff] }
 0x3fd   :  { %5554 = vmatprep.subr.msk.bf16.mxu1 %vm6497_vm7, %v5552_v36  ;;  %v6505_v39 = vpack.i.bf16 %v391_v38, %v390_v37 }
 0x3fe   :  { %5557 = vmatpush3.bf16.xpose.msk.msra.mxu1 %vm6497_vm7, %v5552_v36 }
 0x3ff   :  { %5981 = vrot.lane.b32.xlu1 %v6505_v39, %s6330_s21 }
 0x465   :  { %v5972_v40 = vpop.permute.xlu1 %5971 }
 0x466   :  { %v5974_v41 = vunpack.i.h.bf16 %v5972_v40  ;;  %v5973_v42 = vunpack.i.l.bf16 %v5972_v40 }
 0x468   :  { %v5558_v43 = vpack.c.bf16 %v5974_v41, %v5973_v42  ;;  %v6609_v42 = vsel %vm182_vm3, 0.0, %v6331_v62 }
 0x46a   :  { %5560 = vmatprep.subr.msk.bf16.mxu1 %vm6497_vm7, %v5558_v43 }
 0x46b   :  { %5563 = vmatpush3.bf16.xpose.msk.msra.mxu1 %vm6497_vm7, %v5558_v43 }
 0x46d   :  { %v5977_v44 = vpop.permute.xlu1 %5976 }
 0x46e   :  { %v5979_v45 = vunpack.i.h.bf16 %v5977_v44  ;;  %v5978_v46 = vunpack.i.l.bf16 %v5977_v44  ;;  %v6612_v44 = vsel %vm183_vm8, 0.0, %v6331_v62 }
 0x46f   :  { %v6647_v58 = vadd.f32 %v6550_v8, %v6612_v44 }
 0x470   :  { %v5564_v47 = vpack.c.bf16 %v5979_v45, %v5978_v46 }
 0x471   :  { %v5982_v48 = vpop.permute.xlu1 %5981 }
 0x472   :  { %v5984_v49 = vunpack.i.h.bf16 %v5982_v48  ;;  %v5983_v50 = vunpack.i.l.bf16 %v5982_v48  ;;  %5566 = vmatprep.subr.msk.bf16.mxu1 %vm6497_vm7, %v5564_v47 }
 0x473   :  { %5569 = vmatpush3.bf16.xpose.msk.msra.mxu1 %vm6497_vm7, %v5564_v47 }
 0x474   :  { %v5570_v51 = vpack.c.bf16 %v5984_v49, %v5983_v50  ;;  %v6634_v50 = vadd.f32 %v6550_v8, %v6609_v42 }
 0x476   :  { %5572 = vmatprep.subr.msk.bf16.mxu1 %vm6497_vm7, %v5570_v51 }
 0x47b   :  { %5575 = vmatpush3.bf16.xpose.msk.msra.mxu1 %vm6497_vm7, %v5570_v51 }
 0x482   :  { %5041 = vmatmul.mubr.msk.f32.vlgmr.msra.gmra.mrb[2].mxu1 %vm416_vm6, %v385_v12 }
 0x483   :  { %5043 = vmatprep.mubr.msk.f32.mxu1 %vm416_vm6, %v386_v21  ;;  %v145_v21 = vadd.s32 56, %v6384_v4 }
 0x486   :  { %5044 = vmatmul.mubr.msk.f32.gmra.mrb[4].mxu1 %vm416_vm6, %v387_v23  ;;  %v6578_v23 = vadd.f32 %v6550_v8, %v6553_v9 }
 0x487   :  { %5046 = vmatprep.mubr.msk.f32.mxu1 %vm416_vm6, %v388_v28  ;;  %v152_v28 = vshra.s32 %v144_v16, 3 }
 0x489   :  { %vm6623_vm15 = vcmp.eq.s32.totalorder %v152_v28, %v154_v54 }
 0x48a   :  { %5047 = vmatmul.mubr.msk.f32.gmra.mrb[6].mxu1 %vm416_vm6, %v389_v29  ;;  %v169_v29 = vand.u32 7, %v144_v16 }
 0x48b   :  { %5049 = vmatprep.mubr.msk.f32.mxu1 %vm416_vm6, %v390_v37  ;;  %v153_v37 = vshra.s32 %v145_v21, 3 }
 0x48c   :  { %vm6627_vm0 = vcmp.ge.s32.totalorder %v169_v29, %v171_v56 }
 0x48d   :  { %vm6636_vm2 = vcmp.eq.s32.totalorder %v153_v37, %v154_v54  ;;  %vm186_vm8 = vmand %vm6623_vm15, %vm6627_vm0 }
 0x48e   :  { %5050 = vmatmul.mubr.msk.f32.gmra.mrb[8].mxu1 %vm416_vm6, %v391_v38  ;;  %v170_v38 = vand.u32 7, %v145_v21  ;;  %v6680_v6 = vsel %vm186_vm8, 0.0, %v6331_v62 }
 0x48f   :  { %v6689_v16 = vadd.f32 %v6550_v8, %v6680_v6 }
 0x490   :  { %vm6640_vm3 = vcmp.ge.s32.totalorder %v170_v38, %v171_v56  ;;  %v6659_v56 = vsel %vm185_vm14, 0.0, %v6331_v62 }
 0x491   :  { %vm187_vm9 = vmand %vm6636_vm2, %vm6640_vm3  ;;  %v6677_v5 = vadd.f32 %v6550_v8, %v6659_v56  ;;  %vm4387_vm3 = vcmask 7168  }
 0x492   :  { %v6684_v12 = vsel %vm187_vm9, 0.0, %v6331_v62  ;;  %vm4424_vm9 = vcmp.eq.s32.totalorder %v6421_v22, 1 }
 0x493   :  { %v6694_v20 = vadd.f32 %v6550_v8, %v6684_v12 }
 0x555   :  { %v5042_v30 = vpop.f32.mrb[2].mxu1 }
 0x556   :  { %v555_v40 = vmul.f32 0.35355338, %v5042_v30  ;;  %v515_v41 = vpop.f32.mrb[3].mxu1 }
 0x557   :  { %v554_v43 = vmul.f32 0.35355338, %v515_v41 }
 0x558   :  { %v563_v45 = vadd.f32 %v555_v40, %v6578_v23 }
 0x559   :  { %v5045_v48 = vpop.f32.mrb[4].mxu1  ;;  %v562_v49 = vadd.f32 %v554_v43, %v6582_v26 }
 0x55a   :  { %v557_v53 = vmul.f32 0.35355338, %v5045_v48  ;;  %v525_v55 = vpop.f32.mrb[5].mxu1  ;;  %v573_v57 = vsel %vm55_vm1, %v563_v45, -inf }
 0x55b   :  { %v556_v60 = vmul.f32 0.35355338, %v525_v55  ;;  %574 = vmax.xlane.f32.xlu1 %v573_v57  ;;  %v570_v54 = vsel %vm55_vm1, %v562_v49, -inf }
 0x55c   :  { %571 = vmax.xlane.f32.xlu0 %v570_v54  ;;  %v565_v2 = vadd.f32 %v557_v53, %v6647_v58 }
 0x55d   :  { %v5048_v61 = vpop.f32.mrb[6].mxu1  ;;  %v564_v63 = vadd.f32 %v556_v60, %v6634_v50 }
 0x55e   :  { %v535_v1 = vpop.f32.mrb[7].mxu1  ;;  %v559_v7 = vmul.f32 0.35355338, %v5048_v61  ;;  %v579_v19 = vsel %vm55_vm1, %v565_v2, -inf }
 0x55f   :  { %v558_v10 = vmul.f32 0.35355338, %v535_v1  ;;  %v576_v11 = vsel %vm55_vm1, %v564_v63, -inf }
 0x560   :  { %577 = vmax.xlane.f32.xlu0 %v576_v11  ;;  %v567_v27 = vadd.f32 %v559_v7, %v6677_v5 }
 0x561   :  { %v5051_v13 = vpop.f32.mrb[8].mxu1  ;;  %v566_v15 = vadd.f32 %v558_v10, %v6672_v0 }
 0x562   :  { %v545_v18 = vpop.f32.mrb[9].mxu1  ;;  %v561_v21 = vmul.f32 0.35355338, %v5051_v13  ;;  %v585_v29 = vsel %vm55_vm1, %v567_v27, -inf }
 0x563   :  { %v560_v4 = vmul.f32 0.35355338, %v545_v18  ;;  %v582_v62 = vsel %vm55_vm1, %v566_v15, -inf }
 0x564   :  { %580 = vmax.xlane.f32.xlu0 %v579_v19  ;;  %583 = vmax.xlane.f32.xlu1 %v582_v62  ;;  %v569_v31 = vadd.f32 %v561_v21, %v6694_v20 }
 0x565   :  { %v568_v28 = vadd.f32 %v560_v4, %v6689_v16 }
 0x566   :  { %v591_v8 = vsel %vm55_vm1, %v569_v31, -inf }
 0x567   :  { %v588_v30 = vsel %vm55_vm1, %v568_v28, -inf }
 0x568   :  { %586 = vmax.xlane.f32.xlu0 %v585_v29  ;;  %589 = vmax.xlane.f32.xlu1 %v588_v30 }
 0x56c   :  { %592 = vmax.xlane.f32.xlu0 %v591_v8 }
 0x579   :  { %5986 = vrot.lane.b32.xlu1 %v6479_v14, %s6332_s22 }
 0x5e8   :  { %v575_v36 = vpop.xlane.xlu1 %574 }
 0x5e9   :  { %v595_v37 = vsub.f32 %v563_v45, %v575_v36  ;;  %v572_v38 = vpop.xlane.xlu0 %571 }
 0x5ea   :  { %v594_v40 = vsub.f32 %v562_v49, %v572_v38 }
 0x5eb   :  { %v604_v41 = vmul.f32 1.442695, %v595_v37 }
 0x5ec   :  { %v602_v43 = vmul.f32 1.442695, %v594_v40 }
 0x5ed   :  { %6130 = vpow2.f32 %v604_v41  ;;  %v578_v46 = vpop.xlane.xlu0 %577 }
 0x5ee   :  { %6132 = vpow2.f32 %v602_v43  ;;  %v596_v47 = vsub.f32 %v564_v63, %v578_v46 }
 0x5f0   :  { %v606_v48 = vmul.f32 1.442695, %v596_v47 }
 0x5f1   :  { %v581_v51 = vpop.xlane.xlu0 %580  ;;  %v584_v52 = vpop.xlane.xlu1 %583 }
 0x5f2   :  { %6134 = vpow2.f32 %v606_v48  ;;  %v597_v53 = vsub.f32 %v565_v2, %v581_v51  ;;  %v598_v55 = vsub.f32 %v566_v15, %v584_v52 }
 0x5f4   :  { %v608_v57 = vmul.f32 1.442695, %v597_v53  ;;  %v610_v60 = vmul.f32 1.442695, %v598_v55 }
 0x5f5   :  { %v587_v54 = vpop.xlane.xlu0 %586  ;;  %v590_v14 = vpop.xlane.xlu1 %589 }
 0x5f6   :  { %6136 = vpow2.f32 %v608_v57  ;;  %v599_v45 = vsub.f32 %v567_v27, %v587_v54  ;;  %v600_v7 = vsub.f32 %v568_v28, %v590_v14 }
 0x5f7   :  { %v6705_v61 = vpop.eup %6130  ;;  %6138 = vpow2.f32 %v610_v60 }
 0x5f8   :  { %v6133_v49 = vpop.eup %6132  ;;  %v612_v1 = vmul.f32 1.442695, %v599_v45  ;;  %v621_v63 = vsel %vm55_vm1, %v6705_v61, 0.0  ;;  %v614_v21 = vmul.f32 1.442695, %v600_v7 }
 0x5f9   :  { %622 = vadd.xlane.f32.xlu0 %v621_v63  ;;  %v593_v10 = vpop.xlane.xlu0 %592  ;;  %v5987_v11 = vpop.permute.xlu1 %5986  ;;  %v618_v2 = vsel %vm55_vm1, %v6133_v49, 0.0 }
 0x5fa   :  { %6140 = vpow2.f32 %v612_v1  ;;  %v601_v13 = vsub.f32 %v569_v31, %v593_v10  ;;  %v5989_v15 = vunpack.i.h.bf16 %v5987_v11  ;;  %v5988_v18 = vunpack.i.l.bf16 %v5987_v11  ;;  %619 = vadd.xlane.f32.xlu1 %v618_v2 }
 0x5fc   :  { %v6710_v19 = vpop.eup %6134  ;;  %v616_v4 = vmul.f32 1.442695, %v601_v13  ;;  %v5576_v62 = vpack.c.bf16 %v5989_v15, %v5988_v18 }
 0x5fd   :  { %v624_v27 = vsel %vm55_vm1, %v6710_v19, 0.0 }
 0x5fe   :  { %6142 = vpow2.f32 %v616_v4  ;;  %625 = vadd.xlane.f32.xlu1 %v624_v27  ;;  %5577 = vmatprep.subr.bf16.mxu0 %v5576_v62 }
 0x5ff   :  { %5579 = vmatpush3.bf16.msra.mxu0 %v5576_v62  ;;  %6144 = vpow2.f32 %v614_v21 }
 0x600   :  { %v6714_v28 = vpop.eup %6136 }
 0x601   :  { %v6716_v29 = vpop.eup %6138  ;;  %v627_v30 = vsel %vm55_vm1, %v6714_v28, 0.0 }
 0x602   :  { %628 = vadd.xlane.f32.xlu0 %v627_v30  ;;  %v630_v31 = vsel %vm55_vm1, %v6716_v29, 0.0 }
 0x603   :  { %631 = vadd.xlane.f32.xlu1 %v630_v31 }
 0x604   :  { %v6722_v8 = vpop.eup %6140 }
 0x605   :  { %v633_v36 = vsel %vm55_vm1, %v6722_v8, 0.0 }
 0x606   :  { %634 = vadd.xlane.f32.xlu0 %v633_v36 }
 0x608   :  { %v6726_v37 = vpop.eup %6142 }
 0x609   :  { %v639_v38 = vsel %vm55_vm1, %v6726_v37, 0.0  ;;  %v6145_v40 = vpop.eup %6144 }
 0x60a   :  { %640 = vadd.xlane.f32.xlu0 %v639_v38  ;;  %v636_v41 = vsel %vm55_vm1, %v6145_v40, 0.0 }
 0x60e   :  { %637 = vadd.xlane.f32.xlu0 %v636_v41 }
 0x614   :  { %5996 = vrot.lane.b32.xlu1 %v6493_v34, %s6332_s22 }
 0x618   :  { %6001 = vrot.lane.b32.xlu1 %v6505_v39, %s6332_s22 }
 0x624   :  { %5991 = vrot.lane.b32.xlu0 %v6488_v25, %s6332_s22 }
 0x686   :  { %v623_v46 = vpop.xlane.xlu0 %622 }
 0x687   :  { %v620_v43 = vpop.xlane.xlu1 %619 }
 0x688   :  { %6146 = vrcp.f32 %v620_v43  ;;  %v851_v43 = vld [vmem:[%s7861_s3 + $0x18] sm:$0xff] }
 0x689   :  { %6148 = vrcp.f32 %v623_v46 }
 0x68b   :  { %v626_v47 = vpop.xlane.xlu1 %625 }
 0x68c   :  { %6150 = vrcp.f32 %v626_v47 }
 0x68f   :  { %v629_v48 = vpop.xlane.xlu0 %628 }
 0x690   :  { %v632_v55 = vpop.xlane.xlu1 %631  ;;  %6152 = vrcp.f32 %v629_v48 }
 0x691   :  { %6154 = vrcp.f32 %v632_v55 }
 0x692   :  { %v6147_v51 = vpop.eup %6146 }
 0x693   :  { %v635_v52 = vpop.xlane.xlu0 %634  ;;  %v650_v53 = vmul.f32 %v6147_v51, %v6133_v49  ;;  %v6149_v2 = vpop.eup %6148 }
 0x694   :  { %v5997_v60 = vpop.permute.xlu1 %5996  ;;  %6156 = vrcp.f32 %v635_v52  ;;  %v651_v15 = vmul.f32 %v6149_v2, %v6705_v61 }
 0x695   :  { %5068 = vmatprep.mubr.msk.f32.mxu0 %vm55_vm1, %v650_v53  ;;  %v5999_v14 = vunpack.i.h.bf16 %v5997_v60  ;;  %v5998_v39 = vunpack.i.l.bf16 %v5997_v60 }
 0x696   :  { %v6151_v13 = vpop.eup %6150 }
 0x697   :  { %v641_v57 = vpop.xlane.xlu0 %640  ;;  %v5584_v11 = vpack.c.bf16 %v5999_v14, %v5998_v39  ;;  %v652_v21 = vmul.f32 %v6151_v13, %v6710_v19 }
 0x698   :  { %v6002_v25 = vpop.permute.xlu1 %6001 }
 0x699   :  { %v6004_v63 = vunpack.i.h.bf16 %v6002_v25  ;;  %v6003_v10 = vunpack.i.l.bf16 %v6002_v25  ;;  %v4475_v25 = vld [vmem:[%s7860_s6 + $0x4] ss:$0 sm:$0xff] }
 0x69a   :  { %v6153_v18 = vpop.eup %6152 }
 0x69b   :  { %v638_v34 = vpop.xlane.xlu0 %637  ;;  %v5588_v49 = vpack.c.bf16 %v6004_v63, %v6003_v10  ;;  %v6155_v4 = vpop.eup %6154  ;;  %v653_v62 = vmul.f32 %v6153_v18, %v6714_v28  ;;  %v848_v28 = vld [vmem:[%s7861_s3] sm:$0xff] }
 0x69c   :  { %6158 = vrcp.f32 %v638_v34  ;;  %v654_v30 = vmul.f32 %v6155_v4, %v6716_v29  ;;  %v849_v29 = vld [vmem:[%s7861_s3 + $0x8] sm:$0xff] }
 0x69d   :  { %6160 = vrcp.f32 %v641_v57  ;;  %v5592_v41 = vpack.c.bf16 %v849_v29, %v848_v28  ;;  %v983_v29 = vld [vmem:[%s7862_s4 + $0x18] sm:$0xff] }
 0x69e   :  { %v6157_v27 = vpop.eup %6156 }
 0x69f   :  { %v5992_v54 = vpop.permute.xlu0 %5991  ;;  %v655_v61 = vmul.f32 %v6157_v27, %v6722_v8 }
 0x6a0   :  { %v5994_v45 = vunpack.i.h.bf16 %v5992_v54  ;;  %v5993_v1 = vunpack.i.l.bf16 %v5992_v54 }
 0x6a2   :  { %v5580_v7 = vpack.c.bf16 %v5994_v45, %v5993_v1 }
 0x6a4   :  { %5581 = vmatprep.subr.bf16.mxu0 %v5580_v7 }
 0x6a5   :  { %5583 = vmatpush3.bf16.msra.mxu0 %v5580_v7 }
 0x6a6   :  { %5585 = vmatprep.subr.bf16.mxu0 %v5584_v11  ;;  %v6159_v31 = vpop.eup %6158 }
 0x6a7   :  { %v6161_v36 = vpop.eup %6160  ;;  %v656_v38 = vmul.f32 %v6159_v31, %v6145_v40 }
 0x6a8   :  { %v657_v19 = vmul.f32 %v6161_v36, %v6726_v37  ;;  %v850_v37 = vld [vmem:[%s7861_s3 + $0x10] sm:$0xff]  ;;  %v980_v36 = vld [vmem:[%s7862_s4] sm:$0xff] }
 0x6a9   :  { %5587 = vmatpush3.bf16.msra.mxu0 %v5584_v11  ;;  %v5596_v46 = vpack.c.bf16 %v851_v43, %v850_v37 }
 0x6aa   :  { %5589 = vmatprep.subr.bf16.mxu0 %v5588_v49 }
 0x6ad   :  { %5591 = vmatpush3.bf16.msra.mxu0 %v5588_v49 }
 0x6ae   :  { %5593 = vmatprep.subr.bf16.mxu0 %v5592_v41 }
 0x6b0   :  { %5069 = vmatmul.mubr.msk.f32.vlgmr.msra.gmra.mrb[2].mxu0 %vm55_vm1, %v651_v15 }
 0x6b1   :  { %5071 = vmatprep.mubr.msk.f32.mxu0 %vm55_vm1, %v652_v21  ;;  %5595 = vmatpush3.bf16.msra.mxu0 %v5592_v41 }
 0x6b2   :  { %5597 = vmatprep.subr.bf16.mxu0 %v5596_v46 }
 0x6b4   :  { %5072 = vmatmul.mubr.msk.f32.gmra.mrb[4].mxu0 %vm55_vm1, %v653_v62 }
 0x6b5   :  { %5074 = vmatprep.mubr.msk.f32.mxu0 %vm55_vm1, %v654_v30  ;;  %5599 = vmatpush3.bf16.msra.mxu0 %v5596_v46 }
 0x6b8   :  { %5075 = vmatmul.mubr.msk.f32.gmra.mrb[6].mxu0 %vm55_vm1, %v655_v61 }
 0x6b9   :  { %5077 = vmatprep.mubr.msk.f32.mxu0 %vm55_vm1, %v656_v38  ;;  %v981_v38 = vld [vmem:[%s7862_s4 + $0x8] sm:$0xff] }
 0x6ba   :  { %v5600_v28 = vpack.c.bf16 %v981_v38, %v980_v36  ;;  %v1102_v38 = vld [vmem:[%s7863_s5 + $0x70] sm:$0xff] }
 0x6bc   :  { %5078 = vmatmul.mubr.msk.f32.gmra.mrb[8].mxu0 %vm55_vm1, %v657_v19  ;;  %v982_v19 = vld [vmem:[%s7862_s4 + $0x10] sm:$0xff]  ;;  %5601 = vmatprep.subr.bf16.mxu0 %v5600_v28 }
 0x6bd   :  { %v5604_v41 = vpack.c.bf16 %v983_v29, %v982_v19  ;;  %v1103_v19 = vld [vmem:[%s7863_s5 + $0x78] sm:$0xff]  ;;  %v4480_v29 = vld [vmem:[%s7860_s6 + $0x7] ss:$0 sm:$0xff] }
 0x783   :  { %v5070_v8 = vpop.f32.mrb[2].mxu0 }
 0x784   :  { %812 = vst.msk [vmem:[#allocation3 + $0x8] sm:$0xff] %vm416_vm6, %v5070_v8  ;;  %v772_v40 = vpop.f32.mrb[3].mxu0  ;;  %v1088_v8 = vld [vmem:[%s7863_s5] sm:$0xff] }
 0x785   :  { %811 = vst.msk [vmem:[#allocation3] sm:$0xff] %vm416_vm6, %v772_v40  ;;  %v1089_v40 = vld [vmem:[%s7863_s5 + $0x8] sm:$0xff] }
 0x786   :  { %v5608_v37 = vpack.c.bf16 %v1089_v40, %v1088_v8 }
 0x787   :  { %v5073_v47 = vpop.f32.mrb[4].mxu0 }
 0x788   :  { %817 = vrot.lane.b32.xlu1 %v5073_v47, %s6333_s8  ;;  %v782_v48 = vpop.f32.mrb[5].mxu0  ;;  %5609 = vmatprep.subr.bf16.mxu1 %v5608_v37 }
 0x789   :  { %5611 = vmatpush3.bf16.msra.mxu1 %v5608_v37 }
 0x78b   :  { %v5076_v51 = vpop.f32.mrb[6].mxu0 }
 0x78c   :  { %815 = vrot.lane.b32.xlu1 %v782_v48, %s6333_s8  ;;  %v792_v52 = vpop.f32.mrb[7].mxu0 }
 0x78d   :  { %826 = vrot.lane.b32.xlu0 %v792_v52, %s6334_s9 }
 0x78f   :  { %v5079_v53 = vpop.f32.mrb[8].mxu0 }
 0x790   :  { %828 = vrot.lane.b32.xlu1 %v5076_v51, %s6334_s9  ;;  %v802_v55 = vpop.f32.mrb[9].mxu0 }
 0x791   :  { %837 = vrot.lane.b32.xlu0 %v802_v55, %s6335_s10  ;;  %v4478_v55 = vld [vmem:[%s7860_s6 + $0x2] ss:$0 sm:$0xff] }
 0x794   :  { %839 = vrot.lane.b32.xlu1 %v5079_v53, %s6335_s10 }
 0x7fa   :  { %v818_v57 = vpop.permute.xlu1 %817 }
 0x7fb   :  { %823 = vst.msk [vmem:[#allocation3 + $0x8] sm:$0xff] %vm821_vm10, %v818_v57 }
 0x7fe   :  { %v816_v60 = vpop.permute.xlu1 %815 }
 0x7ff   :  { %822 = vst.msk [vmem:[#allocation3] sm:$0xff] %vm821_vm10, %v816_v60  ;;  %v827_v34 = vpop.permute.xlu0 %826  ;;  %v4479_v60 = vld [vmem:[%s7860_s6 + $0x3] ss:$0 sm:$0xff] }
 0x800   :  { %833 = vst.msk [vmem:[#allocation3] sm:$0xff] %vm832_vm11, %v827_v34 }
 0x802   :  { %v829_v54 = vpop.permute.xlu1 %828 }
 0x803   :  { %834 = vst.msk [vmem:[#allocation3 + $0x8] sm:$0xff] %vm832_vm11, %v829_v54  ;;  %v838_v14 = vpop.permute.xlu0 %837 }
 0x804   :  { %844 = vst.msk [vmem:[#allocation3] sm:$0xff] %vm843_vm12, %v838_v14 }
 0x806   :  { %v840_v39 = vpop.permute.xlu1 %839 }
 0x807   :  { %845 = vst.msk [vmem:[#allocation3 + $0x8] sm:$0xff] %vm843_vm12, %v840_v39 }
 0x80b   :  { %v846_v45 = vld [vmem:[#allocation3] sm:$0xff] }
 0x80c   :  { %5088 = vmatprep.mubr.msk.f32.mxu0 %vm225_vm4, %v846_v45 }
 0x80e   :  { %v847_v1 = vld [vmem:[#allocation3 + $0x8] sm:$0xff] }
 0x80f   :  { %5089 = vmatmul.mubr.msk.f32.vlgmr.msra.gmra.mrb[10].mxu0 %vm225_vm4, %v847_v1 }
 0x810   :  { %5603 = vmatpush3.bf16.msra.mxu0 %v5600_v28  ;;  %v5636_v28 = vpack.c.bf16 %v1103_v19, %v1102_v38  ;;  %v4486_v19 = vld [vmem:[%s7859_s2 + $0x20] sm:$0xff] }
 0x811   :  { %5605 = vmatprep.subr.bf16.mxu0 %v5604_v41 }
 0x814   :  { %5607 = vmatpush3.bf16.msra.mxu0 %v5604_v41 }
 0x8e2   :  { %v5090_v7 = vpop.f32.mrb[10].mxu0 }
 0x8e3   :  { %v935_v63 = vadd.f32 %v5090_v7, %v4475_v25  ;;  %v929_v10 = vpop.f32.mrb[11].mxu0  ;;  %v1091_v7 = vld [vmem:[%s7863_s5 + $0x18] sm:$0xff] }
 0x8e4   :  { %v930_v11 = vadd.f32 %v4475_v25, %v929_v10  ;;  %v1090_v25 = vld [vmem:[%s7863_s5 + $0x10] sm:$0xff]  ;;  %v1092_v10 = vld [vmem:[%s7863_s5 + $0x20] sm:$0xff] }
 0x8e5   :  { %v6783_v49 = vadd.f32 %v935_v63, %v6437_v33  ;;  %v5612_v63 = vpack.c.bf16 %v1091_v7, %v1090_v25 }
 0x8e6   :  { %v6786_v2 = vadd.f32 %v930_v11, %v6435_v32  ;;  %v1093_v11 = vld [vmem:[%s7863_s5 + $0x28] sm:$0xff] }
 0x8e7   :  { %v945_v13 = vsel %vm225_vm4, %v6783_v49, 0.0  ;;  %5613 = vmatprep.subr.bf16.mxu1 %v5612_v63 }
 0x8e8   :  { %946 = vadd.xlane.f32.xlu1 %v945_v13  ;;  %v942_v15 = vsel %vm225_vm4, %v6786_v2, 0.0  ;;  %5615 = vmatpush3.bf16.msra.mxu1 %v5612_v63  ;;  %v5616_v13 = vpack.c.bf16 %v1093_v11, %v1092_v10  ;;  %v4483_v63 = vld [vmem:[%s7860_s6 + $0x5] ss:$0 sm:$0xff] }
 0x8e9   :  { %943 = vadd.xlane.f32.xlu0 %v942_v15  ;;  %v1094_v15 = vld [vmem:[%s7863_s5 + $0x30] sm:$0xff] }
 0x8ea   :  { %5617 = vmatprep.subr.bf16.mxu1 %v5616_v13 }
 0x8ec   :  { %5619 = vmatpush3.bf16.msra.mxu1 %v5616_v13 }
 0x975   :  { %v947_v18 = vpop.xlane.xlu1 %946 }
 0x976   :  { %v949_v21 = vmul.f32 0.03125, %v947_v18  ;;  %v944_v4 = vpop.xlane.xlu0 %943  ;;  %v1095_v18 = vld [vmem:[%s7863_s5 + $0x38] sm:$0xff] }
 0x977   :  { %v948_v62 = vmul.f32 0.03125, %v944_v4  ;;  %v1096_v4 = vld [vmem:[%s7863_s5 + $0x40] sm:$0xff] }
 0x978   :  { %v951_v27 = vsub.f32 %v6783_v49, %v949_v21  ;;  %v5620_v21 = vpack.c.bf16 %v1095_v18, %v1094_v15 }
 0x979   :  { %v950_v33 = vsub.f32 %v6786_v2, %v948_v62  ;;  %v1097_v62 = vld [vmem:[%s7863_s5 + $0x48] sm:$0xff] }
 0x97a   :  { %v953_v31 = vmul.f32 %v951_v27, %v951_v27  ;;  %5621 = vmatprep.subr.bf16.mxu1 %v5620_v21 }
 0x97b   :  { %v952_v30 = vmul.f32 %v950_v33, %v950_v33  ;;  %5623 = vmatpush3.bf16.msra.mxu1 %v5620_v21 }
 0x97c   :  { %v957_v61 = vsel %vm225_vm4, %v953_v31, 0.0  ;;  %v1100_v31 = vld [vmem:[%s7863_s5 + $0x60] sm:$0xff] }
 0x97d   :  { %v954_v32 = vsel %vm225_vm4, %v952_v30, 0.0  ;;  %v1099_v30 = vld [vmem:[%s7863_s5 + $0x58] sm:$0xff] }
 0x97e   :  { %955 = vadd.xlane.f32.xlu0 %v954_v32 }
 0x982   :  { %958 = vadd.xlane.f32.xlu0 %v957_v61  ;;  %v1101_v61 = vld [vmem:[%s7863_s5 + $0x68] sm:$0xff] }
 0x983   :  { %v5632_v36 = vpack.c.bf16 %v1101_v61, %v1100_v31 }
 0xa0b   :  { %v956_v43 = vpop.xlane.xlu0 %955 }
 0xa0c   :  { %v960_v46 = vmul.f32 0.03125, %v956_v43 }
 0xa0e   :  { %v962_v47 = vadd.f32 1e-05, %v960_v46 }
 0xa0f   :  { %v959_v48 = vpop.xlane.xlu0 %958 }
 0xa10   :  { %6162 = vrsqrt.f32 %v962_v47  ;;  %v961_v51 = vmul.f32 0.03125, %v959_v48 }
 0xa12   :  { %v963_v52 = vadd.f32 1e-05, %v961_v51 }
 0xa14   :  { %6164 = vrsqrt.f32 %v963_v52 }
 0xa1a   :  { %v6163_v53 = vpop.eup %6162 }
 0xa1b   :  { %v966_v57 = vmul.f32 %v6163_v53, %v950_v33  ;;  %v1098_v33 = vld [vmem:[%s7863_s5 + $0x50] sm:$0xff] }
 0xa1c   :  { %v5628_v32 = vpack.c.bf16 %v1099_v30, %v1098_v33 }
 0xa1d   :  { %v972_v34 = vmul.f32 %v4478_v55, %v966_v57 }
 0xa1e   :  { %v6165_v54 = vpop.eup %6164 }
 0xa1f   :  { %v967_v14 = vmul.f32 %v6165_v54, %v951_v27  ;;  %v978_v39 = vadd.f32 %v4479_v60, %v972_v34  ;;  %v5624_v27 = vpack.c.bf16 %v1097_v62, %v1096_v4 }
 0xa21   :  { %v973_v45 = vmul.f32 %v4478_v55, %v967_v14  ;;  %5099 = vmatprep.mubr.msk.f32.mxu0 %vm225_vm4, %v978_v39  ;;  %5625 = vmatprep.subr.bf16.mxu1 %v5624_v27 }
 0xa22   :  { %5627 = vmatpush3.bf16.msra.mxu1 %v5624_v27 }
 0xa23   :  { %v979_v1 = vadd.f32 %v4479_v60, %v973_v45  ;;  %5629 = vmatprep.subr.bf16.mxu1 %v5628_v32 }
 0xa25   :  { %5100 = vmatmul.mubr.msk.f32.vlgmr.msra.gmra.mrb[12].mxu0 %vm225_vm4, %v979_v1 }
 0xa26   :  { %5631 = vmatpush3.bf16.msra.mxu1 %v5628_v32 }
 0xa27   :  { %5633 = vmatprep.subr.bf16.mxu1 %v5632_v36 }
 0xa2a   :  { %5635 = vmatpush3.bf16.msra.mxu1 %v5632_v36 }
 0xa2b   :  { %5637 = vmatprep.subr.bf16.mxu1 %v5636_v28 }
 0xa2e   :  { %5639 = vmatpush3.bf16.msra.mxu1 %v5636_v28  ;;  %v4487_v28 = vld [vmem:[%s7859_s2 + $0x28] sm:$0xff] }
 0xaf8   :  { %v5101_v41 = vpop.f32.mrb[12].mxu0 }
 0xaf9   :  { %v1067_v8 = vadd.f32 %v5101_v41, %v4480_v29  ;;  %v1061_v40 = vpop.f32.mrb[13].mxu0  ;;  %v5640_v41 = vpack.c.bf16 %v4487_v28, %v4486_v19 }
 0xafa   :  { %v1062_v37 = vadd.f32 %v4480_v29, %v1061_v40  ;;  %v4488_v29 = vld [vmem:[%s7859_s2 + $0x30] sm:$0xff] }
 0xafb   :  { %v1073_v43 = vmul.f32 0.044715, %v1067_v8  ;;  %v1071_v1 = vmul.f32 0.5, %v1067_v8  ;;  %5641 = vmatprep.subr.bf16.mxu0 %v5640_v41 }
 0xafc   :  { %v1072_v46 = vmul.f32 0.044715, %v1062_v37  ;;  %v1070_v39 = vmul.f32 0.5, %v1062_v37  ;;  %5643 = vmatpush3.bf16.msra.mxu0 %v5640_v41 }
 0xafd   :  { %v1075_v47 = vmul.f32 %v1073_v43, %v1067_v8 }
 0xafe   :  { %v1074_v48 = vmul.f32 %v1072_v46, %v1062_v37 }
 0xaff   :  { %v1077_v51 = vmul.f32 %v1075_v47, %v1067_v8 }
 0xb00   :  { %v1076_v52 = vmul.f32 %v1074_v48, %v1062_v37 }
 0xb01   :  { %v1079_v53 = vadd.f32 %v1077_v51, %v1067_v8  ;;  %v4489_v8 = vld [vmem:[%s7859_s2 + $0x38] sm:$0xff] }
 0xb02   :  { %v1078_v55 = vadd.f32 %v1076_v52, %v1062_v37  ;;  %v5644_v40 = vpack.c.bf16 %v4489_v8, %v4488_v29 }
 0xb03   :  { %v1081_v57 = vmul.f32 0.7978846, %v1079_v53  ;;  %v4484_v53 = vld [vmem:[%s7860_s6 + $0x8] ss:$0 sm:$0xff] }
 0xb04   :  { %v1080_v60 = vmul.f32 0.7978846, %v1078_v55  ;;  %5645 = vmatprep.subr.bf16.mxu0 %v5644_v40 }
 0xb05   :  { %6166 = vtanh.f32 %v1081_v57  ;;  %5647 = vmatpush3.bf16.msra.mxu0 %v5644_v40 }
 0xb06   :  { %6168 = vtanh.f32 %v1080_v60 }
 0xb0f   :  { %v6167_v34 = vpop.eup %6166 }
 0xb10   :  { %v6169_v54 = vpop.eup %6168  ;;  %v1085_v14 = vadd.f32 1.0, %v6167_v34  ;;  %v4485_v34 = vld [vmem:[%s7860_s6 + $0x9] ss:$0 sm:$0xff] }
 0xb11   :  { %v1084_v45 = vadd.f32 1.0, %v6169_v54 }
 0xb12   :  { %v1087_v7 = vmul.f32 %v1085_v14, %v1071_v1  ;;  %v4490_v1 = vld [vmem:[%s7860_s6 + $0xe] ss:$0 sm:$0xff] }
 0xb13   :  { %v1086_v25 = vmul.f32 %v1084_v45, %v1070_v39 }
 0xb15   :  { %5134 = vmatprep.mubr.f32.mxu1 %v1086_v25 }
 0xb16   :  { %5135 = vmatmul.mubr.f32.vlgmr.msra.gmra.mrb[10].mxu1 %v1087_v7 }
 0xbe9   :  { %v5136_v10 = vpop.f32.mrb[10].mxu1 }
 0xbea   :  { %v1181_v11 = vadd.f32 %v5136_v10, %v4483_v63  ;;  %v1175_v13 = vpop.f32.mrb[11].mxu1 }
 0xbeb   :  { %v1176_v15 = vadd.f32 %v4483_v63, %v1175_v13 }
 0xbec   :  { %v6871_v18 = vadd.f32 %v1181_v11, %v6783_v49 }
 0xbed   :  { %v6874_v21 = vadd.f32 %v1176_v15, %v6786_v2 }
 0xbee   :  { %v1191_v4 = vsel %vm225_vm4, %v6871_v18, 0.0 }
 0xbef   :  { %1192 = vadd.xlane.f32.xlu0 %v1191_v4  ;;  %v1188_v62 = vsel %vm225_vm4, %v6874_v21, 0.0 }
 0xbf0   :  { %1189 = vadd.xlane.f32.xlu1 %v1188_v62 }
 0xc7c   :  { %v1193_v27 = vpop.xlane.xlu0 %1192 }
 0xc7d   :  { %v1195_v33 = vmul.f32 0.03125, %v1193_v27  ;;  %v1190_v30 = vpop.xlane.xlu1 %1189 }
 0xc7e   :  { %v1194_v32 = vmul.f32 0.03125, %v1190_v30 }
 0xc7f   :  { %v1197_v31 = vsub.f32 %v6871_v18, %v1195_v33 }
 0xc80   :  { %v1196_v49 = vsub.f32 %v6874_v21, %v1194_v32 }
 0xc81   :  { %v1199_v61 = vmul.f32 %v1197_v31, %v1197_v31 }
 0xc82   :  { %v1198_v36 = vmul.f32 %v1196_v49, %v1196_v49 }
 0xc83   :  { %v1203_v2 = vsel %vm225_vm4, %v1199_v61, 0.0 }
 0xc84   :  { %1204 = vadd.xlane.f32.xlu0 %v1203_v2  ;;  %v1200_v38 = vsel %vm225_vm4, %v1198_v36, 0.0 }
 0xc85   :  { %1201 = vadd.xlane.f32.xlu1 %v1200_v38 }
 0xd11   :  { %v1205_v37 = vpop.xlane.xlu0 %1204 }
 0xd12   :  { %v1207_v43 = vmul.f32 0.03125, %v1205_v37  ;;  %v1202_v46 = vpop.xlane.xlu1 %1201 }
 0xd13   :  { %v1206_v47 = vmul.f32 0.03125, %v1202_v46 }
 0xd14   :  { %v1209_v48 = vadd.f32 1e-05, %v1207_v43 }
 0xd15   :  { %v1208_v51 = vadd.f32 1e-05, %v1206_v47 }
 0xd16   :  { %6170 = vrsqrt.f32 %v1209_v48 }
 0xd17   :  { %6172 = vrsqrt.f32 %v1208_v51 }
 0xd20   :  { %v6171_v52 = vpop.eup %6170 }
 0xd21   :  { %v6173_v55 = vpop.eup %6172  ;;  %v1213_v57 = vmul.f32 %v6171_v52, %v1197_v31 }
 0xd22   :  { %v1212_v60 = vmul.f32 %v6173_v55, %v1196_v49 }
 0xd23   :  { %v1219_v54 = vmul.f32 %v4484_v53, %v1213_v57 }
 0xd24   :  { %v1218_v14 = vmul.f32 %v4484_v53, %v1212_v60 }
 0xd25   :  { %v1225_v45 = vadd.f32 %v4485_v34, %v1219_v54 }
 0xd26   :  { %v1224_v39 = vadd.f32 %v4485_v34, %v1218_v14 }
 0xd28   :  { %5145 = vmatprep.mubr.msk.f32.mxu0 %vm225_vm4, %v1224_v39 }
 0xd29   :  { %5146 = vmatmul.mubr.msk.f32.vlgmr.msra.gmra.mrb[14].mxu0 %vm225_vm4, %v1225_v45 }
 0xdfc   :  { %v5147_v25 = vpop.f32.mrb[14].mxu0 }
 0xdfd   :  { %v1314_v7 = vadd.f32 %v5147_v25, %v4490_v1  ;;  %v1308_v63 = vpop.f32.mrb[15].mxu0 }
 0xdfe   :  { %v1309_v10 = vadd.f32 %v4490_v1, %v1308_v63 }
 0xdff   :  { %1318 = vst.msk [vmem:[#allocation2 + $0x8] sm:$0xff] %vm355_vm5, %v1314_v7  ;;  %1323 = vrot.lane.b32.xlu0 %v1314_v7, %s6327_s18 }
 0xe00   :  { %1317 = vst.msk [vmem:[#allocation2] sm:$0xff] %vm355_vm5, %v1309_v10  ;;  %1321 = vrot.lane.b32.xlu1 %v1309_v10, %s6327_s18 }
 0xe03   :  { %1337 = vrot.lane.b32.xlu0 %v1309_v10, %s6328_s19 }
 0xe04   :  { %1329 = vrot.lane.b32.xlu1 %v1309_v10, %s6329_s20 }
 0xe06   :  { %v1346_v11 = vld [vmem:[#allocation2 + $0x8] sm:$0xff] }
 0xe07   :  { %v1345_v13 = vld [vmem:[#allocation2] sm:$0xff] }
 0xe08   :  { %1331 = vrot.lane.b32.xlu1 %v1314_v7, %s6329_s20  ;;  %5164 = vmatprep.mubr.msk.f32.mxu0 %vm416_vm6, %v1345_v13  ;;  %v6915_v15 = vpack.i.bf16 %v1346_v11, %v1345_v13 }
 0xe0a   :  { %6006 = vrot.lane.b32.xlu0 %v6915_v15, %s6330_s21 }
 0xe0c   :  { %1339 = vrot.lane.b32.xlu1 %v1314_v7, %s6328_s19 }
 0xe71   :  { %v1324_v4 = vpop.permute.xlu0 %1323 }
 0xe72   :  { %1328 = vst.msk [vmem:[#allocation2 + $0x18] sm:$0xff] %vm355_vm5, %v1324_v4  ;;  %v1322_v62 = vpop.permute.xlu1 %1321 }
 0xe73   :  { %1327 = vst.msk [vmem:[#allocation2 + $0x10] sm:$0xff] %vm355_vm5, %v1322_v62 }
 0xe75   :  { %v1338_v27 = vpop.permute.xlu0 %1337 }
 0xe76   :  { %1343 = vst.msk [vmem:[#allocation2 + $0x30] sm:$0xff] %vm355_vm5, %v1338_v27  ;;  %v1330_v33 = vpop.permute.xlu1 %1329 }
 0xe77   :  { %1335 = vst.msk [vmem:[#allocation2 + $0x20] sm:$0xff] %vm355_vm5, %v1330_v33 }
 0xe79   :  { %v1348_v30 = vld [vmem:[#allocation2 + $0x18] sm:$0xff] }
 0xe7a   :  { %v1332_v32 = vpop.permute.xlu1 %1331  ;;  %v1347_v31 = vld [vmem:[#allocation2 + $0x10] sm:$0xff] }
 0xe7b   :  { %1336 = vst.msk [vmem:[#allocation2 + $0x28] sm:$0xff] %vm355_vm5, %v1332_v32  ;;  %v6925_v49 = vpack.i.bf16 %v1348_v30, %v1347_v31 }
 0xe7c   :  { %v6007_v61 = vpop.permute.xlu0 %6006 }
 0xe7d   :  { %v6009_v36 = vunpack.i.h.bf16 %v6007_v61  ;;  %v6008_v2 = vunpack.i.l.bf16 %v6007_v61  ;;  %6011 = vrot.lane.b32.xlu1 %v6925_v49, %s6330_s21  ;;  %v1351_v8 = vld [vmem:[#allocation2 + $0x30] sm:$0xff] }
 0xe7e   :  { %v1340_v38 = vpop.permute.xlu1 %1339  ;;  %v1349_v28 = vld [vmem:[#allocation2 + $0x20] sm:$0xff] }
 0xe7f   :  { %v5648_v19 = vpack.c.bf16 %v6009_v36, %v6008_v2  ;;  %1344 = vst.msk [vmem:[#allocation2 + $0x38] sm:$0xff] %vm355_vm5, %v1340_v38 }
 0xe81   :  { %5650 = vmatprep.subr.msk.bf16.mxu0 %vm6497_vm7, %v5648_v19 }
 0xe82   :  { %5653 = vmatpush3.bf16.xpose.msk.msra.mxu0 %vm6497_vm7, %v5648_v19  ;;  %v1350_v29 = vld [vmem:[#allocation2 + $0x28] sm:$0xff] }
 0xe83   :  { %v6934_v41 = vpack.i.bf16 %v1350_v29, %v1349_v28 }
 0xe85   :  { %6016 = vrot.lane.b32.xlu0 %v6934_v41, %s6330_s21 }
 0xe86   :  { %v1352_v40 = vld [vmem:[#allocation2 + $0x38] sm:$0xff] }
 0xe87   :  { %v6938_v37 = vpack.i.bf16 %v1352_v40, %v1351_v8 }
 0xe89   :  { %6021 = vrot.lane.b32.xlu1 %v6938_v37, %s6330_s21 }
 0xeef   :  { %v6012_v43 = vpop.permute.xlu1 %6011 }
 0xef0   :  { %v6014_v46 = vunpack.i.h.bf16 %v6012_v43  ;;  %v6013_v47 = vunpack.i.l.bf16 %v6012_v43 }
 0xef2   :  { %v5654_v48 = vpack.c.bf16 %v6014_v46, %v6013_v47 }
 0xef4   :  { %5656 = vmatprep.subr.msk.bf16.mxu0 %vm6497_vm7, %v5654_v48 }
 0xef5   :  { %5659 = vmatpush3.bf16.xpose.msk.msra.mxu0 %vm6497_vm7, %v5654_v48 }
 0xef7   :  { %v6017_v51 = vpop.permute.xlu0 %6016 }
 0xef8   :  { %v6019_v52 = vunpack.i.h.bf16 %v6017_v51  ;;  %v6018_v53 = vunpack.i.l.bf16 %v6017_v51 }
 0xefa   :  { %v5660_v55 = vpack.c.bf16 %v6019_v52, %v6018_v53 }
 0xefb   :  { %v6022_v57 = vpop.permute.xlu1 %6021 }
 0xefc   :  { %v6024_v60 = vunpack.i.h.bf16 %v6022_v57  ;;  %v6023_v34 = vunpack.i.l.bf16 %v6022_v57  ;;  %5662 = vmatprep.subr.msk.bf16.mxu0 %vm6497_vm7, %v5660_v55 }
 0xefd   :  { %5665 = vmatpush3.bf16.xpose.msk.msra.mxu0 %vm6497_vm7, %v5660_v55 }
 0xefe   :  { %v5666_v54 = vpack.c.bf16 %v6024_v60, %v6023_v34 }
 0xf00   :  { %5668 = vmatprep.subr.msk.bf16.mxu0 %vm6497_vm7, %v5666_v54 }
 0xf05   :  { %5671 = vmatpush3.bf16.xpose.msk.msra.mxu0 %vm6497_vm7, %v5666_v54 }
 0xf0c   :  { %5165 = vmatmul.mubr.msk.f32.vlgmr.msra.gmra.mrb[16].mxu0 %vm416_vm6, %v1346_v11 }
 0xf0d   :  { %5167 = vmatprep.mubr.msk.f32.mxu0 %vm416_vm6, %v1347_v31 }
 0xf10   :  { %5168 = vmatmul.mubr.msk.f32.gmra.mrb[18].mxu0 %vm416_vm6, %v1348_v30 }
 0xf11   :  { %5170 = vmatprep.mubr.msk.f32.mxu0 %vm416_vm6, %v1349_v28 }
 0xf14   :  { %5171 = vmatmul.mubr.msk.f32.gmra.mrb[20].mxu0 %vm416_vm6, %v1350_v29 }
 0xf15   :  { %5173 = vmatprep.mubr.msk.f32.mxu0 %vm416_vm6, %v1351_v8 }
 0xf18   :  { %5174 = vmatmul.mubr.msk.f32.gmra.mrb[22].mxu0 %vm416_vm6, %v1352_v40 }
 0xfdf   :  { %v5166_v14 = vpop.f32.mrb[16].mxu0 }
 0xfe0   :  { %v1515_v39 = vmul.f32 0.35355338, %v5166_v14  ;;  %v1475_v45 = vpop.f32.mrb[17].mxu0 }
 0xfe1   :  { %v1514_v1 = vmul.f32 0.35355338, %v1475_v45 }
 0xfe2   :  { %v1523_v25 = vadd.f32 %v1515_v39, %v6578_v23 }
 0xfe3   :  { %v5169_v7 = vpop.f32.mrb[18].mxu0  ;;  %v1522_v63 = vadd.f32 %v1514_v1, %v6582_v26 }
 0xfe4   :  { %v1517_v10 = vmul.f32 0.35355338, %v5169_v7  ;;  %v1485_v11 = vpop.f32.mrb[19].mxu0  ;;  %v1533_v13 = vsel %vm55_vm1, %v1523_v25, -inf }
 0xfe5   :  { %v1516_v4 = vmul.f32 0.35355338, %v1485_v11  ;;  %1534 = vmax.xlane.f32.xlu1 %v1533_v13  ;;  %v1530_v62 = vsel %vm55_vm1, %v1522_v63, -inf }
 0xfe6   :  { %1531 = vmax.xlane.f32.xlu0 %v1530_v62  ;;  %v1525_v32 = vadd.f32 %v1517_v10, %v6647_v58 }
 0xfe7   :  { %v5172_v27 = vpop.f32.mrb[20].mxu0  ;;  %v1524_v33 = vadd.f32 %v1516_v4, %v6634_v50 }
 0xfe8   :  { %v1495_v30 = vpop.f32.mrb[21].mxu0  ;;  %v1519_v31 = vmul.f32 0.35355338, %v5172_v27  ;;  %v1539_v38 = vsel %vm55_vm1, %v1525_v32, -inf }
 0xfe9   :  { %v1518_v23 = vmul.f32 0.35355338, %v1495_v30  ;;  %v1536_v61 = vsel %vm55_vm1, %v1524_v33, -inf }
 0xfea   :  { %1537 = vmax.xlane.f32.xlu0 %v1536_v61  ;;  %v1527_v50 = vadd.f32 %v1519_v31, %v6677_v5 }
 0xfeb   :  { %v5175_v26 = vpop.f32.mrb[22].mxu0  ;;  %v1526_v36 = vadd.f32 %v1518_v23, %v6672_v0 }
 0xfec   :  { %v1505_v2 = vpop.f32.mrb[23].mxu0  ;;  %v1521_v19 = vmul.f32 0.35355338, %v5175_v26  ;;  %v1545_v8 = vsel %vm55_vm1, %v1527_v50, -inf }
 0xfed   :  { %v1520_v28 = vmul.f32 0.35355338, %v1505_v2  ;;  %v1542_v29 = vsel %vm55_vm1, %v1526_v36, -inf }
 0xfee   :  { %1540 = vmax.xlane.f32.xlu0 %v1539_v38  ;;  %1543 = vmax.xlane.f32.xlu1 %v1542_v29  ;;  %v1529_v43 = vadd.f32 %v1521_v19, %v6694_v20 }
 0xfef   :  { %v1528_v58 = vadd.f32 %v1520_v28, %v6689_v16 }
 0xff0   :  { %v1551_v0 = vsel %vm55_vm1, %v1529_v43, -inf }
 0xff1   :  { %v1548_v40 = vsel %vm55_vm1, %v1528_v58, -inf }
 0xff2   :  { %1546 = vmax.xlane.f32.xlu0 %v1545_v8  ;;  %1549 = vmax.xlane.f32.xlu1 %v1548_v40 }
 0xff6   :  { %1552 = vmax.xlane.f32.xlu0 %v1551_v0 }
0x1003   :  { %6026 = vrot.lane.b32.xlu1 %v6915_v15, %s6332_s22 }
0x1072   :  { %v1535_v46 = vpop.xlane.xlu1 %1534 }
0x1073   :  { %v1555_v5 = vsub.f32 %v1523_v25, %v1535_v46  ;;  %v1532_v47 = vpop.xlane.xlu0 %1531 }
0x1074   :  { %v1554_v48 = vsub.f32 %v1522_v63, %v1532_v47 }
0x1075   :  { %v1564_v51 = vmul.f32 1.442695, %v1555_v5 }
0x1076   :  { %v1562_v16 = vmul.f32 1.442695, %v1554_v48 }
0x1077   :  { %6174 = vpow2.f32 %v1564_v51  ;;  %v1538_v52 = vpop.xlane.xlu0 %1537 }
0x1078   :  { %6176 = vpow2.f32 %v1562_v16  ;;  %v1556_v53 = vsub.f32 %v1524_v33, %v1538_v52 }
0x107a   :  { %v1566_v55 = vmul.f32 1.442695, %v1556_v53 }
0x107b   :  { %v1541_v20 = vpop.xlane.xlu0 %1540  ;;  %v1544_v57 = vpop.xlane.xlu1 %1543 }
0x107c   :  { %6178 = vpow2.f32 %v1566_v55  ;;  %v1557_v60 = vsub.f32 %v1525_v32, %v1541_v20  ;;  %v1558_v34 = vsub.f32 %v1526_v36, %v1544_v57 }
0x107e   :  { %v1568_v54 = vmul.f32 1.442695, %v1557_v60  ;;  %v1570_v14 = vmul.f32 1.442695, %v1558_v34 }
0x107f   :  { %v1547_v39 = vpop.xlane.xlu0 %1546  ;;  %v1550_v15 = vpop.xlane.xlu1 %1549 }
0x1080   :  { %6180 = vpow2.f32 %v1568_v54  ;;  %v1559_v45 = vsub.f32 %v1527_v50, %v1547_v39  ;;  %v1560_v63 = vsub.f32 %v1528_v58, %v1550_v15 }
0x1081   :  { %v6979_v1 = vpop.eup %6174  ;;  %6182 = vpow2.f32 %v1570_v14 }
0x1082   :  { %v6177_v25 = vpop.eup %6176  ;;  %v1572_v7 = vmul.f32 1.442695, %v1559_v45  ;;  %v1581_v10 = vsel %vm55_vm1, %v6979_v1, 0.0  ;;  %v1574_v32 = vmul.f32 1.442695, %v1560_v63 }
0x1083   :  { %1582 = vadd.xlane.f32.xlu0 %v1581_v10  ;;  %v1553_v11 = vpop.xlane.xlu0 %1552  ;;  %v6027_v13 = vpop.permute.xlu1 %6026  ;;  %v1578_v4 = vsel %vm55_vm1, %v6177_v25, 0.0 }
0x1084   :  { %6184 = vpow2.f32 %v1572_v7  ;;  %v1561_v62 = vsub.f32 %v1529_v43, %v1553_v11  ;;  %v6029_v27 = vunpack.i.h.bf16 %v6027_v13  ;;  %v6028_v33 = vunpack.i.l.bf16 %v6027_v13  ;;  %1579 = vadd.xlane.f32.xlu1 %v1578_v4 }
0x1086   :  { %v6984_v30 = vpop.eup %6178  ;;  %v1576_v31 = vmul.f32 1.442695, %v1561_v62  ;;  %v5672_v23 = vpack.c.bf16 %v6029_v27, %v6028_v33 }
0x1087   :  { %v1584_v61 = vsel %vm55_vm1, %v6984_v30, 0.0 }
0x1088   :  { %6186 = vpow2.f32 %v1576_v31  ;;  %1585 = vadd.xlane.f32.xlu1 %v1584_v61  ;;  %5673 = vmatprep.subr.bf16.mxu1 %v5672_v23  ;;  %v4518_v31 = vld [vmem:[%s7861_s3 + $0x28] sm:$0xff] }
0x1089   :  { %5675 = vmatpush3.bf16.msra.mxu1 %v5672_v23  ;;  %6188 = vpow2.f32 %v1574_v32  ;;  %v4517_v32 = vld [vmem:[%s7861_s3 + $0x20] sm:$0xff] }
0x108a   :  { %v6988_v26 = vpop.eup %6180  ;;  %v5688_v23 = vpack.c.bf16 %v4518_v31, %v4517_v32 }
0x108b   :  { %v6990_v36 = vpop.eup %6182  ;;  %v1587_v2 = vsel %vm55_vm1, %v6988_v26, 0.0 }
0x108c   :  { %1588 = vadd.xlane.f32.xlu0 %v1587_v2  ;;  %v1590_v38 = vsel %vm55_vm1, %v6990_v36, 0.0  ;;  %v4520_v2 = vld [vmem:[%s7861_s3 + $0x38] sm:$0xff] }
0x108d   :  { %1591 = vadd.xlane.f32.xlu1 %v1590_v38 }
0x108e   :  { %v6996_v19 = vpop.eup %6184 }
0x108f   :  { %v1593_v28 = vsel %vm55_vm1, %v6996_v19, 0.0 }
0x1090   :  { %1594 = vadd.xlane.f32.xlu0 %v1593_v28 }
0x1092   :  { %v7000_v29 = vpop.eup %6186 }
0x1093   :  { %v1599_v50 = vsel %vm55_vm1, %v7000_v29, 0.0  ;;  %v6189_v58 = vpop.eup %6188 }
0x1094   :  { %1600 = vadd.xlane.f32.xlu0 %v1599_v50  ;;  %v1596_v8 = vsel %vm55_vm1, %v6189_v58, 0.0 }
0x1098   :  { %1597 = vadd.xlane.f32.xlu0 %v1596_v8 }
0x109e   :  { %6036 = vrot.lane.b32.xlu1 %v6934_v41, %s6332_s22 }
0x10a2   :  { %6041 = vrot.lane.b32.xlu1 %v6938_v37, %s6332_s22 }
0x10ae   :  { %6031 = vrot.lane.b32.xlu0 %v6925_v49, %s6332_s22 }
0x1110   :  { %v1583_v43 = vpop.xlane.xlu0 %1582 }
0x1111   :  { %v1580_v40 = vpop.xlane.xlu1 %1579 }
0x1112   :  { %6190 = vrcp.f32 %v1580_v40 }
0x1113   :  { %6192 = vrcp.f32 %v1583_v43 }
0x1115   :  { %v1586_v0 = vpop.xlane.xlu1 %1585 }
0x1116   :  { %6194 = vrcp.f32 %v1586_v0 }
0x1119   :  { %v1589_v46 = vpop.xlane.xlu0 %1588 }
0x111a   :  { %v1592_v51 = vpop.xlane.xlu1 %1591  ;;  %6196 = vrcp.f32 %v1589_v46 }
0x111b   :  { %6198 = vrcp.f32 %v1592_v51 }
0x111c   :  { %v6191_v5 = vpop.eup %6190 }
0x111d   :  { %v1595_v47 = vpop.xlane.xlu0 %1594  ;;  %v1610_v48 = vmul.f32 %v6191_v5, %v6177_v25  ;;  %v6193_v15 = vpop.eup %6192 }
0x111e   :  { %v6037_v52 = vpop.permute.xlu1 %6036  ;;  %6200 = vrcp.f32 %v1595_v47  ;;  %v1611_v25 = vmul.f32 %v6193_v15, %v6979_v1 }
0x111f   :  { %5192 = vmatprep.mubr.msk.f32.mxu1 %vm55_vm1, %v1610_v48  ;;  %v6039_v55 = vunpack.i.h.bf16 %v6037_v52  ;;  %v6038_v37 = vunpack.i.l.bf16 %v6037_v52 }
0x1120   :  { %v6195_v45 = vpop.eup %6194 }
0x1121   :  { %v1601_v16 = vpop.xlane.xlu0 %1600  ;;  %v5680_v14 = vpack.c.bf16 %v6039_v55, %v6038_v37  ;;  %v1612_v63 = vmul.f32 %v6195_v45, %v6984_v30 }
0x1122   :  { %v6042_v49 = vpop.permute.xlu1 %6041 }
0x1123   :  { %v6044_v34 = vunpack.i.h.bf16 %v6042_v49  ;;  %v6043_v54 = vunpack.i.l.bf16 %v6042_v49 }
0x1124   :  { %v6197_v7 = vpop.eup %6196 }
0x1125   :  { %v1598_v41 = vpop.xlane.xlu0 %1597  ;;  %v5684_v39 = vpack.c.bf16 %v6044_v34, %v6043_v54  ;;  %v6199_v10 = vpop.eup %6198  ;;  %v1613_v11 = vmul.f32 %v6197_v7, %v6988_v26  ;;  %v4526_v7 = vld [vmem:[%s7862_s4 + $0x20] sm:$0xff] }
0x1126   :  { %6202 = vrcp.f32 %v1598_v41  ;;  %v1614_v4 = vmul.f32 %v6199_v10, %v6990_v36  ;;  %v4519_v36 = vld [vmem:[%s7861_s3 + $0x30] sm:$0xff] }
0x1127   :  { %6204 = vrcp.f32 %v1601_v16  ;;  %v5692_v38 = vpack.c.bf16 %v4520_v2, %v4519_v36  ;;  %v4521_v16 = vld [vmem:[%s7860_s6 + $0xc] ss:$0 sm:$0xff]  ;;  %v4528_v10 = vld [vmem:[%s7862_s4 + $0x30] sm:$0xff]  ;;  %v4524_v36 = vld [vmem:[%s7860_s6 + $0xa] ss:$0 sm:$0xff] }
0x1128   :  { %v6201_v13 = vpop.eup %6200 }
0x1129   :  { %v6032_v53 = vpop.permute.xlu0 %6031  ;;  %v1615_v1 = vmul.f32 %v6201_v13, %v6996_v19  ;;  %v4529_v13 = vld [vmem:[%s7862_s4 + $0x38] sm:$0xff] }
0x112a   :  { %v6034_v20 = vunpack.i.h.bf16 %v6032_v53  ;;  %v6033_v57 = vunpack.i.l.bf16 %v6032_v53 }
0x112c   :  { %v5676_v60 = vpack.c.bf16 %v6034_v20, %v6033_v57 }
0x112e   :  { %5677 = vmatprep.subr.bf16.mxu1 %v5676_v60 }
0x112f   :  { %5679 = vmatpush3.bf16.msra.mxu1 %v5676_v60 }
0x1130   :  { %5681 = vmatprep.subr.bf16.mxu1 %v5680_v14  ;;  %v6203_v62 = vpop.eup %6202 }
0x1131   :  { %v6205_v27 = vpop.eup %6204  ;;  %v1616_v33 = vmul.f32 %v6203_v62, %v6189_v58  ;;  %v4533_v62 = vld [vmem:[%s7863_s5 + $0x80] sm:$0xff] }
0x1132   :  { %v1617_v30 = vmul.f32 %v6205_v27, %v7000_v29 }
0x1133   :  { %5683 = vmatpush3.bf16.msra.mxu1 %v5680_v14 }
0x1134   :  { %5685 = vmatprep.subr.bf16.mxu1 %v5684_v39 }
0x1137   :  { %5687 = vmatpush3.bf16.msra.mxu1 %v5684_v39 }
0x1138   :  { %5689 = vmatprep.subr.bf16.mxu1 %v5688_v23 }
0x113a   :  { %5193 = vmatmul.mubr.msk.f32.vlgmr.msra.gmra.mrb[12].mxu1 %vm55_vm1, %v1611_v25 }
0x113b   :  { %5195 = vmatprep.mubr.msk.f32.mxu1 %vm55_vm1, %v1612_v63  ;;  %5691 = vmatpush3.bf16.msra.mxu1 %v5688_v23  ;;  %v4527_v63 = vld [vmem:[%s7862_s4 + $0x28] sm:$0xff] }
0x113c   :  { %5693 = vmatprep.subr.bf16.mxu1 %v5692_v38 }
0x113e   :  { %5196 = vmatmul.mubr.msk.f32.gmra.mrb[14].mxu1 %vm55_vm1, %v1613_v11  ;;  %v5696_v11 = vpack.c.bf16 %v4527_v63, %v4526_v7 }
0x113f   :  { %5198 = vmatprep.mubr.msk.f32.mxu1 %vm55_vm1, %v1614_v4  ;;  %5695 = vmatpush3.bf16.msra.mxu1 %v5692_v38  ;;  %v5700_v4 = vpack.c.bf16 %v4529_v13, %v4528_v10  ;;  %v4525_v38 = vld [vmem:[%s7860_s6 + $0xb] ss:$0 sm:$0xff] }
0x1140   :  { %5697 = vmatprep.subr.bf16.mxu0 %v5696_v11 }
0x1141   :  { %5699 = vmatpush3.bf16.msra.mxu0 %v5696_v11 }
0x1142   :  { %5199 = vmatmul.mubr.msk.f32.gmra.mrb[16].mxu1 %vm55_vm1, %v1615_v1  ;;  %5701 = vmatprep.subr.bf16.mxu0 %v5700_v4  ;;  %v4534_v1 = vld [vmem:[%s7863_s5 + $0x88] sm:$0xff] }
0x1143   :  { %5201 = vmatprep.mubr.msk.f32.mxu1 %vm55_vm1, %v1616_v33  ;;  %v5704_v27 = vpack.c.bf16 %v4534_v1, %v4533_v62 }
0x1145   :  { %5703 = vmatpush3.bf16.msra.mxu0 %v5700_v4  ;;  %5705 = vmatprep.subr.bf16.mxu1 %v5704_v27 }
0x1146   :  { %5202 = vmatmul.mubr.msk.f32.gmra.mrb[18].mxu1 %vm55_vm1, %v1617_v30 }
0x120d   :  { %v5194_v61 = vpop.f32.mrb[12].mxu1 }
0x120e   :  { %1772 = vst.msk [vmem:[#allocation3 + $0x8] sm:$0xff] %vm416_vm6, %v5194_v61  ;;  %v1732_v26 = vpop.f32.mrb[13].mxu1 }
0x120f   :  { %1771 = vst.msk [vmem:[#allocation3] sm:$0xff] %vm416_vm6, %v1732_v26 }
0x1211   :  { %v5197_v19 = vpop.f32.mrb[14].mxu1 }
0x1212   :  { %1777 = vrot.lane.b32.xlu1 %v5197_v19, %s6333_s8  ;;  %v1742_v28 = vpop.f32.mrb[15].mxu1 }
0x1215   :  { %v5200_v29 = vpop.f32.mrb[16].mxu1 }
0x1216   :  { %1775 = vrot.lane.b32.xlu1 %v1742_v28, %s6333_s8  ;;  %v1752_v50 = vpop.f32.mrb[17].mxu1 }
0x1217   :  { %1785 = vrot.lane.b32.xlu0 %v1752_v50, %s6334_s9 }
0x1219   :  { %v5203_v58 = vpop.f32.mrb[18].mxu1 }
0x121a   :  { %1787 = vrot.lane.b32.xlu1 %v5200_v29, %s6334_s9  ;;  %v1762_v8 = vpop.f32.mrb[19].mxu1 }
0x121b   :  { %1795 = vrot.lane.b32.xlu0 %v1762_v8, %s6335_s10 }
0x121e   :  { %1797 = vrot.lane.b32.xlu1 %v5203_v58, %s6335_s10 }
0x1284   :  { %v1778_v40 = vpop.permute.xlu1 %1777 }
0x1285   :  { %1782 = vst.msk [vmem:[#allocation3 + $0x8] sm:$0xff] %vm821_vm10, %v1778_v40  ;;  %v4535_v40 = vld [vmem:[%s7863_s5 + $0x90] sm:$0xff] }
0x1288   :  { %v1776_v43 = vpop.permute.xlu1 %1775 }
0x1289   :  { %1781 = vst.msk [vmem:[#allocation3] sm:$0xff] %vm821_vm10, %v1776_v43  ;;  %v1786_v0 = vpop.permute.xlu0 %1785  ;;  %v4536_v43 = vld [vmem:[%s7863_s5 + $0x98] sm:$0xff] }
0x128a   :  { %1791 = vst.msk [vmem:[#allocation3] sm:$0xff] %vm832_vm11, %v1786_v0  ;;  %v5708_v0 = vpack.c.bf16 %v4536_v43, %v4535_v40 }
0x128c   :  { %v1788_v46 = vpop.permute.xlu1 %1787 }
0x128d   :  { %1792 = vst.msk [vmem:[#allocation3 + $0x8] sm:$0xff] %vm832_vm11, %v1788_v46  ;;  %v1796_v5 = vpop.permute.xlu0 %1795  ;;  %v4537_v46 = vld [vmem:[%s7863_s5 + $0xa0] sm:$0xff] }
0x128e   :  { %1801 = vst.msk [vmem:[#allocation3] sm:$0xff] %vm843_vm12, %v1796_v5  ;;  %v4538_v5 = vld [vmem:[%s7863_s5 + $0xa8] sm:$0xff] }
0x1290   :  { %v1798_v47 = vpop.permute.xlu1 %1797 }
0x1291   :  { %1802 = vst.msk [vmem:[#allocation3 + $0x8] sm:$0xff] %vm843_vm12, %v1798_v47  ;;  %v5712_v47 = vpack.c.bf16 %v4538_v5, %v4537_v46 }
0x1295   :  { %v1803_v48 = vld [vmem:[#allocation3] sm:$0xff] }
0x1296   :  { %5212 = vmatprep.mubr.msk.f32.mxu1 %vm225_vm4, %v1803_v48  ;;  %v4539_v48 = vld [vmem:[%s7863_s5 + $0xb0] sm:$0xff] }
0x1298   :  { %v1804_v51 = vld [vmem:[#allocation3 + $0x8] sm:$0xff] }
0x1299   :  { %5213 = vmatmul.mubr.msk.f32.vlgmr.msra.gmra.mrb[20].mxu1 %vm225_vm4, %v1804_v51  ;;  %v4540_v51 = vld [vmem:[%s7863_s5 + $0xb8] sm:$0xff] }
0x129a   :  { %5707 = vmatpush3.bf16.msra.mxu1 %v5704_v27 }
0x129b   :  { %5709 = vmatprep.subr.bf16.mxu1 %v5708_v0 }
0x129e   :  { %5711 = vmatpush3.bf16.msra.mxu1 %v5708_v0 }
0x129f   :  { %5713 = vmatprep.subr.bf16.mxu1 %v5712_v47 }
0x12a2   :  { %5715 = vmatpush3.bf16.msra.mxu1 %v5712_v47 }
0x136c   :  { %v5214_v52 = vpop.f32.mrb[20].mxu1 }
0x136d   :  { %v1893_v41 = vadd.f32 %v5214_v52, %v4521_v16  ;;  %v1887_v53 = vpop.f32.mrb[21].mxu1  ;;  %v4541_v52 = vld [vmem:[%s7863_s5 + $0xc0] sm:$0xff] }
0x136e   :  { %v1888_v55 = vadd.f32 %v4521_v16, %v1887_v53  ;;  %v5716_v16 = vpack.c.bf16 %v4540_v51, %v4539_v48 }
0x136f   :  { %v7057_v37 = vadd.f32 %v1893_v41, %v6871_v18  ;;  %v4542_v41 = vld [vmem:[%s7863_s5 + $0xc8] sm:$0xff] }
0x1370   :  { %v7060_v20 = vadd.f32 %v1888_v55, %v6874_v21  ;;  %v5720_v53 = vpack.c.bf16 %v4542_v41, %v4541_v52  ;;  %v4543_v55 = vld [vmem:[%s7863_s5 + $0xd0] sm:$0xff]  ;;  %5717 = vmatprep.subr.bf16.mxu1 %v5716_v16 }
0x1371   :  { %v1903_v57 = vsel %vm225_vm4, %v7057_v37, 0.0  ;;  %5719 = vmatpush3.bf16.msra.mxu1 %v5716_v16 }
0x1372   :  { %1904 = vadd.xlane.f32.xlu1 %v1903_v57  ;;  %v1900_v49 = vsel %vm225_vm4, %v7060_v20, 0.0  ;;  %v4544_v57 = vld [vmem:[%s7863_s5 + $0xd8] sm:$0xff]  ;;  %5721 = vmatprep.subr.bf16.mxu1 %v5720_v53 }
0x1373   :  { %1901 = vadd.xlane.f32.xlu0 %v1900_v49  ;;  %v5724_v49 = vpack.c.bf16 %v4544_v57, %v4543_v55 }
0x1375   :  { %5723 = vmatpush3.bf16.msra.mxu1 %v5720_v53 }
0x1376   :  { %5725 = vmatprep.subr.bf16.mxu1 %v5724_v49 }
0x1379   :  { %5727 = vmatpush3.bf16.msra.mxu1 %v5724_v49 }
0x13ff   :  { %v1905_v60 = vpop.xlane.xlu1 %1904 }
0x1400   :  { %v1907_v34 = vmul.f32 0.03125, %v1905_v60  ;;  %v1902_v54 = vpop.xlane.xlu0 %1901  ;;  %v4545_v60 = vld [vmem:[%s7863_s5 + $0xe0] sm:$0xff] }
0x1401   :  { %v1906_v14 = vmul.f32 0.03125, %v1902_v54 }
0x1402   :  { %v1909_v39 = vsub.f32 %v7057_v37, %v1907_v34  ;;  %v4546_v34 = vld [vmem:[%s7863_s5 + $0xe8] sm:$0xff] }
0x1403   :  { %v1908_v18 = vsub.f32 %v7060_v20, %v1906_v14  ;;  %v5728_v54 = vpack.c.bf16 %v4546_v34, %v4545_v60  ;;  %v4547_v14 = vld [vmem:[%s7863_s5 + $0xf0] sm:$0xff] }
0x1404   :  { %v1911_v45 = vmul.f32 %v1909_v39, %v1909_v39 }
0x1405   :  { %v1910_v15 = vmul.f32 %v1908_v18, %v1908_v18  ;;  %5729 = vmatprep.subr.bf16.mxu1 %v5728_v54 }
0x1406   :  { %v1915_v25 = vsel %vm225_vm4, %v1911_v45, 0.0  ;;  %5731 = vmatpush3.bf16.msra.mxu1 %v5728_v54 }
0x1407   :  { %v1912_v21 = vsel %vm225_vm4, %v1910_v15, 0.0  ;;  %v4530_v15 = vld [vmem:[%s7860_s6 + $0xf] ss:$0 sm:$0xff] }
0x1408   :  { %1913 = vadd.xlane.f32.xlu0 %v1912_v21 }
0x140c   :  { %1916 = vadd.xlane.f32.xlu0 %v1915_v25 }
0x1495   :  { %v1914_v33 = vpop.xlane.xlu0 %1913 }
0x1496   :  { %v1918_v30 = vmul.f32 0.03125, %v1914_v33 }
0x1498   :  { %v1920_v32 = vadd.f32 1e-05, %v1918_v30 }
0x1499   :  { %v1917_v31 = vpop.xlane.xlu0 %1916 }
0x149a   :  { %6206 = vrsqrt.f32 %v1920_v32  ;;  %v1919_v23 = vmul.f32 0.03125, %v1917_v31 }
0x149c   :  { %v1921_v61 = vadd.f32 1e-05, %v1919_v23 }
0x149e   :  { %6208 = vrsqrt.f32 %v1921_v61 }
0x14a4   :  { %v6207_v26 = vpop.eup %6206 }
0x14a5   :  { %v1924_v2 = vmul.f32 %v6207_v26, %v1908_v18 }
0x14a7   :  { %v1930_v19 = vmul.f32 %v4524_v36, %v1924_v2 }
0x14a8   :  { %v6209_v28 = vpop.eup %6208 }
0x14a9   :  { %v1925_v29 = vmul.f32 %v6209_v28, %v1909_v39  ;;  %v1936_v50 = vadd.f32 %v4525_v38, %v1930_v19  ;;  %v4548_v39 = vld [vmem:[%s7863_s5 + $0xf8] sm:$0xff]  ;;  %v4549_v19 = vld [vmem:[%s7860_s6 + $0xd] ss:$0 sm:$0xff] }
0x14aa   :  { %v5732_v18 = vpack.c.bf16 %v4548_v39, %v4547_v14  ;;  %v4550_v14 = vld [vmem:[%s7860_s6 + $0x20] ss:$0 sm:$0xff] }
0x14ab   :  { %v1931_v58 = vmul.f32 %v4524_v36, %v1925_v29  ;;  %5223 = vmatprep.mubr.msk.f32.mxu0 %vm225_vm4, %v1936_v50 }
0x14ac   :  { %5733 = vmatprep.subr.bf16.mxu1 %v5732_v18 }
0x14ad   :  { %v1937_v8 = vadd.f32 %v4525_v38, %v1931_v58  ;;  %5735 = vmatpush3.bf16.msra.mxu1 %v5732_v18 }
0x14af   :  { %5224 = vmatmul.mubr.msk.f32.vlgmr.msra.gmra.mrb[24].mxu0 %vm225_vm4, %v1937_v8 }
0x1582   :  { %v5225_v21 = vpop.f32.mrb[24].mxu0 }
0x1583   :  { %v2026_v45 = vadd.f32 %v5225_v21, %v4530_v15  ;;  %v2020_v25 = vpop.f32.mrb[25].mxu0 }
0x1584   :  { %v2021_v7 = vadd.f32 %v4530_v15, %v2020_v25  ;;  %v4551_v15 = vld [vmem:[%s7860_s6 + $0x21] ss:$0 sm:$0xff] }
0x1585   :  { %v2032_v63 = vmul.f32 0.044715, %v2026_v45  ;;  %v2030_v36 = vmul.f32 0.5, %v2026_v45 }
0x1586   :  { %v2031_v10 = vmul.f32 0.044715, %v2021_v7  ;;  %v2029_v61 = vmul.f32 0.5, %v2021_v7 }
0x1587   :  { %v2034_v11 = vmul.f32 %v2032_v63, %v2026_v45 }
0x1588   :  { %v2033_v13 = vmul.f32 %v2031_v10, %v2021_v7 }
0x1589   :  { %v2036_v4 = vmul.f32 %v2034_v11, %v2026_v45 }
0x158a   :  { %v2035_v62 = vmul.f32 %v2033_v13, %v2021_v7 }
0x158b   :  { %v2038_v1 = vadd.f32 %v2036_v4, %v2026_v45 }
0x158c   :  { %v2037_v27 = vadd.f32 %v2035_v62, %v2021_v7 }
0x158d   :  { %v2040_v33 = vmul.f32 0.7978846, %v2038_v1 }
0x158e   :  { %v2039_v30 = vmul.f32 0.7978846, %v2037_v27 }
0x158f   :  { %6210 = vtanh.f32 %v2040_v33 }
0x1590   :  { %6212 = vtanh.f32 %v2039_v30 }
0x1599   :  { %v6211_v32 = vpop.eup %6210 }
0x159a   :  { %v6213_v31 = vpop.eup %6212  ;;  %v2044_v23 = vadd.f32 1.0, %v6211_v32 }
0x159b   :  { %v2043_v26 = vadd.f32 1.0, %v6213_v31 }
0x159c   :  { %v2046_v38 = vmul.f32 %v2044_v23, %v2030_v36  ;;  %v4556_v36 = vld [vmem:[%s7859_s2 + $0x50] sm:$0xff] }
0x159d   :  { %v2045_v2 = vmul.f32 %v2043_v26, %v2029_v61  ;;  %v4554_v61 = vld [vmem:[%s7859_s2 + $0x40] sm:$0xff]  ;;  %v4555_v26 = vld [vmem:[%s7859_s2 + $0x48] sm:$0xff] }
0x159f   :  { %5258 = vmatprep.mubr.f32.mxu1 %v2045_v2  ;;  %v5736_v2 = vpack.c.bf16 %v4555_v26, %v4554_v61 }
0x15a0   :  { %5259 = vmatmul.mubr.f32.vlgmr.msra.gmra.mrb[22].mxu1 %v2046_v38  ;;  %v4557_v38 = vld [vmem:[%s7859_s2 + $0x58] sm:$0xff] }
0x15a1   :  { %5737 = vmatprep.subr.bf16.mxu0 %v5736_v2 }
0x15a2   :  { %5739 = vmatpush3.bf16.msra.mxu0 %v5736_v2 }
0x1673   :  { %v5260_v28 = vpop.f32.mrb[22].mxu1 }
0x1674   :  { %v2141_v29 = vadd.f32 %v5260_v28, %v4549_v19  ;;  %v2135_v50 = vpop.f32.mrb[23].mxu1 }
0x1675   :  { %v2136_v58 = vadd.f32 %v4549_v19, %v2135_v50  ;;  %v5740_v19 = vpack.c.bf16 %v4557_v38, %v4556_v36 }
0x1676   :  { %v2145_v8 = vadd.f32 %v2141_v29, %v7057_v37 }
0x1677   :  { %v2144_v40 = vadd.f32 %v2136_v58, %v7060_v20  ;;  %5741 = vmatprep.subr.bf16.mxu0 %v5740_v19 }
0x1678   :  { %v2151_v43 = vsel %vm225_vm4, %v2145_v8, 0.0  ;;  %5743 = vmatpush3.bf16.msra.mxu0 %v5740_v19 }
0x1679   :  { %2152 = vadd.xlane.f32.xlu0 %v2151_v43  ;;  %v2148_v0 = vsel %vm225_vm4, %v2144_v40, 0.0 }
0x167a   :  { %2149 = vadd.xlane.f32.xlu1 %v2148_v0  ;;  %v4552_v0 = vld [vmem:[%s7860_s6 + $0x10] ss:$0 sm:$0xff] }
0x1706   :  { %v2153_v46 = vpop.xlane.xlu0 %2152 }
0x1707   :  { %v2155_v5 = vmul.f32 0.03125, %v2153_v46  ;;  %v2150_v47 = vpop.xlane.xlu1 %2149 }
0x1708   :  { %v2154_v48 = vmul.f32 0.03125, %v2150_v47 }
0x1709   :  { %v2157_v51 = vsub.f32 %v2145_v8, %v2155_v5 }
0x170a   :  { %v2156_v16 = vsub.f32 %v2144_v40, %v2154_v48  ;;  %v4553_v48 = vld [vmem:[%s7860_s6 + $0x11] ss:$0 sm:$0xff] }
0x170b   :  { %v2159_v52 = vmul.f32 %v2157_v51, %v2157_v51 }
0x170c   :  { %v2158_v41 = vmul.f32 %v2156_v16, %v2156_v16 }
0x170d   :  { %v2163_v53 = vsel %vm225_vm4, %v2159_v52, 0.0 }
0x170e   :  { %2164 = vadd.xlane.f32.xlu0 %v2163_v53  ;;  %v2160_v37 = vsel %vm225_vm4, %v2158_v41, 0.0  ;;  %v4558_v53 = vld [vmem:[%s7860_s6 + $0x16] ss:$0 sm:$0xff] }
0x170f   :  { %2161 = vadd.xlane.f32.xlu1 %v2160_v37 }
0x179b   :  { %v2165_v20 = vpop.xlane.xlu0 %2164 }
0x179c   :  { %v2167_v55 = vmul.f32 0.03125, %v2165_v20  ;;  %v2162_v57 = vpop.xlane.xlu1 %2161 }
0x179d   :  { %v2166_v49 = vmul.f32 0.03125, %v2162_v57 }
0x179e   :  { %v2169_v60 = vadd.f32 1e-05, %v2167_v55 }
0x179f   :  { %v2168_v34 = vadd.f32 1e-05, %v2166_v49 }
0x17a0   :  { %6214 = vrsqrt.f32 %v2169_v60 }
0x17a1   :  { %6216 = vrsqrt.f32 %v2168_v34 }
0x17aa   :  { %v6215_v54 = vpop.eup %6214 }
0x17ab   :  { %v6217_v39 = vpop.eup %6216  ;;  %v2173_v18 = vmul.f32 %v6215_v54, %v2157_v51 }
0x17ac   :  { %v2172_v21 = vmul.f32 %v6217_v39, %v2156_v16 }
0x17ad   :  { %v2179_v45 = vmul.f32 %v4550_v14, %v2173_v18 }
0x17ae   :  { %v2178_v25 = vmul.f32 %v4550_v14, %v2172_v21 }
0x17af   :  { %v7156_v7 = vadd.f32 %v4551_v15, %v2179_v45 }
0x17b0   :  { %v7158_v63 = vadd.f32 %v4551_v15, %v2178_v25 }
0x17b1   :  { %v2191_v10 = vsel %vm225_vm4, %v7156_v7, 0.0 }
0x17b2   :  { %2192 = vadd.xlane.f32.xlu0 %v2191_v10  ;;  %v2188_v11 = vsel %vm225_vm4, %v7158_v63, 0.0 }
0x17b3   :  { %2189 = vadd.xlane.f32.xlu1 %v2188_v11 }
0x183f   :  { %v2193_v13 = vpop.xlane.xlu0 %2192 }
0x1840   :  { %v2195_v4 = vmul.f32 0.03125, %v2193_v13  ;;  %v2190_v62 = vpop.xlane.xlu1 %2189 }
0x1841   :  { %v2194_v1 = vmul.f32 0.03125, %v2190_v62 }
0x1842   :  { %v2197_v27 = vsub.f32 %v7156_v7, %v2195_v4 }
0x1843   :  { %v2196_v33 = vsub.f32 %v7158_v63, %v2194_v1 }
0x1844   :  { %v2199_v30 = vmul.f32 %v2197_v27, %v2197_v27 }
0x1845   :  { %v2198_v32 = vmul.f32 %v2196_v33, %v2196_v33 }
0x1846   :  { %v2203_v31 = vsel %vm225_vm4, %v2199_v30, 0.0 }
0x1847   :  { %2204 = vadd.xlane.f32.xlu0 %v2203_v31  ;;  %v2200_v23 = vsel %vm225_vm4, %v2198_v32, 0.0 }
0x1848   :  { %2201 = vadd.xlane.f32.xlu1 %v2200_v23 }
0x18d4   :  { %v2205_v28 = vpop.xlane.xlu0 %2204 }
0x18d5   :  { %v2207_v29 = vmul.f32 0.03125, %v2205_v28  ;;  %v2202_v50 = vpop.xlane.xlu1 %2201 }
0x18d6   :  { %v2206_v58 = vmul.f32 0.03125, %v2202_v50 }
0x18d7   :  { %v2209_v8 = vadd.f32 1e-05, %v2207_v29 }
0x18d8   :  { %v2208_v40 = vadd.f32 1e-05, %v2206_v58 }
0x18d9   :  { %6218 = vrsqrt.f32 %v2209_v8 }
0x18da   :  { %6220 = vrsqrt.f32 %v2208_v40  ;;  %v7247_v40 = vadd.f32 %v6413_v17, %v6553_v9  ;;  %v7261_v9 = vadd.f32 %v6413_v17, %v6612_v44 }
0x18e3   :  { %v6219_v43 = vpop.eup %6218 }
0x18e4   :  { %v6221_v46 = vpop.eup %6220  ;;  %v2213_v5 = vmul.f32 %v6219_v43, %v2197_v27 }
0x18e5   :  { %v2212_v47 = vmul.f32 %v6221_v46, %v2196_v33 }
0x18e6   :  { %v2219_v51 = vmul.f32 %v4552_v0, %v2213_v5 }
0x18e7   :  { %v2218_v16 = vmul.f32 %v4552_v0, %v2212_v47  ;;  %v7251_v0 = vadd.f32 %v6413_v17, %v6556_v3 }
0x18e8   :  { %v2225_v41 = vadd.f32 %v4553_v48, %v2219_v51 }
0x18e9   :  { %v2224_v52 = vadd.f32 %v4553_v48, %v2218_v16 }
0x18eb   :  { %5269 = vmatprep.mubr.msk.f32.mxu0 %vm225_vm4, %v2224_v52  ;;  %v7257_v52 = vadd.f32 %v6413_v17, %v6609_v42  ;;  %v7268_v42 = vadd.f32 %v6413_v17, %v6650_v59  ;;  %v7283_v59 = vadd.f32 %v6413_v17, %v6684_v12 }
0x18ec   :  { %5270 = vmatmul.mubr.msk.f32.vlgmr.msra.gmra.mrb[26].mxu0 %vm225_vm4, %v2225_v41 }
0x19bf   :  { %v5271_v37 = vpop.f32.mrb[26].mxu0 }
0x19c0   :  { %v2314_v20 = vadd.f32 %v5271_v37, %v4558_v53  ;;  %v2308_v55 = vpop.f32.mrb[27].mxu0 }
0x19c1   :  { %v2309_v57 = vadd.f32 %v4558_v53, %v2308_v55 }
0x19c2   :  { %2318 = vst.msk [vmem:[#allocation2 + $0x8] sm:$0xff] %vm355_vm5, %v2314_v20  ;;  %2323 = vrot.lane.b32.xlu0 %v2314_v20, %s6327_s18 }
0x19c3   :  { %2317 = vst.msk [vmem:[#allocation2] sm:$0xff] %vm355_vm5, %v2309_v57  ;;  %2321 = vrot.lane.b32.xlu1 %v2309_v57, %s6327_s18 }
0x19c6   :  { %2337 = vrot.lane.b32.xlu0 %v2309_v57, %s6328_s19 }
0x19c7   :  { %2329 = vrot.lane.b32.xlu1 %v2309_v57, %s6329_s20 }
0x19c9   :  { %v2346_v49 = vld [vmem:[#allocation2 + $0x8] sm:$0xff] }
0x19ca   :  { %v2345_v60 = vld [vmem:[#allocation2] sm:$0xff] }
0x19cb   :  { %2331 = vrot.lane.b32.xlu1 %v2314_v20, %s6329_s20  ;;  %5288 = vmatprep.mubr.msk.f32.mxu0 %vm416_vm6, %v2345_v60  ;;  %v7199_v34 = vpack.i.bf16 %v2346_v49, %v2345_v60  ;;  %v7273_v60 = vadd.f32 %v6413_v17, %v6659_v56 }
0x19cd   :  { %6046 = vrot.lane.b32.xlu0 %v7199_v34, %s6330_s21 }
0x19cf   :  { %2339 = vrot.lane.b32.xlu1 %v2314_v20, %s6328_s19 }
0x1a34   :  { %v2324_v54 = vpop.permute.xlu0 %2323 }
0x1a35   :  { %2328 = vst.msk [vmem:[#allocation2 + $0x18] sm:$0xff] %vm355_vm5, %v2324_v54  ;;  %v2322_v14 = vpop.permute.xlu1 %2321 }
0x1a36   :  { %2327 = vst.msk [vmem:[#allocation2 + $0x10] sm:$0xff] %vm355_vm5, %v2322_v14 }
0x1a38   :  { %v2338_v39 = vpop.permute.xlu0 %2337 }
0x1a39   :  { %2343 = vst.msk [vmem:[#allocation2 + $0x30] sm:$0xff] %vm355_vm5, %v2338_v39  ;;  %v2330_v18 = vpop.permute.xlu1 %2329 }
0x1a3a   :  { %2335 = vst.msk [vmem:[#allocation2 + $0x20] sm:$0xff] %vm355_vm5, %v2330_v18 }
0x1a3c   :  { %v2348_v15 = vld [vmem:[#allocation2 + $0x18] sm:$0xff] }
0x1a3d   :  { %v2332_v21 = vpop.permute.xlu1 %2331  ;;  %v2347_v45 = vld [vmem:[#allocation2 + $0x10] sm:$0xff] }
0x1a3e   :  { %2336 = vst.msk [vmem:[#allocation2 + $0x28] sm:$0xff] %vm355_vm5, %v2332_v21  ;;  %v7209_v25 = vpack.i.bf16 %v2348_v15, %v2347_v45  ;;  %v7279_v21 = vadd.f32 %v6413_v17, %v6680_v6 }
0x1a3f   :  { %v6047_v10 = vpop.permute.xlu0 %6046 }
0x1a40   :  { %v6049_v11 = vunpack.i.h.bf16 %v6047_v10  ;;  %v6048_v13 = vunpack.i.l.bf16 %v6047_v10  ;;  %6051 = vrot.lane.b32.xlu1 %v7209_v25, %s6330_s21  ;;  %v2351_v30 = vld [vmem:[#allocation2 + $0x30] sm:$0xff] }
0x1a41   :  { %v2340_v4 = vpop.permute.xlu1 %2339  ;;  %v2349_v1 = vld [vmem:[#allocation2 + $0x20] sm:$0xff] }
0x1a42   :  { %v5744_v62 = vpack.c.bf16 %v6049_v11, %v6048_v13  ;;  %2344 = vst.msk [vmem:[#allocation2 + $0x38] sm:$0xff] %vm355_vm5, %v2340_v4 }
0x1a44   :  { %5746 = vmatprep.subr.msk.bf16.mxu0 %vm6497_vm7, %v5744_v62 }
0x1a45   :  { %5749 = vmatpush3.bf16.xpose.msk.msra.mxu0 %vm6497_vm7, %v5744_v62  ;;  %v2350_v27 = vld [vmem:[#allocation2 + $0x28] sm:$0xff] }
0x1a46   :  { %v7218_v33 = vpack.i.bf16 %v2350_v27, %v2349_v1 }
0x1a48   :  { %6056 = vrot.lane.b32.xlu0 %v7218_v33, %s6330_s21 }
0x1a49   :  { %v2352_v32 = vld [vmem:[#allocation2 + $0x38] sm:$0xff] }
0x1a4a   :  { %v7222_v31 = vpack.i.bf16 %v2352_v32, %v2351_v30 }
0x1a4c   :  { %6061 = vrot.lane.b32.xlu1 %v7222_v31, %s6330_s21 }
0x1ab2   :  { %v6052_v23 = vpop.permute.xlu1 %6051 }
0x1ab3   :  { %v6054_v61 = vunpack.i.h.bf16 %v6052_v23  ;;  %v6053_v26 = vunpack.i.l.bf16 %v6052_v23 }
0x1ab5   :  { %v5750_v36 = vpack.c.bf16 %v6054_v61, %v6053_v26 }
0x1ab7   :  { %5752 = vmatprep.subr.msk.bf16.mxu0 %vm6497_vm7, %v5750_v36 }
0x1ab8   :  { %5755 = vmatpush3.bf16.xpose.msk.msra.mxu0 %vm6497_vm7, %v5750_v36 }
0x1aba   :  { %v6057_v2 = vpop.permute.xlu0 %6056 }
0x1abb   :  { %v6059_v38 = vunpack.i.h.bf16 %v6057_v2  ;;  %v6058_v19 = vunpack.i.l.bf16 %v6057_v2 }
0x1abd   :  { %v5756_v28 = vpack.c.bf16 %v6059_v38, %v6058_v19 }
0x1abe   :  { %v6062_v29 = vpop.permute.xlu1 %6061 }
0x1abf   :  { %v6064_v50 = vunpack.i.h.bf16 %v6062_v29  ;;  %v6063_v58 = vunpack.i.l.bf16 %v6062_v29  ;;  %5758 = vmatprep.subr.msk.bf16.mxu0 %vm6497_vm7, %v5756_v28 }
0x1ac0   :  { %5761 = vmatpush3.bf16.xpose.msk.msra.mxu0 %vm6497_vm7, %v5756_v28 }
0x1ac1   :  { %v5762_v8 = vpack.c.bf16 %v6064_v50, %v6063_v58 }
0x1ac3   :  { %5764 = vmatprep.subr.msk.bf16.mxu0 %vm6497_vm7, %v5762_v8 }
0x1ac8   :  { %5767 = vmatpush3.bf16.xpose.msk.msra.mxu0 %vm6497_vm7, %v5762_v8 }
0x1acf   :  { %5289 = vmatmul.mubr.msk.f32.vlgmr.msra.gmra.mrb[28].mxu0 %vm416_vm6, %v2346_v49 }
0x1ad0   :  { %5291 = vmatprep.mubr.msk.f32.mxu0 %vm416_vm6, %v2347_v45 }
0x1ad3   :  { %5292 = vmatmul.mubr.msk.f32.gmra.mrb[30].mxu0 %vm416_vm6, %v2348_v15 }
0x1ad4   :  { %5294 = vmatprep.mubr.msk.f32.mxu0 %vm416_vm6, %v2349_v1 }
0x1ad7   :  { %5295 = vmatmul.mubr.msk.f32.gmra.mrb[32].mxu0 %vm416_vm6, %v2350_v27 }
0x1ad8   :  { %5297 = vmatprep.mubr.msk.f32.mxu0 %vm416_vm6, %v2351_v30 }
0x1adb   :  { %5298 = vmatmul.mubr.msk.f32.gmra.mrb[34].mxu0 %vm416_vm6, %v2352_v32 }
0x1ba2   :  { %v5290_v43 = vpop.f32.mrb[28].mxu0 }
0x1ba3   :  { %v2515_v46 = vmul.f32 0.35355338, %v5290_v43  ;;  %v2475_v5 = vpop.f32.mrb[29].mxu0 }
0x1ba4   :  { %v2514_v47 = vmul.f32 0.35355338, %v2475_v5 }
0x1ba5   :  { %v2523_v48 = vadd.f32 %v2515_v46, %v7247_v40 }
0x1ba6   :  { %v2522_v51 = vadd.f32 %v2514_v47, %v7251_v0  ;;  %v5293_v16 = vpop.f32.mrb[30].mxu0 }
0x1ba7   :  { %v2517_v41 = vmul.f32 0.35355338, %v5293_v16  ;;  %v2485_v53 = vpop.f32.mrb[31].mxu0  ;;  %v2533_v3 = vsel %vm55_vm1, %v2523_v48, -inf }
0x1ba8   :  { %v2516_v37 = vmul.f32 0.35355338, %v2485_v53  ;;  %2534 = vmax.xlane.f32.xlu1 %v2533_v3  ;;  %v2530_v20 = vsel %vm55_vm1, %v2522_v51, -inf }
0x1ba9   :  { %2531 = vmax.xlane.f32.xlu0 %v2530_v20  ;;  %v2525_v49 = vadd.f32 %v2517_v41, %v7261_v9 }
0x1baa   :  { %v2524_v55 = vadd.f32 %v2516_v37, %v7257_v52  ;;  %v5296_v57 = vpop.f32.mrb[32].mxu0 }
0x1bab   :  { %v2495_v44 = vpop.f32.mrb[33].mxu0  ;;  %v2519_v54 = vmul.f32 0.35355338, %v5296_v57  ;;  %v2539_v56 = vsel %vm55_vm1, %v2525_v49, -inf }
0x1bac   :  { %v2518_v14 = vmul.f32 0.35355338, %v2495_v44  ;;  %v2536_v39 = vsel %vm55_vm1, %v2524_v55, -inf }
0x1bad   :  { %2537 = vmax.xlane.f32.xlu0 %v2536_v39  ;;  %v2527_v10 = vadd.f32 %v2519_v54, %v7273_v60 }
0x1bae   :  { %v2526_v18 = vadd.f32 %v2518_v14, %v7268_v42  ;;  %v5299_v15 = vpop.f32.mrb[34].mxu0 }
0x1baf   :  { %v2505_v45 = vpop.f32.mrb[35].mxu0  ;;  %v2521_v11 = vmul.f32 0.35355338, %v5299_v15  ;;  %v2545_v1 = vsel %vm55_vm1, %v2527_v10, -inf }
0x1bb0   :  { %v2520_v13 = vmul.f32 0.35355338, %v2505_v45  ;;  %v2542_v4 = vsel %vm55_vm1, %v2526_v18, -inf }
0x1bb1   :  { %2540 = vmax.xlane.f32.xlu0 %v2539_v56  ;;  %2543 = vmax.xlane.f32.xlu1 %v2542_v4  ;;  %v2529_v6 = vadd.f32 %v2521_v11, %v7283_v59 }
0x1bb2   :  { %v2528_v62 = vadd.f32 %v2520_v13, %v7279_v21 }
0x1bb3   :  { %v2551_v12 = vsel %vm55_vm1, %v2529_v6, -inf }
0x1bb4   :  { %v2548_v17 = vsel %vm55_vm1, %v2528_v62, -inf }
0x1bb5   :  { %2546 = vmax.xlane.f32.xlu0 %v2545_v1  ;;  %2549 = vmax.xlane.f32.xlu1 %v2548_v17 }
0x1bb9   :  { %2552 = vmax.xlane.f32.xlu0 %v2551_v12 }
0x1bc6   :  { %6066 = vrot.lane.b32.xlu1 %v7199_v34, %s6332_s22 }
0x1c35   :  { %v2535_v27 = vpop.xlane.xlu1 %2534 }
0x1c36   :  { %v2555_v30 = vsub.f32 %v2523_v48, %v2535_v27  ;;  %v2532_v32 = vpop.xlane.xlu0 %2531 }
0x1c37   :  { %v2554_v23 = vsub.f32 %v2522_v51, %v2532_v32 }
0x1c38   :  { %v2564_v61 = vmul.f32 1.442695, %v2555_v30 }
0x1c39   :  { %v2562_v26 = vmul.f32 1.442695, %v2554_v23 }
0x1c3a   :  { %6222 = vpow2.f32 %v2564_v61  ;;  %v2538_v36 = vpop.xlane.xlu0 %2537 }
0x1c3b   :  { %6224 = vpow2.f32 %v2562_v26  ;;  %v2556_v2 = vsub.f32 %v2524_v55, %v2538_v36 }
0x1c3d   :  { %v2566_v38 = vmul.f32 1.442695, %v2556_v2 }
0x1c3e   :  { %v2541_v19 = vpop.xlane.xlu0 %2540  ;;  %v2544_v28 = vpop.xlane.xlu1 %2543 }
0x1c3f   :  { %6226 = vpow2.f32 %v2566_v38  ;;  %v2557_v29 = vsub.f32 %v2525_v49, %v2541_v19  ;;  %v2558_v50 = vsub.f32 %v2526_v18, %v2544_v28 }
0x1c41   :  { %v2568_v58 = vmul.f32 1.442695, %v2557_v29  ;;  %v2570_v8 = vmul.f32 1.442695, %v2558_v50 }
0x1c42   :  { %v2547_v43 = vpop.xlane.xlu0 %2546  ;;  %v2550_v34 = vpop.xlane.xlu1 %2549 }
0x1c43   :  { %6228 = vpow2.f32 %v2568_v58  ;;  %v2559_v46 = vsub.f32 %v2527_v10, %v2547_v43  ;;  %v2560_v51 = vsub.f32 %v2528_v62, %v2550_v34 }
0x1c44   :  { %v7295_v5 = vpop.eup %6222  ;;  %6230 = vpow2.f32 %v2570_v8 }
0x1c45   :  { %v6225_v47 = vpop.eup %6224  ;;  %v2572_v48 = vmul.f32 1.442695, %v2559_v46  ;;  %v2581_v16 = vsel %vm55_vm1, %v7295_v5, 0.0  ;;  %v2574_v49 = vmul.f32 1.442695, %v2560_v51 }
0x1c46   :  { %2582 = vadd.xlane.f32.xlu0 %v2581_v16  ;;  %v2553_v41 = vpop.xlane.xlu0 %2552  ;;  %v6067_v53 = vpop.permute.xlu1 %6066  ;;  %v2578_v3 = vsel %vm55_vm1, %v6225_v47, 0.0 }
0x1c47   :  { %6232 = vpow2.f32 %v2572_v48  ;;  %v2561_v37 = vsub.f32 %v2529_v6, %v2553_v41  ;;  %v6069_v20 = vunpack.i.h.bf16 %v6067_v53  ;;  %v6068_v55 = vunpack.i.l.bf16 %v6067_v53  ;;  %2579 = vadd.xlane.f32.xlu1 %v2578_v3 }
0x1c49   :  { %v7300_v57 = vpop.eup %6226  ;;  %v2576_v44 = vmul.f32 1.442695, %v2561_v37  ;;  %v5768_v54 = vpack.c.bf16 %v6069_v20, %v6068_v55 }
0x1c4a   :  { %v2584_v14 = vsel %vm55_vm1, %v7300_v57, 0.0 }
0x1c4b   :  { %6234 = vpow2.f32 %v2576_v44  ;;  %2585 = vadd.xlane.f32.xlu1 %v2584_v14  ;;  %5769 = vmatprep.subr.bf16.mxu1 %v5768_v54 }
0x1c4c   :  { %5771 = vmatpush3.bf16.msra.mxu1 %v5768_v54  ;;  %6236 = vpow2.f32 %v2574_v49  ;;  %v4586_v49 = vld [vmem:[%s7861_s3 + $0x48] sm:$0xff] }
0x1c4d   :  { %v7304_v39 = vpop.eup %6228 }
0x1c4e   :  { %v7306_v18 = vpop.eup %6230  ;;  %v2587_v15 = vsel %vm55_vm1, %v7304_v39, 0.0 }
0x1c4f   :  { %2588 = vadd.xlane.f32.xlu0 %v2587_v15  ;;  %v2590_v45 = vsel %vm55_vm1, %v7306_v18, 0.0 }
0x1c50   :  { %2591 = vadd.xlane.f32.xlu1 %v2590_v45 }
0x1c51   :  { %v7312_v56 = vpop.eup %6232 }
0x1c52   :  { %v2593_v10 = vsel %vm55_vm1, %v7312_v56, 0.0 }
0x1c53   :  { %2594 = vadd.xlane.f32.xlu0 %v2593_v10 }
0x1c55   :  { %v7316_v11 = vpop.eup %6234 }
0x1c56   :  { %v2599_v13 = vsel %vm55_vm1, %v7316_v11, 0.0  ;;  %v6237_v4 = vpop.eup %6236 }
0x1c57   :  { %2600 = vadd.xlane.f32.xlu0 %v2599_v13  ;;  %v2596_v62 = vsel %vm55_vm1, %v6237_v4, 0.0 }
0x1c5b   :  { %2597 = vadd.xlane.f32.xlu0 %v2596_v62 }
0x1c61   :  { %6076 = vrot.lane.b32.xlu1 %v7218_v33, %s6332_s22 }
0x1c65   :  { %6081 = vrot.lane.b32.xlu1 %v7222_v31, %s6332_s22 }
0x1c71   :  { %6071 = vrot.lane.b32.xlu0 %v7209_v25, %s6332_s22 }
0x1cd3   :  { %v2583_v1 = vpop.xlane.xlu0 %2582 }
0x1cd4   :  { %v2580_v6 = vpop.xlane.xlu1 %2579 }
0x1cd5   :  { %6238 = vrcp.f32 %v2580_v6 }
0x1cd6   :  { %6240 = vrcp.f32 %v2583_v1 }
0x1cd8   :  { %v2586_v17 = vpop.xlane.xlu1 %2585 }
0x1cd9   :  { %6242 = vrcp.f32 %v2586_v17 }
0x1cdc   :  { %v2589_v12 = vpop.xlane.xlu0 %2588 }
0x1cdd   :  { %v2592_v23 = vpop.xlane.xlu1 %2591  ;;  %6244 = vrcp.f32 %v2589_v12 }
0x1cde   :  { %6246 = vrcp.f32 %v2592_v23  ;;  %v4589_v23 = vld [vmem:[%s7860_s6 + $0x14] ss:$0 sm:$0xff] }
0x1cdf   :  { %v6239_v27 = vpop.eup %6238 }
0x1ce0   :  { %v2595_v30 = vpop.xlane.xlu0 %2594  ;;  %v2610_v32 = vmul.f32 %v6239_v27, %v6225_v47  ;;  %v6241_v43 = vpop.eup %6240 }
0x1ce1   :  { %v6077_v26 = vpop.permute.xlu1 %6076  ;;  %6248 = vrcp.f32 %v2595_v30  ;;  %v2611_v46 = vmul.f32 %v6241_v43, %v7295_v5 }
0x1ce2   :  { %5316 = vmatprep.mubr.msk.f32.mxu1 %vm55_vm1, %v2610_v32  ;;  %v6079_v2 = vunpack.i.h.bf16 %v6077_v26  ;;  %v6078_v31 = vunpack.i.l.bf16 %v6077_v26 }
0x1ce3   :  { %v6243_v34 = vpop.eup %6242 }
0x1ce4   :  { %v2601_v61 = vpop.xlane.xlu0 %2600  ;;  %v5776_v29 = vpack.c.bf16 %v6079_v2, %v6078_v31  ;;  %v2612_v48 = vmul.f32 %v6243_v34, %v7300_v57  ;;  %v4585_v57 = vld [vmem:[%s7861_s3 + $0x40] sm:$0xff] }
0x1ce5   :  { %v6082_v25 = vpop.permute.xlu1 %6081  ;;  %v5784_v44 = vpack.c.bf16 %v4586_v49, %v4585_v57 }
0x1ce6   :  { %v6084_v50 = vunpack.i.h.bf16 %v6082_v25  ;;  %v6083_v58 = vunpack.i.l.bf16 %v6082_v25 }
0x1ce7   :  { %v6245_v47 = vpop.eup %6244  ;;  %5785 = vmatprep.subr.bf16.mxu0 %v5784_v44 }
0x1ce8   :  { %v2598_v33 = vpop.xlane.xlu0 %2597  ;;  %v5780_v8 = vpack.c.bf16 %v6084_v50, %v6083_v58  ;;  %v6247_v51 = vpop.eup %6246  ;;  %v2613_v16 = vmul.f32 %v6245_v47, %v7304_v39  ;;  %5787 = vmatpush3.bf16.msra.mxu0 %v5784_v44  ;;  %v4587_v39 = vld [vmem:[%s7861_s3 + $0x50] sm:$0xff]  ;;  %v4595_v47 = vld [vmem:[%s7862_s4 + $0x48] sm:$0xff] }
0x1ce9   :  { %6250 = vrcp.f32 %v2598_v33  ;;  %v2614_v53 = vmul.f32 %v6247_v51, %v7306_v18  ;;  %v4588_v18 = vld [vmem:[%s7861_s3 + $0x58] sm:$0xff]  ;;  %v4596_v51 = vld [vmem:[%s7862_s4 + $0x50] sm:$0xff] }
0x1cea   :  { %6252 = vrcp.f32 %v2601_v61  ;;  %v5788_v15 = vpack.c.bf16 %v4588_v18, %v4587_v39  ;;  %v4593_v18 = vld [vmem:[%s7860_s6 + $0x13] ss:$0 sm:$0xff] }
0x1ceb   :  { %v6249_v41 = vpop.eup %6248 }
0x1cec   :  { %v6072_v36 = vpop.permute.xlu0 %6071  ;;  %v2615_v5 = vmul.f32 %v6249_v41, %v7312_v56  ;;  %5789 = vmatprep.subr.bf16.mxu0 %v5788_v15 }
0x1ced   :  { %v6074_v38 = vunpack.i.h.bf16 %v6072_v36  ;;  %v6073_v19 = vunpack.i.l.bf16 %v6072_v36  ;;  %5791 = vmatpush3.bf16.msra.mxu0 %v5788_v15 }
0x1cef   :  { %v5772_v28 = vpack.c.bf16 %v6074_v38, %v6073_v19 }
0x1cf1   :  { %5773 = vmatprep.subr.bf16.mxu1 %v5772_v28 }
0x1cf2   :  { %5775 = vmatpush3.bf16.msra.mxu1 %v5772_v28 }
0x1cf3   :  { %5777 = vmatprep.subr.bf16.mxu1 %v5776_v29  ;;  %v6251_v3 = vpop.eup %6250 }
0x1cf4   :  { %v6253_v37 = vpop.eup %6252  ;;  %v2616_v20 = vmul.f32 %v6251_v3, %v6237_v4  ;;  %v4602_v3 = vld [vmem:[%s7863_s5 + $0x108] sm:$0xff] }
0x1cf5   :  { %v2617_v55 = vmul.f32 %v6253_v37, %v7316_v11 }
0x1cf6   :  { %5779 = vmatpush3.bf16.msra.mxu1 %v5776_v29 }
0x1cf7   :  { %5781 = vmatprep.subr.bf16.mxu1 %v5780_v8 }
0x1cfa   :  { %5783 = vmatpush3.bf16.msra.mxu1 %v5780_v8 }
0x1cfd   :  { %5317 = vmatmul.mubr.msk.f32.vlgmr.msra.gmra.mrb[24].mxu1 %vm55_vm1, %v2611_v46  ;;  %v4594_v46 = vld [vmem:[%s7862_s4 + $0x40] sm:$0xff] }
0x1cfe   :  { %5319 = vmatprep.mubr.msk.f32.mxu1 %vm55_vm1, %v2612_v48  ;;  %v5792_v48 = vpack.c.bf16 %v4595_v47, %v4594_v46 }
0x1d00   :  { %5793 = vmatprep.subr.bf16.mxu1 %v5792_v48 }
0x1d01   :  { %5320 = vmatmul.mubr.msk.f32.gmra.mrb[26].mxu1 %vm55_vm1, %v2613_v16  ;;  %v4597_v16 = vld [vmem:[%s7862_s4 + $0x58] sm:$0xff] }
0x1d02   :  { %5322 = vmatprep.mubr.msk.f32.mxu1 %vm55_vm1, %v2614_v53  ;;  %5795 = vmatpush3.bf16.msra.mxu1 %v5792_v48  ;;  %v5796_v41 = vpack.c.bf16 %v4597_v16, %v4596_v51  ;;  %v4601_v53 = vld [vmem:[%s7863_s5 + $0x100] sm:$0xff] }
0x1d04   :  { %5797 = vmatprep.subr.bf16.mxu1 %v5796_v41 }
0x1d05   :  { %5323 = vmatmul.mubr.msk.f32.gmra.mrb[28].mxu1 %vm55_vm1, %v2615_v5  ;;  %v5800_v5 = vpack.c.bf16 %v4602_v3, %v4601_v53 }
0x1d06   :  { %5325 = vmatprep.mubr.msk.f32.mxu1 %vm55_vm1, %v2616_v20  ;;  %5799 = vmatpush3.bf16.msra.mxu1 %v5796_v41 }
0x1d07   :  { %5801 = vmatprep.subr.bf16.mxu0 %v5800_v5 }
0x1d09   :  { %5326 = vmatmul.mubr.msk.f32.gmra.mrb[30].mxu1 %vm55_vm1, %v2617_v55 }
0x1dd0   :  { %v5318_v54 = vpop.f32.mrb[24].mxu1 }
0x1dd1   :  { %2772 = vst.msk [vmem:[#allocation3 + $0x8] sm:$0xff] %vm416_vm6, %v5318_v54  ;;  %v2732_v14 = vpop.f32.mrb[25].mxu1 }
0x1dd2   :  { %2771 = vst.msk [vmem:[#allocation3] sm:$0xff] %vm416_vm6, %v2732_v14  ;;  %v4592_v14 = vld [vmem:[%s7860_s6 + $0x12] ss:$0 sm:$0xff] }
0x1dd4   :  { %v5321_v45 = vpop.f32.mrb[26].mxu1 }
0x1dd5   :  { %2777 = vrot.lane.b32.xlu1 %v5321_v45, %s6333_s8  ;;  %v2742_v56 = vpop.f32.mrb[27].mxu1 }
0x1dd8   :  { %v5324_v10 = vpop.f32.mrb[28].mxu1 }
0x1dd9   :  { %2775 = vrot.lane.b32.xlu1 %v2742_v56, %s6333_s8  ;;  %v2752_v11 = vpop.f32.mrb[29].mxu1 }
0x1dda   :  { %2785 = vrot.lane.b32.xlu0 %v2752_v11, %s6334_s9 }
0x1ddc   :  { %v5327_v13 = vpop.f32.mrb[30].mxu1 }
0x1ddd   :  { %2787 = vrot.lane.b32.xlu1 %v5324_v10, %s6334_s9  ;;  %v2762_v4 = vpop.f32.mrb[31].mxu1 }
0x1dde   :  { %2795 = vrot.lane.b32.xlu0 %v2762_v4, %s6335_s10  ;;  %v4603_v4 = vld [vmem:[%s7863_s5 + $0x110] sm:$0xff] }
0x1de1   :  { %2797 = vrot.lane.b32.xlu1 %v5327_v13, %s6335_s10 }
0x1e47   :  { %v2778_v62 = vpop.permute.xlu1 %2777 }
0x1e48   :  { %2782 = vst.msk [vmem:[#allocation3 + $0x8] sm:$0xff] %vm821_vm10, %v2778_v62  ;;  %v4604_v62 = vld [vmem:[%s7863_s5 + $0x118] sm:$0xff] }
0x1e4b   :  { %v2776_v6 = vpop.permute.xlu1 %2775 }
0x1e4c   :  { %2781 = vst.msk [vmem:[#allocation3] sm:$0xff] %vm821_vm10, %v2776_v6  ;;  %v2786_v1 = vpop.permute.xlu0 %2785  ;;  %v5804_v6 = vpack.c.bf16 %v4604_v62, %v4603_v4 }
0x1e4d   :  { %2791 = vst.msk [vmem:[#allocation3] sm:$0xff] %vm832_vm11, %v2786_v1  ;;  %v4605_v1 = vld [vmem:[%s7863_s5 + $0x120] sm:$0xff] }
0x1e4f   :  { %v2788_v17 = vpop.permute.xlu1 %2787 }
0x1e50   :  { %2792 = vst.msk [vmem:[#allocation3 + $0x8] sm:$0xff] %vm832_vm11, %v2788_v17  ;;  %v2796_v12 = vpop.permute.xlu0 %2795  ;;  %v4606_v17 = vld [vmem:[%s7863_s5 + $0x128] sm:$0xff] }
0x1e51   :  { %2801 = vst.msk [vmem:[#allocation3] sm:$0xff] %vm843_vm12, %v2796_v12  ;;  %v5808_v12 = vpack.c.bf16 %v4606_v17, %v4605_v1 }
0x1e53   :  { %v2798_v27 = vpop.permute.xlu1 %2797 }
0x1e54   :  { %2802 = vst.msk [vmem:[#allocation3 + $0x8] sm:$0xff] %vm843_vm12, %v2798_v27  ;;  %v4607_v27 = vld [vmem:[%s7863_s5 + $0x130] sm:$0xff] }
0x1e58   :  { %v2803_v30 = vld [vmem:[#allocation3] sm:$0xff] }
0x1e59   :  { %5336 = vmatprep.mubr.msk.f32.mxu0 %vm225_vm4, %v2803_v30  ;;  %v4608_v30 = vld [vmem:[%s7863_s5 + $0x138] sm:$0xff] }
0x1e5b   :  { %v2804_v32 = vld [vmem:[#allocation3 + $0x8] sm:$0xff] }
0x1e5c   :  { %5337 = vmatmul.mubr.msk.f32.vlgmr.msra.gmra.mrb[36].mxu0 %vm225_vm4, %v2804_v32  ;;  %v5812_v32 = vpack.c.bf16 %v4608_v30, %v4607_v27 }
0x1e5d   :  { %5803 = vmatpush3.bf16.msra.mxu0 %v5800_v5 }
0x1e5e   :  { %5805 = vmatprep.subr.bf16.mxu0 %v5804_v6 }
0x1e61   :  { %5807 = vmatpush3.bf16.msra.mxu0 %v5804_v6 }
0x1e62   :  { %5809 = vmatprep.subr.bf16.mxu0 %v5808_v12 }
0x1e65   :  { %5811 = vmatpush3.bf16.msra.mxu0 %v5808_v12 }
0x1e66   :  { %5813 = vmatprep.subr.bf16.mxu0 %v5812_v32 }
0x1e69   :  { %5815 = vmatpush3.bf16.msra.mxu0 %v5812_v32 }
0x1f2f   :  { %v5338_v61 = vpop.f32.mrb[36].mxu0 }
0x1f30   :  { %v2893_v26 = vadd.f32 %v5338_v61, %v4589_v23  ;;  %v2887_v33 = vpop.f32.mrb[37].mxu0  ;;  %v4610_v61 = vld [vmem:[%s7863_s5 + $0x148] sm:$0xff] }
0x1f31   :  { %v2888_v36 = vadd.f32 %v4589_v23, %v2887_v33  ;;  %v4609_v23 = vld [vmem:[%s7863_s5 + $0x140] sm:$0xff]  ;;  %v4611_v33 = vld [vmem:[%s7863_s5 + $0x150] sm:$0xff] }
0x1f32   :  { %v7373_v2 = vadd.f32 %v2893_v26, %v7156_v7  ;;  %v5816_v26 = vpack.c.bf16 %v4610_v61, %v4609_v23  ;;  %v4620_v61 = vld [vmem:[%s7859_s2 + $0x60] sm:$0xff] }
0x1f33   :  { %v7376_v31 = vadd.f32 %v2888_v36, %v7158_v63  ;;  %v4612_v36 = vld [vmem:[%s7863_s5 + $0x158] sm:$0xff] }
0x1f34   :  { %v2903_v38 = vsel %vm225_vm4, %v7373_v2, 0.0  ;;  %5817 = vmatprep.subr.bf16.mxu0 %v5816_v26 }
0x1f35   :  { %2904 = vadd.xlane.f32.xlu1 %v2903_v38  ;;  %v2900_v19 = vsel %vm225_vm4, %v7376_v31, 0.0  ;;  %v5820_v38 = vpack.c.bf16 %v4612_v36, %v4611_v33  ;;  %5819 = vmatpush3.bf16.msra.mxu0 %v5816_v26  ;;  %v4621_v26 = vld [vmem:[%s7859_s2 + $0x68] sm:$0xff]  ;;  %v4622_v36 = vld [vmem:[%s7859_s2 + $0x70] sm:$0xff] }
0x1f36   :  { %2901 = vadd.xlane.f32.xlu0 %v2900_v19  ;;  %v4613_v19 = vld [vmem:[%s7863_s5 + $0x160] sm:$0xff]  ;;  %v5832_v33 = vpack.c.bf16 %v4621_v26, %v4620_v61 }
0x1f37   :  { %5821 = vmatprep.subr.bf16.mxu0 %v5820_v38 }
0x1f38   :  { %5833 = vmatprep.subr.bf16.mxu1 %v5832_v33 }
0x1f39   :  { %5823 = vmatpush3.bf16.msra.mxu0 %v5820_v38  ;;  %v4623_v38 = vld [vmem:[%s7859_s2 + $0x78] sm:$0xff] }
0x1fc2   :  { %v2905_v25 = vpop.xlane.xlu1 %2904 }
0x1fc3   :  { %v2907_v28 = vmul.f32 0.03125, %v2905_v25  ;;  %v2902_v29 = vpop.xlane.xlu0 %2901  ;;  %v4614_v25 = vld [vmem:[%s7863_s5 + $0x168] sm:$0xff] }
0x1fc4   :  { %v2906_v50 = vmul.f32 0.03125, %v2902_v29  ;;  %v4615_v29 = vld [vmem:[%s7863_s5 + $0x170] sm:$0xff] }
0x1fc5   :  { %v2909_v58 = vsub.f32 %v7373_v2, %v2907_v28  ;;  %v5824_v28 = vpack.c.bf16 %v4614_v25, %v4613_v19  ;;  %v5836_v19 = vpack.c.bf16 %v4623_v38, %v4622_v36 }
0x1fc6   :  { %v2908_v7 = vsub.f32 %v7376_v31, %v2906_v50  ;;  %v4616_v50 = vld [vmem:[%s7863_s5 + $0x178] sm:$0xff] }
0x1fc7   :  { %v2911_v43 = vmul.f32 %v2909_v58, %v2909_v58  ;;  %5825 = vmatprep.subr.bf16.mxu0 %v5824_v28 }
0x1fc8   :  { %v2910_v8 = vmul.f32 %v2908_v7, %v2908_v7  ;;  %5827 = vmatpush3.bf16.msra.mxu0 %v5824_v28 }
0x1fc9   :  { %v2915_v34 = vsel %vm225_vm4, %v2911_v43, 0.0 }
0x1fca   :  { %v2912_v63 = vsel %vm225_vm4, %v2910_v8, 0.0 }
0x1fcb   :  { %2913 = vadd.xlane.f32.xlu0 %v2912_v63 }
0x1fcf   :  { %2916 = vadd.xlane.f32.xlu0 %v2915_v34 }
0x2058   :  { %v2914_v37 = vpop.xlane.xlu0 %2913 }
0x2059   :  { %v2918_v20 = vmul.f32 0.03125, %v2914_v37 }
0x205b   :  { %v2920_v55 = vadd.f32 1e-05, %v2918_v20 }
0x205c   :  { %v2917_v57 = vpop.xlane.xlu0 %2916 }
0x205d   :  { %6254 = vrsqrt.f32 %v2920_v55  ;;  %v2919_v49 = vmul.f32 0.03125, %v2917_v57 }
0x205f   :  { %v2921_v44 = vadd.f32 1e-05, %v2919_v49 }
0x2061   :  { %6256 = vrsqrt.f32 %v2921_v44 }
0x2067   :  { %v6255_v54 = vpop.eup %6254 }
0x2068   :  { %v2924_v39 = vmul.f32 %v6255_v54, %v2908_v7  ;;  %v4598_v7 = vld [vmem:[%s7860_s6 + $0x17] ss:$0 sm:$0xff] }
0x206a   :  { %v2930_v15 = vmul.f32 %v4592_v14, %v2924_v39 }
0x206b   :  { %v6257_v45 = vpop.eup %6256 }
0x206c   :  { %v2925_v56 = vmul.f32 %v6257_v45, %v2909_v58  ;;  %v2936_v10 = vadd.f32 %v4593_v18, %v2930_v15  ;;  %v5828_v58 = vpack.c.bf16 %v4616_v50, %v4615_v29 }
0x206e   :  { %v2931_v11 = vmul.f32 %v4592_v14, %v2925_v56  ;;  %5347 = vmatprep.mubr.msk.f32.mxu1 %vm225_vm4, %v2936_v10  ;;  %5829 = vmatprep.subr.bf16.mxu0 %v5828_v58 }
0x206f   :  { %5831 = vmatpush3.bf16.msra.mxu0 %v5828_v58 }
0x2070   :  { %v2937_v13 = vadd.f32 %v4593_v18, %v2931_v11  ;;  %v4617_v18 = vld [vmem:[%s7860_s6 + $0x15] ss:$0 sm:$0xff] }
0x2072   :  { %5348 = vmatmul.mubr.msk.f32.vlgmr.msra.gmra.mrb[32].mxu1 %vm225_vm4, %v2937_v13 }
0x2073   :  { %5835 = vmatpush3.bf16.msra.mxu1 %v5832_v33 }
0x2074   :  { %5837 = vmatprep.subr.bf16.mxu1 %v5836_v19 }
0x2077   :  { %5839 = vmatpush3.bf16.msra.mxu1 %v5836_v19 }
0x2145   :  { %v5349_v8 = vpop.f32.mrb[32].mxu1 }
0x2146   :  { %v3026_v63 = vadd.f32 %v5349_v8, %v4598_v7  ;;  %v3020_v43 = vpop.f32.mrb[33].mxu1 }
0x2147   :  { %v3021_v34 = vadd.f32 %v4598_v7, %v3020_v43 }
0x2148   :  { %v3032_v46 = vmul.f32 0.044715, %v3026_v63  ;;  %v3030_v54 = vmul.f32 0.5, %v3026_v63 }
0x2149   :  { %v3031_v47 = vmul.f32 0.044715, %v3021_v34  ;;  %v3029_v49 = vmul.f32 0.5, %v3021_v34 }
0x214a   :  { %v3034_v48 = vmul.f32 %v3032_v46, %v3026_v63 }
0x214b   :  { %v3033_v51 = vmul.f32 %v3031_v47, %v3021_v34  ;;  %v4619_v47 = vld [vmem:[%s7860_s6 + $0x19] ss:$0 sm:$0xff] }
0x214c   :  { %v3036_v16 = vmul.f32 %v3034_v48, %v3026_v63 }
0x214d   :  { %v3035_v41 = vmul.f32 %v3033_v51, %v3021_v34 }
0x214e   :  { %v3038_v53 = vadd.f32 %v3036_v16, %v3026_v63  ;;  %v4618_v63 = vld [vmem:[%s7860_s6 + $0x18] ss:$0 sm:$0xff] }
0x214f   :  { %v3037_v3 = vadd.f32 %v3035_v41, %v3021_v34 }
0x2150   :  { %v3040_v5 = vmul.f32 0.7978846, %v3038_v53  ;;  %v4624_v53 = vld [vmem:[%s7860_s6 + $0x1e] ss:$0 sm:$0xff] }
0x2151   :  { %v3039_v37 = vmul.f32 0.7978846, %v3037_v3 }
0x2152   :  { %6258 = vtanh.f32 %v3040_v5 }
0x2153   :  { %6260 = vtanh.f32 %v3039_v37 }
0x215c   :  { %v6259_v20 = vpop.eup %6258 }
0x215d   :  { %v6261_v55 = vpop.eup %6260  ;;  %v3044_v57 = vadd.f32 1.0, %v6259_v20 }
0x215e   :  { %v3043_v44 = vadd.f32 1.0, %v6261_v55 }
0x215f   :  { %v3046_v39 = vmul.f32 %v3044_v57, %v3030_v54 }
0x2160   :  { %v3045_v14 = vmul.f32 %v3043_v44, %v3029_v49 }
0x2162   :  { %5382 = vmatprep.mubr.f32.mxu0 %v3045_v14 }
0x2163   :  { %5383 = vmatmul.mubr.f32.vlgmr.msra.gmra.mrb[38].mxu0 %v3046_v39 }
0x2236   :  { %v5384_v15 = vpop.f32.mrb[38].mxu0 }
0x2237   :  { %v3141_v45 = vadd.f32 %v5384_v15, %v4617_v18  ;;  %v3135_v56 = vpop.f32.mrb[39].mxu0 }
0x2238   :  { %v3136_v10 = vadd.f32 %v4617_v18, %v3135_v56 }
0x2239   :  { %v7461_v11 = vadd.f32 %v3141_v45, %v7373_v2 }
0x223a   :  { %v7464_v13 = vadd.f32 %v3136_v10, %v7376_v31 }
0x223b   :  { %v3151_v4 = vsel %vm225_vm4, %v7461_v11, 0.0 }
0x223c   :  { %3152 = vadd.xlane.f32.xlu0 %v3151_v4  ;;  %v3148_v62 = vsel %vm225_vm4, %v7464_v13, 0.0 }
0x223d   :  { %3149 = vadd.xlane.f32.xlu1 %v3148_v62 }
0x22c9   :  { %v3153_v6 = vpop.xlane.xlu0 %3152 }
0x22ca   :  { %v3155_v1 = vmul.f32 0.03125, %v3153_v6  ;;  %v3150_v17 = vpop.xlane.xlu1 %3149 }
0x22cb   :  { %v3154_v12 = vmul.f32 0.03125, %v3150_v17 }
0x22cc   :  { %v3157_v27 = vsub.f32 %v7461_v11, %v3155_v1 }
0x22cd   :  { %v3156_v2 = vsub.f32 %v7464_v13, %v3154_v12 }
0x22ce   :  { %v3159_v30 = vmul.f32 %v3157_v27, %v3157_v27 }
0x22cf   :  { %v3158_v32 = vmul.f32 %v3156_v2, %v3156_v2 }
0x22d0   :  { %v3163_v31 = vsel %vm225_vm4, %v3159_v30, 0.0 }
0x22d1   :  { %3164 = vadd.xlane.f32.xlu0 %v3163_v31  ;;  %v3160_v23 = vsel %vm225_vm4, %v3158_v32, 0.0 }
0x22d2   :  { %3161 = vadd.xlane.f32.xlu1 %v3160_v23 }
0x235e   :  { %v3165_v25 = vpop.xlane.xlu0 %3164 }
0x235f   :  { %v3167_v28 = vmul.f32 0.03125, %v3165_v25  ;;  %v3162_v29 = vpop.xlane.xlu1 %3161 }
0x2360   :  { %v3166_v50 = vmul.f32 0.03125, %v3162_v29 }
0x2361   :  { %v3169_v58 = vadd.f32 1e-05, %v3167_v28 }
0x2362   :  { %v3168_v7 = vadd.f32 1e-05, %v3166_v50 }
0x2363   :  { %6262 = vrsqrt.f32 %v3169_v58 }
0x2364   :  { %6264 = vrsqrt.f32 %v3168_v7 }
0x236d   :  { %v6263_v8 = vpop.eup %6262 }
0x236e   :  { %v6265_v43 = vpop.eup %6264  ;;  %v3173_v34 = vmul.f32 %v6263_v8, %v3157_v27 }
0x236f   :  { %v3172_v46 = vmul.f32 %v6265_v43, %v3156_v2 }
0x2370   :  { %v3179_v48 = vmul.f32 %v4618_v63, %v3173_v34 }
0x2371   :  { %v3178_v51 = vmul.f32 %v4618_v63, %v3172_v46 }
0x2372   :  { %v3185_v41 = vadd.f32 %v4619_v47, %v3179_v48 }
0x2373   :  { %v3184_v16 = vadd.f32 %v4619_v47, %v3178_v51 }
0x2375   :  { %5393 = vmatprep.mubr.msk.f32.mxu1 %vm225_vm4, %v3184_v16 }
0x2376   :  { %5394 = vmatmul.mubr.msk.f32.vlgmr.msra.gmra.mrb[34].mxu1 %vm225_vm4, %v3185_v41 }
0x2449   :  { %v5395_v3 = vpop.f32.mrb[34].mxu1 }
0x244a   :  { %v3274_v5 = vadd.f32 %v5395_v3, %v4624_v53  ;;  %v3268_v37 = vpop.f32.mrb[35].mxu1 }
0x244b   :  { %v3269_v20 = vadd.f32 %v4624_v53, %v3268_v37 }
0x244c   :  { %3278 = vst.msk [vmem:[#allocation2 + $0x8] sm:$0xff] %vm355_vm5, %v3274_v5  ;;  %3283 = vrot.lane.b32.xlu0 %v3274_v5, %s6327_s18 }
0x244d   :  { %3277 = vst.msk [vmem:[#allocation2] sm:$0xff] %vm355_vm5, %v3269_v20  ;;  %3281 = vrot.lane.b32.xlu1 %v3269_v20, %s6327_s18 }
0x2450   :  { %3297 = vrot.lane.b32.xlu0 %v3269_v20, %s6328_s19 }
0x2451   :  { %3289 = vrot.lane.b32.xlu1 %v3269_v20, %s6329_s20 }
0x2453   :  { %v3306_v55 = vld [vmem:[#allocation2 + $0x8] sm:$0xff] }
0x2454   :  { %v3305_v57 = vld [vmem:[#allocation2] sm:$0xff] }
0x2455   :  { %3291 = vrot.lane.b32.xlu1 %v3274_v5, %s6329_s20  ;;  %v7504_v49 = vpack.i.bf16 %v3306_v55, %v3305_v57  ;;  %5412 = vmatprep.mubr.msk.f32.mxu1 %vm416_vm6, %v3305_v57 }
0x2457   :  { %6086 = vrot.lane.b32.xlu0 %v7504_v49, %s6330_s21 }
0x2459   :  { %3299 = vrot.lane.b32.xlu1 %v3274_v5, %s6328_s19 }
0x24be   :  { %v3284_v44 = vpop.permute.xlu0 %3283 }
0x24bf   :  { %3288 = vst.msk [vmem:[#allocation2 + $0x18] sm:$0xff] %vm355_vm5, %v3284_v44  ;;  %v3282_v54 = vpop.permute.xlu1 %3281 }
0x24c0   :  { %3287 = vst.msk [vmem:[#allocation2 + $0x10] sm:$0xff] %vm355_vm5, %v3282_v54 }
0x24c2   :  { %v3298_v14 = vpop.permute.xlu0 %3297 }
0x24c3   :  { %3303 = vst.msk [vmem:[#allocation2 + $0x30] sm:$0xff] %vm355_vm5, %v3298_v14  ;;  %v3290_v39 = vpop.permute.xlu1 %3289 }
0x24c4   :  { %3295 = vst.msk [vmem:[#allocation2 + $0x20] sm:$0xff] %vm355_vm5, %v3290_v39 }
0x24c6   :  { %v3308_v18 = vld [vmem:[#allocation2 + $0x18] sm:$0xff] }
0x24c7   :  { %v3292_v15 = vpop.permute.xlu1 %3291  ;;  %v3307_v45 = vld [vmem:[#allocation2 + $0x10] sm:$0xff] }
0x24c8   :  { %3296 = vst.msk [vmem:[#allocation2 + $0x28] sm:$0xff] %vm355_vm5, %v3292_v15  ;;  %v7515_v56 = vpack.i.bf16 %v3308_v18, %v3307_v45 }
0x24c9   :  { %v6087_v10 = vpop.permute.xlu0 %6086 }
0x24ca   :  { %v6089_v4 = vunpack.i.h.bf16 %v6087_v10  ;;  %v6088_v62 = vunpack.i.l.bf16 %v6087_v10  ;;  %6091 = vrot.lane.b32.xlu1 %v7515_v56, %s6330_s21  ;;  %v3311_v2 = vld [vmem:[#allocation2 + $0x30] sm:$0xff] }
0x24cb   :  { %v3300_v6 = vpop.permute.xlu1 %3299  ;;  %v3309_v17 = vld [vmem:[#allocation2 + $0x20] sm:$0xff] }
0x24cc   :  { %v5840_v1 = vpack.c.bf16 %v6089_v4, %v6088_v62  ;;  %3304 = vst.msk [vmem:[#allocation2 + $0x38] sm:$0xff] %vm355_vm5, %v3300_v6  ;;  %vm7756_vm5 = vmpackc.low %vm225_vm4, %vm225_vm4 }
0x24ce   :  { %5842 = vmatprep.subr.msk.bf16.mxu1 %vm6497_vm7, %v5840_v1 }
0x24cf   :  { %5845 = vmatpush3.bf16.xpose.msk.msra.mxu1 %vm6497_vm7, %v5840_v1  ;;  %v3310_v12 = vld [vmem:[#allocation2 + $0x28] sm:$0xff] }
0x24d0   :  { %v7524_v27 = vpack.i.bf16 %v3310_v12, %v3309_v17 }
0x24d2   :  { %6096 = vrot.lane.b32.xlu0 %v7524_v27, %s6330_s21 }
0x24d3   :  { %v3312_v30 = vld [vmem:[#allocation2 + $0x38] sm:$0xff] }
0x24d4   :  { %v7528_v32 = vpack.i.bf16 %v3312_v30, %v3311_v2 }
0x24d6   :  { %6101 = vrot.lane.b32.xlu1 %v7528_v32, %s6330_s21 }
0x253c   :  { %v6092_v31 = vpop.permute.xlu1 %6091 }
0x253d   :  { %v6094_v23 = vunpack.i.h.bf16 %v6092_v31  ;;  %v6093_v61 = vunpack.i.l.bf16 %v6092_v31 }
0x253f   :  { %v5846_v26 = vpack.c.bf16 %v6094_v23, %v6093_v61 }
0x2541   :  { %5848 = vmatprep.subr.msk.bf16.mxu1 %vm6497_vm7, %v5846_v26 }
0x2542   :  { %5851 = vmatpush3.bf16.xpose.msk.msra.mxu1 %vm6497_vm7, %v5846_v26 }
0x2544   :  { %v6097_v33 = vpop.permute.xlu0 %6096 }
0x2545   :  { %v6099_v36 = vunpack.i.h.bf16 %v6097_v33  ;;  %v6098_v38 = vunpack.i.l.bf16 %v6097_v33 }
0x2547   :  { %v5852_v19 = vpack.c.bf16 %v6099_v36, %v6098_v38 }
0x2548   :  { %v6102_v25 = vpop.permute.xlu1 %6101 }
0x2549   :  { %v6104_v28 = vunpack.i.h.bf16 %v6102_v25  ;;  %v6103_v29 = vunpack.i.l.bf16 %v6102_v25  ;;  %5854 = vmatprep.subr.msk.bf16.mxu1 %vm6497_vm7, %v5852_v19 }
0x254a   :  { %5857 = vmatpush3.bf16.xpose.msk.msra.mxu1 %vm6497_vm7, %v5852_v19 }
0x254b   :  { %v5858_v50 = vpack.c.bf16 %v6104_v28, %v6103_v29 }
0x254d   :  { %5860 = vmatprep.subr.msk.bf16.mxu1 %vm6497_vm7, %v5858_v50 }
0x2552   :  { %5863 = vmatpush3.bf16.xpose.msk.msra.mxu1 %vm6497_vm7, %v5858_v50 }
0x2559   :  { %5413 = vmatmul.mubr.msk.f32.vlgmr.msra.gmra.mrb[36].mxu1 %vm416_vm6, %v3306_v55 }
0x255a   :  { %5415 = vmatprep.mubr.msk.f32.mxu1 %vm416_vm6, %v3307_v45 }
0x255d   :  { %5416 = vmatmul.mubr.msk.f32.gmra.mrb[38].mxu1 %vm416_vm6, %v3308_v18 }
0x255e   :  { %5418 = vmatprep.mubr.msk.f32.mxu1 %vm416_vm6, %v3309_v17 }
0x2561   :  { %5419 = vmatmul.mubr.msk.f32.gmra.mrb[40].mxu1 %vm416_vm6, %v3310_v12 }
0x2562   :  { %5421 = vmatprep.mubr.msk.f32.mxu1 %vm416_vm6, %v3311_v2 }
0x2565   :  { %5422 = vmatmul.mubr.msk.f32.gmra.mrb[42].mxu1 %vm416_vm6, %v3312_v30 }
0x262c   :  { %v5414_v58 = vpop.f32.mrb[36].mxu1 }
0x262d   :  { %v3475_v7 = vmul.f32 0.35355338, %v5414_v58  ;;  %v3435_v8 = vpop.f32.mrb[37].mxu1 }
0x262e   :  { %v3474_v63 = vmul.f32 0.35355338, %v3435_v8 }
0x262f   :  { %v3483_v35 = vadd.f32 %v3475_v7, %v7247_v40 }
0x2630   :  { %v3482_v43 = vadd.f32 %v3474_v63, %v7251_v0  ;;  %v5417_v34 = vpop.f32.mrb[38].mxu1 }
0x2631   :  { %v3477_v46 = vmul.f32 0.35355338, %v5417_v34  ;;  %v3445_v47 = vpop.f32.mrb[39].mxu1  ;;  %v3493_v48 = vsel %vm55_vm1, %v3483_v35, -inf }
0x2632   :  { %v3476_v51 = vmul.f32 0.35355338, %v3445_v47  ;;  %3494 = vmax.xlane.f32.xlu1 %v3493_v48  ;;  %v3490_v16 = vsel %vm55_vm1, %v3482_v43, -inf }
0x2633   :  { %3491 = vmax.xlane.f32.xlu0 %v3490_v16  ;;  %v3485_v3 = vadd.f32 %v3477_v46, %v7261_v9 }
0x2634   :  { %v3484_v41 = vadd.f32 %v3476_v51, %v7257_v52  ;;  %v5420_v53 = vpop.f32.mrb[40].mxu1 }
0x2635   :  { %v3455_v5 = vpop.f32.mrb[41].mxu1  ;;  %v3479_v37 = vmul.f32 0.35355338, %v5420_v53  ;;  %v3499_v44 = vsel %vm55_vm1, %v3485_v3, -inf }
0x2636   :  { %v3478_v40 = vmul.f32 0.35355338, %v3455_v5  ;;  %v3496_v0 = vsel %vm55_vm1, %v3484_v41, -inf }
0x2637   :  { %3497 = vmax.xlane.f32.xlu0 %v3496_v0  ;;  %v3487_v54 = vadd.f32 %v3479_v37, %v7273_v60 }
0x2638   :  { %v3486_v20 = vadd.f32 %v3478_v40, %v7268_v42  ;;  %v5423_v55 = vpop.f32.mrb[42].mxu1 }
0x2639   :  { %v3465_v57 = vpop.f32.mrb[43].mxu1  ;;  %v3481_v14 = vmul.f32 0.35355338, %v5423_v55  ;;  %v3505_v15 = vsel %vm55_vm1, %v3487_v54, -inf }
0x263a   :  { %v3480_v39 = vmul.f32 0.35355338, %v3465_v57  ;;  %v3502_v52 = vsel %vm55_vm1, %v3486_v20, -inf }
0x263b   :  { %3500 = vmax.xlane.f32.xlu0 %v3499_v44  ;;  %3503 = vmax.xlane.f32.xlu1 %v3502_v52  ;;  %v3489_v18 = vadd.f32 %v3481_v14, %v7283_v59 }
0x263c   :  { %v3488_v9 = vadd.f32 %v3480_v39, %v7279_v21 }
0x263d   :  { %v3511_v45 = vsel %vm55_vm1, %v3489_v18, -inf }
0x263e   :  { %v3508_v42 = vsel %vm55_vm1, %v3488_v9, -inf }
0x263f   :  { %3506 = vmax.xlane.f32.xlu0 %v3505_v15  ;;  %3509 = vmax.xlane.f32.xlu1 %v3508_v42 }
0x2643   :  { %3512 = vmax.xlane.f32.xlu0 %v3511_v45 }
0x2650   :  { %6106 = vrot.lane.b32.xlu1 %v7504_v49, %s6332_s22 }
0x26bf   :  { %v3495_v60 = vpop.xlane.xlu1 %3494 }
0x26c0   :  { %v3515_v10 = vsub.f32 %v3483_v35, %v3495_v60  ;;  %v3492_v4 = vpop.xlane.xlu0 %3491 }
0x26c1   :  { %v3514_v62 = vsub.f32 %v3482_v43, %v3492_v4 }
0x26c2   :  { %v3524_v6 = vmul.f32 1.442695, %v3515_v10 }
0x26c3   :  { %v3522_v21 = vmul.f32 1.442695, %v3514_v62 }
0x26c4   :  { %6266 = vpow2.f32 %v3524_v6  ;;  %v3498_v59 = vpop.xlane.xlu0 %3497 }
0x26c5   :  { %6268 = vpow2.f32 %v3522_v21  ;;  %v3516_v1 = vsub.f32 %v3484_v41, %v3498_v59 }
0x26c7   :  { %v3526_v17 = vmul.f32 1.442695, %v3516_v1 }
0x26c8   :  { %v3501_v12 = vpop.xlane.xlu0 %3500  ;;  %v3504_v2 = vpop.xlane.xlu1 %3503 }
0x26c9   :  { %6270 = vpow2.f32 %v3526_v17  ;;  %v3517_v30 = vsub.f32 %v3485_v3, %v3501_v12  ;;  %v3518_v31 = vsub.f32 %v3486_v20, %v3504_v2 }
0x26cb   :  { %v3528_v23 = vmul.f32 1.442695, %v3517_v30  ;;  %v3530_v61 = vmul.f32 1.442695, %v3518_v31 }
0x26cc   :  { %v3507_v26 = vpop.xlane.xlu0 %3506  ;;  %v3510_v49 = vpop.xlane.xlu1 %3509 }
0x26cd   :  { %6272 = vpow2.f32 %v3528_v23  ;;  %v3519_v33 = vsub.f32 %v3487_v54, %v3507_v26  ;;  %v3520_v25 = vsub.f32 %v3488_v9, %v3510_v49 }
0x26ce   :  { %v7569_v36 = vpop.eup %6266  ;;  %6274 = vpow2.f32 %v3530_v61 }
0x26cf   :  { %v6269_v38 = vpop.eup %6268  ;;  %v3532_v19 = vmul.f32 1.442695, %v3519_v33  ;;  %v3541_v28 = vsel %vm55_vm1, %v7569_v36, 0.0  ;;  %v3534_v43 = vmul.f32 1.442695, %v3520_v25  ;;  %v4652_v25 = vld [vmem:[%s7861_s3 + $0x68] sm:$0xff] }
0x26d0   :  { %3542 = vadd.xlane.f32.xlu0 %v3541_v28  ;;  %v3513_v29 = vpop.xlane.xlu0 %3512  ;;  %v6107_v50 = vpop.permute.xlu1 %6106  ;;  %v3538_v58 = vsel %vm55_vm1, %v6269_v38, 0.0 }
0x26d1   :  { %6276 = vpow2.f32 %v3532_v19  ;;  %v3521_v7 = vsub.f32 %v3489_v18, %v3513_v29  ;;  %v6109_v8 = vunpack.i.h.bf16 %v6107_v50  ;;  %v6108_v63 = vunpack.i.l.bf16 %v6107_v50  ;;  %3539 = vadd.xlane.f32.xlu1 %v3538_v58  ;;  %v4651_v19 = vld [vmem:[%s7861_s3 + $0x60] sm:$0xff]  ;;  %v4653_v58 = vld [vmem:[%s7861_s3 + $0x70] sm:$0xff] }
0x26d2   :  { %v5880_v28 = vpack.c.bf16 %v4652_v25, %v4651_v19 }
0x26d3   :  { %v7574_v35 = vpop.eup %6270  ;;  %v3536_v34 = vmul.f32 1.442695, %v3521_v7  ;;  %v5864_v46 = vpack.c.bf16 %v6109_v8, %v6108_v63  ;;  %v4654_v7 = vld [vmem:[%s7861_s3 + $0x78] sm:$0xff] }
0x26d4   :  { %v3544_v47 = vsel %vm55_vm1, %v7574_v35, 0.0  ;;  %5881 = vmatprep.subr.bf16.mxu1 %v5880_v28  ;;  %v5884_v8 = vpack.c.bf16 %v4654_v7, %v4653_v58  ;;  %v4670_v58 = vld [vmem:[%s7863_s5 + $0x198] sm:$0xff] }
0x26d5   :  { %6278 = vpow2.f32 %v3536_v34  ;;  %3545 = vadd.xlane.f32.xlu1 %v3544_v47  ;;  %5865 = vmatprep.subr.bf16.mxu0 %v5864_v46 }
0x26d6   :  { %5867 = vmatpush3.bf16.msra.mxu0 %v5864_v46  ;;  %6280 = vpow2.f32 %v3534_v43  ;;  %5883 = vmatpush3.bf16.msra.mxu1 %v5880_v28 }
0x26d7   :  { %v7578_v48 = vpop.eup %6272  ;;  %5885 = vmatprep.subr.bf16.mxu1 %v5884_v8 }
0x26d8   :  { %v7580_v51 = vpop.eup %6274  ;;  %v3547_v16 = vsel %vm55_vm1, %v7578_v48, 0.0 }
0x26d9   :  { %3548 = vadd.xlane.f32.xlu0 %v3547_v16  ;;  %v3550_v41 = vsel %vm55_vm1, %v7580_v51, 0.0 }
0x26da   :  { %3551 = vadd.xlane.f32.xlu1 %v3550_v41  ;;  %5887 = vmatpush3.bf16.msra.mxu1 %v5884_v8  ;;  %v4671_v8 = vld [vmem:[%s7863_s5 + $0x1a0] sm:$0xff] }
0x26db   :  { %v7586_v53 = vpop.eup %6276 }
0x26dc   :  { %v3553_v3 = vsel %vm55_vm1, %v7586_v53, 0.0 }
0x26dd   :  { %3554 = vadd.xlane.f32.xlu0 %v3553_v3 }
0x26df   :  { %v7590_v5 = vpop.eup %6278 }
0x26e0   :  { %v3559_v37 = vsel %vm55_vm1, %v7590_v5, 0.0  ;;  %v6281_v40 = vpop.eup %6280 }
0x26e1   :  { %3560 = vadd.xlane.f32.xlu0 %v3559_v37  ;;  %v3556_v0 = vsel %vm55_vm1, %v6281_v40, 0.0 }
0x26e5   :  { %3557 = vadd.xlane.f32.xlu0 %v3556_v0 }
0x26eb   :  { %6116 = vrot.lane.b32.xlu1 %v7524_v27, %s6332_s22 }
0x26ef   :  { %6121 = vrot.lane.b32.xlu1 %v7528_v32, %s6332_s22 }
0x26fb   :  { %6111 = vrot.lane.b32.xlu0 %v7515_v56, %s6332_s22 }
0x275d   :  { %v3543_v55 = vpop.xlane.xlu0 %3542 }
0x275e   :  { %v3540_v20 = vpop.xlane.xlu1 %3539 }
0x275f   :  { %6282 = vrcp.f32 %v3540_v20 }
0x2760   :  { %6284 = vrcp.f32 %v3543_v55 }
0x2762   :  { %v3546_v57 = vpop.xlane.xlu1 %3545 }
0x2763   :  { %6286 = vrcp.f32 %v3546_v57 }
0x2766   :  { %v3549_v44 = vpop.xlane.xlu0 %3548 }
0x2767   :  { %v3552_v52 = vpop.xlane.xlu1 %3551  ;;  %6288 = vrcp.f32 %v3549_v44 }
0x2768   :  { %6290 = vrcp.f32 %v3552_v52 }
0x2769   :  { %v6283_v54 = vpop.eup %6282 }
0x276a   :  { %v3555_v14 = vpop.xlane.xlu0 %3554  ;;  %v3570_v39 = vmul.f32 %v6283_v54, %v6269_v38  ;;  %v6285_v59 = vpop.eup %6284 }
0x276b   :  { %v6117_v18 = vpop.permute.xlu1 %6116  ;;  %6292 = vrcp.f32 %v3555_v14  ;;  %v3571_v17 = vmul.f32 %v6285_v59, %v7569_v36  ;;  %v4668_v59 = vld [vmem:[%s7863_s5 + $0x188] sm:$0xff] }
0x276c   :  { %5440 = vmatprep.mubr.msk.f32.mxu0 %vm55_vm1, %v3570_v39  ;;  %v6119_v42 = vunpack.i.h.bf16 %v6117_v18  ;;  %v6118_v32 = vunpack.i.l.bf16 %v6117_v18 }
0x276d   :  { %v6287_v1 = vpop.eup %6286 }
0x276e   :  { %v3561_v9 = vpop.xlane.xlu0 %3560  ;;  %v5872_v4 = vpack.c.bf16 %v6119_v42, %v6118_v32  ;;  %v3572_v2 = vmul.f32 %v6287_v1, %v7574_v35 }
0x276f   :  { %v6122_v56 = vpop.permute.xlu1 %6121 }
0x2770   :  { %v6124_v62 = vunpack.i.h.bf16 %v6122_v56  ;;  %v6123_v6 = vunpack.i.l.bf16 %v6122_v56  ;;  %v4661_v56 = vld [vmem:[%s7862_s4 + $0x68] sm:$0xff] }
0x2771   :  { %v6289_v12 = vpop.eup %6288 }
0x2772   :  { %v3558_v27 = vpop.xlane.xlu0 %3557  ;;  %v5876_v21 = vpack.c.bf16 %v6124_v62, %v6123_v6  ;;  %v6291_v30 = vpop.eup %6290  ;;  %v3573_v31 = vmul.f32 %v6289_v12, %v7578_v48  ;;  %v4663_v62 = vld [vmem:[%s7862_s4 + $0x78] sm:$0xff] }
0x2773   :  { %6294 = vrcp.f32 %v3558_v27  ;;  %v3574_v61 = vmul.f32 %v6291_v30, %v7580_v51 }
0x2774   :  { %6296 = vrcp.f32 %v3561_v9 }
0x2775   :  { %v6293_v23 = vpop.eup %6292 }
0x2776   :  { %v6112_v15 = vpop.permute.xlu0 %6111  ;;  %v3575_v49 = vmul.f32 %v6293_v23, %v7586_v53 }
0x2777   :  { %v6114_v45 = vunpack.i.h.bf16 %v6112_v15  ;;  %v6113_v60 = vunpack.i.l.bf16 %v6112_v15 }
0x2779   :  { %v5868_v10 = vpack.c.bf16 %v6114_v45, %v6113_v60  ;;  %v4660_v60 = vld [vmem:[%s7862_s4 + $0x60] sm:$0xff] }
0x277b   :  { %5869 = vmatprep.subr.bf16.mxu0 %v5868_v10 }
0x277c   :  { %5871 = vmatpush3.bf16.msra.mxu0 %v5868_v10  ;;  %v5888_v10 = vpack.c.bf16 %v4661_v56, %v4660_v60 }
0x277d   :  { %5873 = vmatprep.subr.bf16.mxu0 %v5872_v4  ;;  %v6295_v26 = vpop.eup %6294 }
0x277e   :  { %v6297_v33 = vpop.eup %6296  ;;  %v3576_v36 = vmul.f32 %v6295_v26, %v6281_v40  ;;  %v4655_v40 = vld [vmem:[%s7860_s6 + $0x1c] ss:$0 sm:$0xff]  ;;  %v4658_v26 = vld [vmem:[%s7860_s6 + $0x1a] ss:$0 sm:$0xff] }
0x277f   :  { %v3577_v38 = vmul.f32 %v6297_v33, %v7590_v5  ;;  %v4659_v33 = vld [vmem:[%s7860_s6 + $0x1b] ss:$0 sm:$0xff] }
0x2780   :  { %5875 = vmatpush3.bf16.msra.mxu0 %v5872_v4  ;;  %v4662_v4 = vld [vmem:[%s7862_s4 + $0x70] sm:$0xff] }
0x2781   :  { %5877 = vmatprep.subr.bf16.mxu0 %v5876_v21  ;;  %v5892_v6 = vpack.c.bf16 %v4663_v62, %v4662_v4 }
0x2784   :  { %5879 = vmatpush3.bf16.msra.mxu0 %v5876_v21  ;;  %v4667_v21 = vld [vmem:[%s7863_s5 + $0x180] sm:$0xff] }
0x2785   :  { %5889 = vmatprep.subr.bf16.mxu0 %v5888_v10  ;;  %v5896_v1 = vpack.c.bf16 %v4668_v59, %v4667_v21 }
0x2787   :  { %5441 = vmatmul.mubr.msk.f32.vlgmr.msra.gmra.mrb[40].mxu0 %vm55_vm1, %v3571_v17  ;;  %5897 = vmatprep.subr.bf16.mxu1 %v5896_v1 }
0x2788   :  { %5443 = vmatprep.mubr.msk.f32.mxu0 %vm55_vm1, %v3572_v2  ;;  %5891 = vmatpush3.bf16.msra.mxu0 %v5888_v10 }
0x2789   :  { %5893 = vmatprep.subr.bf16.mxu0 %v5892_v6 }
0x278b   :  { %5444 = vmatmul.mubr.msk.f32.gmra.mrb[42].mxu0 %vm55_vm1, %v3573_v31 }
0x278c   :  { %5446 = vmatprep.mubr.msk.f32.mxu0 %vm55_vm1, %v3574_v61  ;;  %5895 = vmatpush3.bf16.msra.mxu0 %v5892_v6 }
0x278f   :  { %5447 = vmatmul.mubr.msk.f32.gmra.mrb[44].mxu0 %vm55_vm1, %v3575_v49 }
0x2790   :  { %5449 = vmatprep.mubr.msk.f32.mxu0 %vm55_vm1, %v3576_v36 }
0x2793   :  { %5450 = vmatmul.mubr.msk.f32.gmra.mrb[46].mxu0 %vm55_vm1, %v3577_v38 }
0x285a   :  { %v5442_v29 = vpop.f32.mrb[40].mxu0 }
0x285b   :  { %3732 = vst.msk [vmem:[#allocation3 + $0x8] sm:$0xff] %vm416_vm6, %v5442_v29  ;;  %v3692_v50 = vpop.f32.mrb[41].mxu0 }
0x285c   :  { %3731 = vst.msk [vmem:[#allocation3] sm:$0xff] %vm416_vm6, %v3692_v50  ;;  %v4669_v50 = vld [vmem:[%s7863_s5 + $0x190] sm:$0xff] }
0x285d   :  { %v5900_v7 = vpack.c.bf16 %v4670_v58, %v4669_v50 }
0x285e   :  { %v5445_v63 = vpop.f32.mrb[42].mxu0 }
0x285f   :  { %3737 = vrot.lane.b32.xlu1 %v5445_v63, %s6333_s8  ;;  %v3702_v35 = vpop.f32.mrb[43].mxu0  ;;  %v4672_v63 = vld [vmem:[%s7863_s5 + $0x1a8] sm:$0xff] }
0x2862   :  { %v5448_v43 = vpop.f32.mrb[44].mxu0 }
0x2863   :  { %3735 = vrot.lane.b32.xlu1 %v3702_v35, %s6333_s8  ;;  %v3712_v34 = vpop.f32.mrb[45].mxu0  ;;  %v5904_v35 = vpack.c.bf16 %v4672_v63, %v4671_v8 }
0x2864   :  { %3745 = vrot.lane.b32.xlu0 %v3712_v34, %s6334_s9  ;;  %v4674_v34 = vld [vmem:[%s7863_s5 + $0x1b8] sm:$0xff] }
0x2866   :  { %v5451_v46 = vpop.f32.mrb[46].mxu0 }
0x2867   :  { %3747 = vrot.lane.b32.xlu1 %v5448_v43, %s6334_s9  ;;  %v3722_v47 = vpop.f32.mrb[47].mxu0  ;;  %v4673_v43 = vld [vmem:[%s7863_s5 + $0x1b0] sm:$0xff] }
0x2868   :  { %3755 = vrot.lane.b32.xlu0 %v3722_v47, %s6335_s10  ;;  %v4675_v47 = vld [vmem:[%s7863_s5 + $0x1c0] sm:$0xff] }
0x286b   :  { %3757 = vrot.lane.b32.xlu1 %v5451_v46, %s6335_s10  ;;  %v5908_v46 = vpack.c.bf16 %v4674_v34, %v4673_v43 }
0x28d1   :  { %v3738_v48 = vpop.permute.xlu1 %3737 }
0x28d2   :  { %3742 = vst.msk [vmem:[#allocation3 + $0x8] sm:$0xff] %vm821_vm10, %v3738_v48  ;;  %v4676_v48 = vld [vmem:[%s7863_s5 + $0x1c8] sm:$0xff] }
0x28d5   :  { %v3736_v51 = vpop.permute.xlu1 %3735 }
0x28d6   :  { %3741 = vst.msk [vmem:[#allocation3] sm:$0xff] %vm821_vm10, %v3736_v51  ;;  %v3746_v16 = vpop.permute.xlu0 %3745  ;;  %v5912_v51 = vpack.c.bf16 %v4676_v48, %v4675_v47  ;;  %vm4423_vm10 = vcmp.eq.s32.totalorder %v6421_v22, 0 }
0x28d7   :  { %3751 = vst.msk [vmem:[#allocation3] sm:$0xff] %vm832_vm11, %v3746_v16  ;;  %v4677_v16 = vld [vmem:[%s7863_s5 + $0x1d0] sm:$0xff] }
0x28d9   :  { %v3748_v41 = vpop.permute.xlu1 %3747 }
0x28da   :  { %3752 = vst.msk [vmem:[#allocation3 + $0x8] sm:$0xff] %vm832_vm11, %v3748_v41  ;;  %v3756_v53 = vpop.permute.xlu0 %3755  ;;  %v4678_v41 = vld [vmem:[%s7863_s5 + $0x1d8] sm:$0xff] }
0x28db   :  { %3761 = vst.msk [vmem:[#allocation3] sm:$0xff] %vm843_vm12, %v3756_v53  ;;  %v5916_v53 = vpack.c.bf16 %v4678_v41, %v4677_v16 }
0x28dd   :  { %v3758_v3 = vpop.permute.xlu1 %3757 }
0x28de   :  { %3762 = vst.msk [vmem:[#allocation3 + $0x8] sm:$0xff] %vm843_vm12, %v3758_v3  ;;  %v4679_v3 = vld [vmem:[%s7863_s5 + $0x1e0] sm:$0xff] }
0x28e2   :  { %v3763_v5 = vld [vmem:[#allocation3] sm:$0xff] }
0x28e3   :  { %5460 = vmatprep.mubr.msk.f32.mxu1 %vm225_vm4, %v3763_v5  ;;  %v4680_v5 = vld [vmem:[%s7863_s5 + $0x1e8] sm:$0xff] }
0x28e5   :  { %v3764_v37 = vld [vmem:[#allocation3 + $0x8] sm:$0xff] }
0x28e6   :  { %5461 = vmatmul.mubr.msk.f32.vlgmr.msra.gmra.mrb[44].mxu1 %vm225_vm4, %v3764_v37  ;;  %v5920_v37 = vpack.c.bf16 %v4680_v5, %v4679_v3 }
0x28e7   :  { %5899 = vmatpush3.bf16.msra.mxu1 %v5896_v1 }
0x28e8   :  { %5901 = vmatprep.subr.bf16.mxu1 %v5900_v7 }
0x28eb   :  { %5903 = vmatpush3.bf16.msra.mxu1 %v5900_v7 }
0x28ec   :  { %5905 = vmatprep.subr.bf16.mxu1 %v5904_v35 }
0x28ef   :  { %5907 = vmatpush3.bf16.msra.mxu1 %v5904_v35 }
0x28f0   :  { %5909 = vmatprep.subr.bf16.mxu1 %v5908_v46 }
0x28f3   :  { %5911 = vmatpush3.bf16.msra.mxu1 %v5908_v46  ;;  %v4684_v46 = vld [vmem:[%s7860_s6 + $0x22] ss:$0 sm:$0xff] }
0x28f4   :  { %5913 = vmatprep.subr.bf16.mxu1 %v5912_v51 }
0x28f7   :  { %5915 = vmatpush3.bf16.msra.mxu1 %v5912_v51  ;;  %v4685_v51 = vld [vmem:[%s7860_s6 + $0x23] ss:$0 sm:$0xff] }
0x28f8   :  { %5917 = vmatprep.subr.bf16.mxu1 %v5916_v53 }
0x28fb   :  { %5919 = vmatpush3.bf16.msra.mxu1 %v5916_v53 }
0x28fc   :  { %5921 = vmatprep.subr.bf16.mxu1 %v5920_v37 }
0x28ff   :  { %5923 = vmatpush3.bf16.msra.mxu1 %v5920_v37 }
0x29b9   :  { %v5462_v0 = vpop.f32.mrb[44].mxu1 }
0x29ba   :  { %v3853_v20 = vadd.f32 %v5462_v0, %v4655_v40  ;;  %v3847_v55 = vpop.f32.mrb[45].mxu1  ;;  %v4682_v0 = vld [vmem:[%s7863_s5 + $0x1f8] sm:$0xff] }
0x29bb   :  { %v3848_v57 = vadd.f32 %v4655_v40, %v3847_v55  ;;  %v4681_v40 = vld [vmem:[%s7863_s5 + $0x1f0] sm:$0xff]  ;;  %v4664_v55 = vld [vmem:[%s7860_s6 + $0x1f] ss:$0 sm:$0xff] }
0x29bc   :  { %v7647_v44 = vadd.f32 %v3853_v20, %v7461_v11  ;;  %v5924_v20 = vpack.c.bf16 %v4682_v0, %v4681_v40  ;;  %v4186_v0 = vld [vmem:[%s7858_s1 + $0x40] sm:$0xff] }
0x29bd   :  { %v7650_v54 = vadd.f32 %v3848_v57, %v7464_v13 }
0x29be   :  { %v3863_v14 = vsel %vm225_vm4, %v7647_v44, 0.0  ;;  %5925 = vmatprep.subr.bf16.mxu1 %v5924_v20 }
0x29bf   :  { %3864 = vadd.xlane.f32.xlu1 %v3863_v14  ;;  %v3860_v39 = vsel %vm225_vm4, %v7650_v54, 0.0  ;;  %5927 = vmatpush3.bf16.msra.mxu1 %v5924_v20  ;;  %v4187_v20 = vld [vmem:[%s7858_s1 + $0x48] sm:$0xff] }
0x29c0   :  { %3861 = vadd.xlane.f32.xlu0 %v3860_v39 }
0x2a4c   :  { %v3865_v52 = vpop.xlane.xlu1 %3864 }
0x2a4d   :  { %v3867_v9 = vmul.f32 0.03125, %v3865_v52  ;;  %v3862_v18 = vpop.xlane.xlu0 %3861 }
0x2a4e   :  { %v3866_v27 = vmul.f32 0.03125, %v3862_v18 }
0x2a4f   :  { %v3869_v15 = vsub.f32 %v7647_v44, %v3867_v9 }
0x2a50   :  { %v3868_v11 = vsub.f32 %v7650_v54, %v3866_v27 }
0x2a51   :  { %v3871_v32 = vmul.f32 %v3869_v15, %v3869_v15 }
0x2a52   :  { %v3870_v42 = vmul.f32 %v3868_v11, %v3868_v11 }
0x2a53   :  { %v3875_v45 = vsel %vm225_vm4, %v3871_v32, 0.0 }
0x2a54   :  { %v3872_v13 = vsel %vm225_vm4, %v3870_v42, 0.0 }
0x2a55   :  { %3873 = vadd.xlane.f32.xlu0 %v3872_v13 }
0x2a59   :  { %3876 = vadd.xlane.f32.xlu0 %v3875_v45 }
0x2ae2   :  { %v3874_v17 = vpop.xlane.xlu0 %3873 }
0x2ae3   :  { %v3878_v12 = vmul.f32 0.03125, %v3874_v17  ;;  %v4683_v17 = vld [vmem:[%s7860_s6 + $0x1d] ss:$0 sm:$0xff] }
0x2ae5   :  { %v3880_v2 = vadd.f32 1e-05, %v3878_v12 }
0x2ae6   :  { %v3877_v30 = vpop.xlane.xlu0 %3876 }
0x2ae7   :  { %6298 = vrsqrt.f32 %v3880_v2  ;;  %v3879_v31 = vmul.f32 0.03125, %v3877_v30 }
0x2ae9   :  { %v3881_v23 = vadd.f32 1e-05, %v3879_v31 }
0x2aeb   :  { %6300 = vrsqrt.f32 %v3881_v23 }
0x2af1   :  { %v6299_v61 = vpop.eup %6298 }
0x2af2   :  { %v3884_v49 = vmul.f32 %v6299_v61, %v3868_v11 }
0x2af4   :  { %v3890_v36 = vmul.f32 %v4658_v26, %v3884_v49 }
0x2af5   :  { %v6301_v38 = vpop.eup %6300 }
0x2af6   :  { %v3885_v19 = vmul.f32 %v6301_v38, %v3869_v15  ;;  %v3896_v25 = vadd.f32 %v4659_v33, %v3890_v36 }
0x2af8   :  { %v3891_v28 = vmul.f32 %v4658_v26, %v3885_v19  ;;  %5471 = vmatprep.mubr.msk.f32.mxu0 %vm225_vm4, %v3896_v25 }
0x2afa   :  { %v3897_v29 = vadd.f32 %v4659_v33, %v3891_v28 }
0x2afc   :  { %5472 = vmatmul.mubr.msk.f32.vlgmr.msra.gmra.mrb[48].mxu0 %vm225_vm4, %v3897_v29 }
0x2bcf   :  { %v5473_v57 = vpop.f32.mrb[48].mxu0 }
0x2bd0   :  { %v3986_v14 = vadd.f32 %v5473_v57, %v4664_v55  ;;  %v3980_v39 = vpop.f32.mrb[49].mxu0  ;;  %v5928_v57 = vpack.c.bf16 %v4187_v20, %v4186_v0 }
0x2bd1   :  { %v3981_v52 = vadd.f32 %v4664_v55, %v3980_v39  ;;  %v4189_v39 = vld [vmem:[%s7858_s1 + $0x58] sm:$0xff] }
0x2bd2   :  { %v3992_v9 = vmul.f32 0.044715, %v3986_v14  ;;  %v3990_v21 = vmul.f32 0.5, %v3986_v14  ;;  %5930 = vmatprep.subr.msk.bf16.mxu0 %vm7756_vm5, %v5928_v57 }
0x2bd3   :  { %v3991_v18 = vmul.f32 0.044715, %v3981_v52  ;;  %v3989_v62 = vmul.f32 0.5, %v3981_v52  ;;  %5933 = vmatpush3.bf16.xpose.msk.msra.mxu0 %vm7756_vm5, %v5928_v57 }
0x2bd4   :  { %v3994_v27 = vmul.f32 %v3992_v9, %v3986_v14 }
0x2bd5   :  { %v3993_v15 = vmul.f32 %v3991_v18, %v3981_v52 }
0x2bd6   :  { %v3996_v11 = vmul.f32 %v3994_v27, %v3986_v14 }
0x2bd7   :  { %v3995_v42 = vmul.f32 %v3993_v15, %v3981_v52 }
0x2bd8   :  { %v3998_v13 = vadd.f32 %v3996_v11, %v3986_v14  ;;  %v4188_v14 = vld [vmem:[%s7858_s1 + $0x50] sm:$0xff] }
0x2bd9   :  { %v3997_v32 = vadd.f32 %v3995_v42, %v3981_v52  ;;  %v5934_v52 = vpack.c.bf16 %v4189_v39, %v4188_v14 }
0x2bda   :  { %v4000_v45 = vmul.f32 0.7978846, %v3998_v13 }
0x2bdb   :  { %v3999_v60 = vmul.f32 0.7978846, %v3997_v32  ;;  %5936 = vmatprep.subr.msk.bf16.mxu0 %vm7756_vm5, %v5934_v52 }
0x2bdc   :  { %6302 = vtanh.f32 %v4000_v45  ;;  %5939 = vmatpush3.bf16.xpose.msk.msra.mxu0 %vm7756_vm5, %v5934_v52 }
0x2bdd   :  { %6304 = vtanh.f32 %v3999_v60 }
0x2be6   :  { %v6303_v56 = vpop.eup %6302 }
0x2be7   :  { %v6305_v10 = vpop.eup %6304  ;;  %v4004_v4 = vadd.f32 1.0, %v6303_v56  ;;  %v4190_v56 = vld [vmem:[%s7858_s1 + $0x60] sm:$0xff] }
0x2be8   :  { %v4003_v6 = vadd.f32 1.0, %v6305_v10  ;;  %v4191_v10 = vld [vmem:[%s7858_s1 + $0x68] sm:$0xff] }
0x2be9   :  { %v4006_v1 = vmul.f32 %v4004_v4, %v3990_v21  ;;  %v5940_v4 = vpack.c.bf16 %v4191_v10, %v4190_v56 }
0x2bea   :  { %v4005_v59 = vmul.f32 %v4003_v6, %v3989_v62  ;;  %v4192_v62 = vld [vmem:[%s7858_s1 + $0x70] sm:$0xff]  ;;  %v4193_v6 = vld [vmem:[%s7858_s1 + $0x78] sm:$0xff] }
0x2beb   :  { %5942 = vmatprep.subr.msk.bf16.mxu0 %vm7756_vm5, %v5940_v4  ;;  %v5946_v21 = vpack.c.bf16 %v4193_v6, %v4192_v62 }
0x2bec   :  { %5506 = vmatprep.mubr.f32.mxu1 %v4005_v59  ;;  %5945 = vmatpush3.bf16.xpose.msk.msra.mxu0 %vm7756_vm5, %v5940_v4 }
0x2bed   :  { %5507 = vmatmul.mubr.f32.vlgmr.msra.gmra.mrb[46].mxu1 %v4006_v1  ;;  %5948 = vmatprep.subr.msk.bf16.mxu0 %vm7756_vm5, %v5946_v21 }
0x2bf4   :  { %5951 = vmatpush3.bf16.xpose.msk.msra.mxu0 %vm7756_vm5, %v5946_v21 }
0x2cc0   :  { %v5508_v12 = vpop.f32.mrb[46].mxu1 }
0x2cc1   :  { %v4101_v2 = vadd.f32 %v5508_v12, %v4683_v17  ;;  %v4095_v30 = vpop.f32.mrb[47].mxu1 }
0x2cc2   :  { %v4096_v31 = vadd.f32 %v4683_v17, %v4095_v30 }
0x2cc3   :  { %v4105_v23 = vadd.f32 %v4101_v2, %v7647_v44 }
0x2cc4   :  { %v4104_v61 = vadd.f32 %v4096_v31, %v7650_v54 }
0x2cc5   :  { %v4111_v26 = vsel %vm225_vm4, %v4105_v23, 0.0 }
0x2cc6   :  { %4112 = vadd.xlane.f32.xlu0 %v4111_v26  ;;  %v4108_v49 = vsel %vm225_vm4, %v4104_v61, 0.0 }
0x2cc7   :  { %4109 = vadd.xlane.f32.xlu1 %v4108_v49 }
0x2d53   :  { %v4113_v33 = vpop.xlane.xlu0 %4112 }
0x2d54   :  { %v4115_v36 = vmul.f32 0.03125, %v4113_v33  ;;  %v4110_v38 = vpop.xlane.xlu1 %4109  ;;  %v4687_v33 = vld [vmem:[%s7860_s6 + $0x25] ss:$0 sm:$0xff] }
0x2d55   :  { %v4114_v19 = vmul.f32 0.03125, %v4110_v38 }
0x2d56   :  { %v4117_v25 = vsub.f32 %v4105_v23, %v4115_v36  ;;  %v4686_v23 = vld [vmem:[%s7860_s6 + $0x24] ss:$0 sm:$0xff] }
0x2d57   :  { %v4116_v28 = vsub.f32 %v4104_v61, %v4114_v19 }
0x2d58   :  { %v4119_v29 = vmul.f32 %v4117_v25, %v4117_v25 }
0x2d59   :  { %v4118_v50 = vmul.f32 %v4116_v28, %v4116_v28 }
0x2d5a   :  { %v4123_v58 = vsel %vm225_vm4, %v4119_v29, 0.0 }
0x2d5b   :  { %4124 = vadd.xlane.f32.xlu0 %v4123_v58  ;;  %v4120_v44 = vsel %vm225_vm4, %v4118_v50, 0.0 }
0x2d5c   :  { %4121 = vadd.xlane.f32.xlu1 %v4120_v44 }
0x2de8   :  { %v4125_v54 = vpop.xlane.xlu0 %4124 }
0x2de9   :  { %v4127_v7 = vmul.f32 0.03125, %v4125_v54  ;;  %v4122_v8 = vpop.xlane.xlu1 %4121 }
0x2dea   :  { %v4126_v63 = vmul.f32 0.03125, %v4122_v8 }
0x2deb   :  { %v4129_v35 = vadd.f32 1e-05, %v4127_v7 }
0x2dec   :  { %v4128_v43 = vadd.f32 1e-05, %v4126_v63 }
0x2ded   :  { %6306 = vrsqrt.f32 %v4129_v35 }
0x2dee   :  { %6308 = vrsqrt.f32 %v4128_v43 }
0x2df7   :  { %v6307_v34 = vpop.eup %6306 }
0x2df8   :  { %v6309_v47 = vpop.eup %6308  ;;  %v4133_v48 = vmul.f32 %v6307_v34, %v4117_v25 }
0x2df9   :  { %v4132_v16 = vmul.f32 %v6309_v47, %v4116_v28 }
0x2dfa   :  { %v4139_v41 = vmul.f32 %v4684_v46, %v4133_v48  ;;  %v7819_v48 = vld [vmem:[%s7857_s0 + $0x10] sm:$0xff] }
0x2dfb   :  { %v4138_v53 = vmul.f32 %v4684_v46, %v4132_v16  ;;  %vm4381_vm0 = vcmp.ne.s32.totalorder %v7819_v48, 4294967196 }
0x2dfc   :  { %v4145_v3 = vadd.f32 %v4685_v51, %v4139_v41 }
0x2dfd   :  { %v4144_v5 = vadd.f32 %v4685_v51, %v4138_v53  ;;  %v7825_v51 = vld [vmem:[%s7857_s0 + $0x18] sm:$0xff] }
0x2dfe   :  { %v4151_v37 = vsel %vm225_vm4, %v4145_v3, 0.0  ;;  %vm4382_vm2 = vcmp.ne.s32.totalorder %v7825_v51, 4294967196 }
0x2dff   :  { %4152 = vadd.xlane.f32.xlu0 %v4151_v37  ;;  %v4148_v40 = vsel %vm225_vm4, %v4144_v5, 0.0 }
0x2e00   :  { %4149 = vadd.xlane.f32.xlu1 %v4148_v40 }
0x2e8c   :  { %v4153_v9 = vpop.xlane.xlu0 %4152 }
0x2e8d   :  { %v4155_v18 = vmul.f32 0.03125, %v4153_v9  ;;  %v4150_v27 = vpop.xlane.xlu1 %4149 }
0x2e8e   :  { %v4154_v15 = vmul.f32 0.03125, %v4150_v27 }
0x2e8f   :  { %v4157_v11 = vsub.f32 %v4145_v3, %v4155_v18 }
0x2e90   :  { %v4156_v42 = vsub.f32 %v4144_v5, %v4154_v15 }
0x2e91   :  { %v4159_v13 = vmul.f32 %v4157_v11, %v4157_v11 }
0x2e92   :  { %v4158_v32 = vmul.f32 %v4156_v42, %v4156_v42 }
0x2e93   :  { %v4163_v45 = vsel %vm225_vm4, %v4159_v13, 0.0 }
0x2e94   :  { %4164 = vadd.xlane.f32.xlu0 %v4163_v45  ;;  %v4160_v60 = vsel %vm225_vm4, %v4158_v32, 0.0  ;;  %v4700_v45 = vsel %vm4381_vm0, 1.0, %v6326_v24 }
0x2e95   :  { %4161 = vadd.xlane.f32.xlu1 %v4160_v60  ;;  %v4701_v60 = vsel %vm4382_vm2, 1.0, %v6326_v24  ;;  %v4388_v56 = vsel %vm4387_vm3, %v4700_v45, 0.0 }
0x2e96   :  { %v4389_v10 = vsel %vm4387_vm3, %v4701_v60, 0.0 }
0x2e97   :  { %v4390_v4 = vadd.f32 %v4389_v10, %v4388_v56 }
0x2e99   :  { %v4391_v62 = vrot.slane %v4390_v4, 4 }
0x2f21   :  { %v4165_v59 = vpop.xlane.xlu0 %4164 }
0x2f22   :  { %v4167_v1 = vmul.f32 0.03125, %v4165_v59  ;;  %v4162_v17 = vpop.xlane.xlu1 %4161  ;;  %v4392_v59 = vadd.f32 %v4391_v62, %v4390_v4 }
0x2f23   :  { %v4166_v12 = vmul.f32 0.03125, %v4162_v17 }
0x2f24   :  { %v4169_v2 = vadd.f32 1e-05, %v4167_v1  ;;  %v4393_v1 = vrot.slane %v4392_v59, 2 }
0x2f25   :  { %v4168_v30 = vadd.f32 1e-05, %v4166_v12 }
0x2f26   :  { %6310 = vrsqrt.f32 %v4169_v2  ;;  %v4394_v17 = vadd.f32 %v4393_v1, %v4392_v59 }
0x2f27   :  { %6312 = vrsqrt.f32 %v4168_v30 }
0x2f30   :  { %v6311_v31 = vpop.eup %6310 }
0x2f31   :  { %v6313_v61 = vpop.eup %6312  ;;  %v4173_v26 = vmul.f32 %v6311_v31, %v4157_v11 }
0x2f32   :  { %v4172_v49 = vmul.f32 %v6313_v61, %v4156_v42 }
0x2f33   :  { %v4179_v36 = vmul.f32 %v4686_v23, %v4173_v26 }
0x2f34   :  { %v4178_v38 = vmul.f32 %v4686_v23, %v4172_v49  ;;  %v4395_v23 = vrot.slane %v4394_v17, 1 }
0x2f35   :  { %v4185_v25 = vadd.f32 %v4687_v33, %v4179_v36 }
0x2f36   :  { %v4184_v19 = vadd.f32 %v4687_v33, %v4178_v38 }
0x2f38   :  { %5525 = vmatprep.mubr.msk.f32.mxu0 %vm225_vm4, %v4184_v19 }
0x2f39   :  { %5526 = vmatmul.mubr.msk.f32.vlgmr.msra.gmra.mrb[50].mxu0 %vm225_vm4, %v4185_v25 }
0x300c   :  { %v5527_v28 = vpop.f32.mrb[50].mxu0 }
0x300d   :  { %v4290_v29 = vpop.f32.mrb[51].mxu0  ;;  %v4302_v50 = vsel %vm55_vm1, %v5527_v28, -inf }
0x300e   :  { %4303 = vmax.xlane.f32.xlu0 %v4302_v50  ;;  %v4299_v58 = vsel %vm55_vm1, %v4290_v29, -inf  ;;  %v4396_v50 = vadd.f32 %v4395_v23, %v4394_v17 }
0x300f   :  { %4300 = vmax.xlane.f32.xlu1 %v4299_v58 }
0x309b   :  { %v7806_v44 = vpop.xlane.xlu0 %4303 }
0x309c   :  { %vm4342_vm6 = vcmp.eq.f32.partialorder %v5527_v28, %v7806_v44  ;;  %v7809_v54 = vpop.xlane.xlu1 %4300  ;;  %v4306_v16 = vsub.f32 %v5527_v28, %v7806_v44 }
0x309d   :  { %v4344_v7 = vsel %vm4342_vm6, %v6421_v22, 64  ;;  %vm4341_vm7 = vcmp.eq.f32.partialorder %v4290_v29, %v7809_v54  ;;  %v4305_v41 = vsub.f32 %v4290_v29, %v7809_v54 }
0x309e   :  { %v4343_v8 = vsel %vm4341_vm7, %v6421_v22, 64  ;;  %v4360_v63 = vsel %vm55_vm1, %v4344_v7, 2147483647  ;;  %v4309_v53 = vmul.f32 1.442695, %v4306_v16 }
0x309f   :  { %v4362_v35 = vshra.s32 %v4360_v63, 16  ;;  %v4345_v43 = vsel %vm55_vm1, %v4343_v8, 2147483647  ;;  %v4307_v3 = vmul.f32 1.442695, %v4305_v41  ;;  %v4361_v20 = vand.u32 65535, %v4360_v63 }
0x30a0   :  { %v4347_v34 = vshra.s32 %v4345_v43, 16  ;;  %6314 = vpow2.f32 %v4309_v53  ;;  %v4346_v55 = vand.u32 65535, %v4345_v43 }
0x30a1   :  { %v4364_v46 = vcvt.s32.f32 %v4362_v35  ;;  %6316 = vpow2.f32 %v4307_v3  ;;  %v4363_v14 = vcvt.s32.f32 %v4361_v20 }
0x30a2   :  { %v4349_v47 = vcvt.s32.f32 %v4347_v34  ;;  %v4348_v52 = vcvt.s32.f32 %v4346_v55 }
0x30a3   :  { %4365 = vmin.xlane.f32.xlu0 %v4364_v46 }
0x30a4   :  { %4350 = vmin.xlane.f32.xlu1 %v4349_v47 }
0x30aa   :  { %v6315_v5 = vpop.eup %6314 }
0x30ab   :  { %v6317_v37 = vpop.eup %6316  ;;  %v4314_v40 = vsel %vm55_vm1, %v6315_v5, 0.0 }
0x30ac   :  { %v4311_v0 = vsel %vm55_vm1, %v6317_v37, 0.0 }
0x30b5   :  { %4324 = vperm.xlu1 %6125, %v7819_v48  }
0x30b9   :  { %4327 = vperm.xlu0 %5964, %v7825_v51  }
0x30d8   :  { %4315 = vadd.xlane.f32.xlu0 %v4314_v40 }
0x30d9   :  { %4312 = vadd.xlane.f32.xlu1 %v4311_v0 }
0x3130   :  { %v4366_v57 = vpop.xlane.xlu0 %4365 }
0x3131   :  { %vm4367_vm4 = vcmp.eq.f32.partialorder %v4364_v46, %v4366_v57  ;;  %v4351_v39 = vpop.xlane.xlu1 %4350  ;;  %v4372_v12 = vcvt.f32.s32 %v4366_v57 }
0x3132   :  { %vm4352_vm13 = vcmp.eq.f32.partialorder %v4349_v47, %v4351_v39  ;;  %v4368_v9 = vsel %vm4367_vm4, %v4363_v14, inf  ;;  %v4357_v30 = vcvt.f32.s32 %v4351_v39  ;;  %v4397_v47 = vmax.f32 %v4396_v50, 1.0 }
0x3133   :  { %4369 = vmin.xlane.f32.xlu0 %v4368_v9  ;;  %v4353_v18 = vsel %vm4352_vm13, %v4348_v52, inf  ;;  %v4373_v26 = vshll.u32 %v4372_v12, 16 }
0x3134   :  { %4354 = vmin.xlane.f32.xlu1 %v4353_v18  ;;  %v4358_v38 = vshll.u32 %v4357_v30, 16 }
0x3135   :  { %v4325_v27 = vpop.permute.xlu1 %4324 }
0x3136   :  { %vm4329_vm14 = vcmp.eq.s32.totalorder %v6421_v22, %v4325_v27 }
0x3137   :  { %v4331_v15 = vsel %vm4329_vm14, %v4290_v29, 0.0 }
0x3138   :  { %v4328_v11 = vpop.permute.xlu0 %4327  ;;  %v4333_v42 = vsel %vm55_vm1, %v4331_v15, 0.0 }
0x3139   :  { %vm4330_vm15 = vcmp.eq.s32.totalorder %v6421_v22, %v4328_v11  ;;  %4334 = vadd.xlane.f32.xlu1 %v4333_v42 }
0x313a   :  { %v4332_v13 = vsel %vm4330_vm15, %v5527_v28, 0.0 }
0x313b   :  { %v4336_v32 = vsel %vm55_vm1, %v4332_v13, 0.0 }
0x313c   :  { %4337 = vadd.xlane.f32.xlu0 %v4336_v32 }
0x3165   :  { %v4316_v21 = vpop.xlane.xlu0 %4315 }
0x3166   :  { %v4313_v6 = vpop.xlane.xlu1 %4312 }
0x3167   :  { %6318 = vlog2.f32 %v4313_v6 }
0x3168   :  { %6320 = vlog2.f32 %v4316_v21 }
0x3169   :  { %6322 = vrcp.f32 %v4397_v47 }
0x3171   :  { %v6319_v2 = vpop.eup %6318 }
0x3172   :  { %v6321_v61 = vpop.eup %6320  ;;  %v4318_v49 = vmul.f32 0.6931472, %v6319_v2 }
0x3173   :  { %v4320_v28 = vmul.f32 0.6931472, %v6321_v61  ;;  %v6323_v52 = vpop.eup %6322 }
0x3174   :  { %v4321_v58 = vadd.f32 %v4318_v49, %v7809_v54 }
0x3175   :  { %v4322_v46 = vadd.f32 %v4320_v28, %v7806_v44 }
0x31c0   :  { %v4370_v31 = vpop.xlane.xlu0 %4369 }
0x31c1   :  { %v4371_v33 = vcvt.f32.s32 %v4370_v31  ;;  %v4355_v36 = vpop.xlane.xlu1 %4354 }
0x31c2   :  { %v4356_v19 = vcvt.f32.s32 %v4355_v36 }
0x31c3   :  { %v4374_v25 = vadd.s32 %v4373_v26, %v4371_v33 }
0x31c4   :  { %v4359_v29 = vadd.s32 %v4358_v38, %v4356_v19 }
0x31c5   :  { %vm4376_vm1 = vcmp.eq.s32.totalorder %v4374_v25, %v7825_v51 }
0x31c6   :  { %v4699_v7 = vsel %vm4376_vm1, 1.0, %v6326_v24  ;;  %vm4375_vm8 = vcmp.eq.s32.totalorder %v4359_v29, %v7819_v48  ;;  %v4335_v8 = vpop.xlane.xlu1 %4334 }
0x31c7   :  { %v4698_v63 = vsel %vm4375_vm8, 1.0, %v6326_v24  ;;  %v4339_v35 = vsub.f32 %v4321_v58, %v4335_v8  ;;  %v4412_v43 = vmul.f32 %v4701_v60, %v4699_v7 }
0x31c8   :  { %v4411_v34 = vmul.f32 %v4700_v45, %v4698_v63 }
0x31c9   :  { %v4414_v16 = vsel %vm4387_vm3, %v4412_v43, 0.0  ;;  %v4338_v41 = vpop.xlane.xlu0 %4337  ;;  %v4398_v53 = vmul.f32 %v4700_v45, %v4339_v35 }
0x31ca   :  { %v4413_v51 = vsel %vm4387_vm3, %v4411_v34, 0.0  ;;  %v4340_v54 = vsub.f32 %v4322_v46, %v4338_v41 }
0x31cb   :  { %v4415_v3 = vadd.f32 %v4414_v16, %v4413_v51  ;;  %v4400_v37 = vsel %vm4387_vm3, %v4398_v53, 0.0 }
0x31cc   :  { %v4399_v5 = vmul.f32 %v4701_v60, %v4340_v54 }
0x31cd   :  { %v4416_v48 = vrot.slane %v4415_v3, 4 }
0x31ce   :  { %v4401_v24 = vsel %vm4387_vm3, %v4399_v5, 0.0 }
0x31cf   :  { %v4402_v40 = vadd.f32 %v4401_v24, %v4400_v37  ;;  %v4417_v0 = vadd.f32 %v4416_v48, %v4415_v3 }
0x31d1   :  { %v4403_v20 = vrot.slane %v4402_v40, 4  ;;  %v4418_v44 = vrot.slane %v4417_v0, 2 }
0x31d3   :  { %v4404_v55 = vadd.f32 %v4403_v20, %v4402_v40  ;;  %v4419_v57 = vadd.f32 %v4418_v44, %v4417_v0 }
0x31d5   :  { %v4405_v14 = vrot.slane %v4404_v55, 2  ;;  %v4420_v39 = vrot.slane %v4419_v57, 1 }
0x31d7   :  { %v4406_v9 = vadd.f32 %v4405_v14, %v4404_v55  ;;  %v4421_v18 = vadd.f32 %v4420_v39, %v4419_v57 }
0x31d9   :  { %v4422_v27 = vmul.f32 %v6323_v52, %v4421_v18  ;;  %v4407_v15 = vrot.slane %v4406_v9, 1 }
0x31db   :  { %4427 = vperm.xlu1 %6125, %v4422_v27   ;;  %v4408_v11 = vadd.f32 %v4407_v15, %v4406_v9 }
0x31dd   :  { %v4410_v42 = vmul.f32 %v6323_v52, %v4408_v11 }
0x31df   :  { %4433 = vperm.xlu0 %5964, %v4410_v42  }
0x325a   :  { %v4428_v13 = vpop.permute.xlu1 %4427 }
0x325b   :  { %v4430_v32 = vsel %vm4424_vm9, %v4428_v13, 0.0 }
0x325e   :  { %v4434_v45 = vpop.permute.xlu0 %4433 }
0x325f   :  { %v4436_v60 = vsel %vm4423_vm10, %v4434_v45, %v4430_v32 }
0x3260   :  { %4437 = vst [vmem:[%s7864_s7] sm:$0x1] %v4436_v60 }

</bundles_post_ra>
